<compile_context>
chip_gen: v7x
topology: tpu7x:2x2x1
jax: 0.10.0
libtpu: 0.0.40
codegen_flags: <defaults>
</compile_context>

<pallas_src>
import jax
import jax.numpy as jnp
from jax.experimental import pallas as pl
from jax.experimental.pallas import tpu as pltpu


# ----------------------------- small helpers -------------------------------

def _row(p, i):
    """Bias row i as a (1, C) slab. Works for both Refs and arrays."""
    return p[i:i + 1, :]


def _silu(x, in_kernel):
    denom = 1.0 + jnp.exp(-x)
    inv = pl.reciprocal(denom, approx=True) if in_kernel else 1.0 / denom
    return x * inv


def _detect_mxu_depth():
    """128-deep MXU on <=v5, 256-deep on v6e/v7x."""
    try:
        kind = jax.devices()[0].device_kind.lower()
    except Exception:
        return 128
    for tag in ("v2", "v3", "v4", "v5"):
        if tag in kind:
            return 128
    return 256


def _slab_cols(plan, mxu_depth):
    """Width of the reusable im2col slab scratch (max fused contraction)."""
    F = plan['F']
    tpc = max(1, mxu_depth // F)
    cols = F
    for blk in plan['blocks']:
        cols = max(cols, min(blk['K'], tpc) * F)
    n_1x1 = 1 + sum(1 for blk in plan['blocks'] if blk['end'] is not None)
    cols = max(cols, min(n_1x1, tpc) * F)
    return cols


def _vmem_estimate(plan, b_tile, L, out_itemsize, mxu_depth):
    """Rough per-grid-step VMEM footprint (bytes) — used for b_tile picking
    and for vmem_limit_bytes.  Deliberately generous."""
    F, CL, max_pad = plan['F'], plan['CL'], plan['max_pad']
    Lp = L + 2 * max_pad
    M = b_tile * L
    est = 0
    est += 2 * b_tile * L * 128 * 2                       # input block (lane-padded bf16, dbl-buf)
    est += 2 * b_tile * (L - CL) * 128 * out_itemsize     # output block (lane-padded, dbl-buf)
    est += b_tile * Lp * F * 2                            # zero-haloed activation scratch
    est += M * _slab_cols(plan, mxu_depth) * 2            # im2col slab scratch
    est += 10 * M * F * 4                                 # live f32/bf16 activations
    est += 3 * M * 128 * 4                                # head intermediates
    return est


def _cost_numbers(plan, N, L, out_pad, out_itemsize, packed):
    """Whole-call FLOPs / transcendentals / bytes for pl.CostEstimate."""
    F, CL = plan['F'], plan['CL']
    M = N * L
    flops = 2 * M * 4 * F                                       # conv1 (4 -> F)
    n_1x1 = 1 + sum(1 for b in plan['blocks'] if b['end'] is not None)
    flops += 2 * M * n_1x1 * F * F                              # skip + end 1x1s
    for blk in plan['blocks']:
        flops += 2 * 2 * M * blk['K'] * F * F                   # two dilated convs / block
    flops += 2 * M * F * 128 + 2 * M * 128 * 128                # head
    n_silu = 1 + len(plan['blocks'])
    transc = M * (n_silu * F + 128 + 128)                       # SiLU + softmax exps
    bytes_acc = (N * L * 4 * 2                                  # bf16 input
                 + N * (L - CL) * out_pad * out_itemsize        # output
                 + sum(int(p.size) * p.dtype.itemsize for p in packed))
    return int(flops), int(transc), int(bytes_acc)


# ----------------------------- shared math ---------------------------------

def _dilated_conv(h2d, w_ref, w_idx, bias, K, dil, B, L, scr, slab, max_pad,
                  mxu_depth):
    """'same' dilated conv on batch-flattened (B*L, F) activations.

    Taps are fused into wide MXU contractions chunked by the MXU depth.
    In-kernel the zero halo lives in a persistent bf16 scratch `scr` of shape
    (B*(L + 2*max_pad), F) and the fused slab is built by direct ref stores
    into the reusable scratch `slab`.  In the pure-JAX reference
    (scr=slab=None) the same math is materialized with jnp.concatenate.
    """
    F = h2d.shape[-1]
    pad = dil * (K - 1) // 2          # symmetric 'same' only for odd K (asserted)
    hb = h2d.astype(jnp.bfloat16)

    if scr is not None:
        Lp = L + 2 * max_pad
        for b in range(B):
            scr[b * Lp + max_pad:b * Lp + max_pad + L, :] = hb[b * L:(b + 1) * L, :]

        def tap(b, k):
            s = b * Lp + max_pad - pad + k * dil
            return scr[s:s + L, :]
    else:
        z = jnp.zeros((pad, F), jnp.bfloat16)
        xps = [jnp.concatenate([z, hb[b * L:(b + 1) * L, :], z], axis=0)
               for b in range(B)]

        def tap(b, k):
            return xps[b][k * dil:k * dil + L, :]

    w_flat = w_ref[w_idx]                       # (K*F, F) bf16, loaded at use site
    tpc = max(1, mxu_depth // F)                # MXU-depth-aware fused-tap chunk
    acc = None
    for c0 in range(0, K, tpc):
        c1 = min(K, c0 + tpc)
        n = c1 - c0
        if n == 1 and B == 1:
            sl = tap(0, c0)
        elif slab is not None:
            for b in range(B):
                for t in range(n):
                    slab[b * L:(b + 1) * L, t * F:(t + 1) * F] = tap(b, c0 + t)
            sl = slab[:, 0:n * F]
        else:
            cols = []
            for b in range(B):
                pieces = [tap(b, k) for k in range(c0, c1)]
                cols.append(pieces[0] if n == 1
                            else jnp.concatenate(pieces, axis=1))
            sl = cols[0] if B == 1 else jnp.concatenate(cols, axis=0)
        part = jnp.dot(sl, w_flat[c0 * F:c1 * F, :],
                       preferred_element_type=jnp.float32)
        acc = part if acc is None else acc + part
    return acc + bias


def _forward(x2d, pk, plan, B, L, scr, slab, in_kernel, mxu_depth):
    """Full ConvSplice forward on batch-flattened activations.

    x2d : (B*L, 4).  Returns (B*L, 128) f32 softmax probabilities over the
    FULL sequence (context-length crop happens at the caller/store); only
    channels [:3] are real, the padded channels are exactly 0.
    """
    w_first, w1x1, biasF, wblk, wh1, wh2, bhead = pk
    F, max_pad = plan['F'], plan['max_pad']

    # ConvEncoder.conv1 : BasicConv(4 -> F, k=1) -> BN(folded) -> SiLU
    h = _silu(jnp.dot(x2d.astype(jnp.bfloat16), w_first[...],
                      preferred_element_type=jnp.float32)
              + _row(biasF, plan['b_conv1']), in_kernel)

    # Deferred skip-path 1x1 convs (ConvEncoder.skip + conv_block_ends):
    # bf16 snapshots of h, flushed as batched wide contractions.
    snaps_per_chunk = max(1, mxu_depth // F)
    pending = [(plan['w_skip'], plan['b_skip'], h.astype(jnp.bfloat16))]
    skip = None

    def flush(pending, skip):
        if not pending:
            return skip
        n = len(pending)
        i0 = pending[0][0]
        assert [p[0] for p in pending] == list(range(i0, i0 + n))
        w_chunk = w1x1[i0:i0 + n].reshape(n * F, F)
        if n == 1:
            sl = pending[0][2]
        elif slab is not None:
            for t, (_, _, snap) in enumerate(pending):
                slab[:, t * F:(t + 1) * F] = snap
            sl = slab[:, 0:n * F]
        else:
            sl = jnp.concatenate([p[2] for p in pending], axis=1)
        part = jnp.dot(sl, w_chunk, preferred_element_type=jnp.float32)
        for (_, bi, _) in pending:
            part = part + _row(biasF, bi)
        return part if skip is None else skip + part

    for blk in plan['blocks']:
        K, dil = blk['K'], blk['dil']
        (g1, j1), (g2, j2) = blk['w1'], blk['w2']
        # ConvBlock: conv+BN+SiLU, conv+BN, residual add
        y = _silu(_dilated_conv(h, wblk[g1], j1, _row(biasF, blk['b1']),
                                K, dil, B, L, scr, slab, max_pad, mxu_depth),
                  in_kernel)
        y = _dilated_conv(y, wblk[g2], j2, _row(biasF, blk['b2']),
                          K, dil, B, L, scr, slab, max_pad, mxu_depth)
        h = y + h
        end = blk['end']
        if end is not None:
            pending.append((end['w'], end['b'], h.astype(jnp.bfloat16)))
            if len(pending) == snaps_per_chunk:
                skip = flush(pending, skip)
                pending = []
    skip = flush(pending, skip)

    # head: Conv1d(F,128,1) -> SiLU -> Conv1d(128, 3 padded to 128, 1) -> softmax
    z = _silu(jnp.dot(skip.astype(jnp.bfloat16), wh1[...],
                      preferred_element_type=jnp.float32) + _row(bhead, 0),
              in_kernel)
    z = jnp.dot(z.astype(jnp.bfloat16), wh2[...],
                preferred_element_type=jnp.float32) + _row(bhead, 1)
    z = z - jnp.max(z, axis=-1, keepdims=True)
    ez = jnp.exp(z)                           # padded logits are -1e30 -> exp == 0
    s = jnp.sum(ez, axis=-1, keepdims=True)
    return ez / s                             # exact divide: rows sum to 1


# ------------------------------ Pallas kernel -------------------------------

def _make_kernel(plan, b_tile, L, out_pad, mxu_depth):
    G = plan['n_wblk_groups']
    F, CL, max_pad = plan['F'], plan['CL'], plan['max_pad']
    L_out = L - CL
    Lp = L + 2 * max_pad
    lo = CL // 2

    def kernel(*refs):
        x_ref = refs[0]
        w_first, w1x1, biasF = refs[1], refs[2], refs[3]
        wblk = tuple(refs[4:4 + G])
        wh1, wh2, bhead = refs[4 + G], refs[5 + G], refs[6 + G]
        out_ref = refs[7 + G]
        scr = refs[8 + G]
        slab = refs[9 + G]

        # Halo rows of `scr` must read as zero.  They are never overwritten
        # and scratch persists across grid steps, so zero them ONCE at step 0
        # (no full-scratch memset every step).
        if max_pad > 0:
            @pl.when(pl.program_id(0) == 0)
            def _():
                zrow = jnp.zeros((max_pad, F), scr.dtype)
                for b in range(b_tile):
                    scr[b * Lp:b * Lp + max_pad, :] = zrow
                    scr[b * Lp + max_pad + L:(b + 1) * Lp, :] = zrow

        # Batch-flatten the input with a free reshape (no concats).
        x2d = x_ref[...].reshape(b_tile * L, 4)

        pk = (w_first, w1x1, biasF, wblk, wh1, wh2, bhead)
        probs = _forward(x2d, pk, plan, b_tile, L, scr=scr, slab=slab,
                         in_kernel=True, mxu_depth=mxu_depth)

        # Context-length crop happens at the store; single reshaped store.
        probs3 = probs.reshape(b_tile, L, probs.shape[-1])
        out_ref[...] = probs3[:, lo:lo + L_out, 0:out_pad].astype(out_ref.dtype)

    return kernel


def _whole_array(nd):
    return lambda b: (0,) * nd


def conv_splice_forward(x, packed, plan, *, b_tile=None, out_pad=128,
                        out_dtype=jnp.float32, mxu_depth=None):
    """x: (N, L, 4) one-hot-ish sequence -> (N, L - CL, 3) probabilities."""
    N, L, c_in = x.shape
    assert c_in == 4
    CL, F, max_pad = plan['CL'], plan['F'], plan['max_pad']
    L_out = L - CL
    assert 3 <= out_pad <= 128
    if mxu_depth is None:
        mxu_depth = _detect_mxu_depth()
    out_itemsize = jnp.dtype(out_dtype).itemsize

    if b_tile is None:
        # Largest b_tile that divides N, keeps the grid >= 2 steps (v7x's two
        # TensorCores + DMA pipelining), fits a VMEM budget, and targets
        # ~512 rows per grid step.
        b_tile = 1
        for cand in range(1, N + 1):
            if N % cand:
                continue
            if N >= 2 and N // cand < 2:
                break
            if _vmem_estimate(plan, cand, L, out_itemsize, mxu_depth) > (40 << 20):
                break
            b_tile = cand
            if cand * L >= 512:
                break
    assert N % b_tile == 0, "batch must be divisible by b_tile"
    Lp = L + 2 * max_pad
    slab_cols = _slab_cols(plan, mxu_depth)

    # Pre-cast input to bf16 (matmuls are bf16 anyway): halves input HBM DMA.
    # TODO(synk): for true one-hot DNA inputs, pass (N, L) int indices and
    # replace the 4-deep first matmul with a row select (16x less input DMA).
    x = x.astype(jnp.bfloat16)

    kernel = _make_kernel(plan, b_tile, L, out_pad, mxu_depth)

    in_specs = [pl.BlockSpec((b_tile, L, 4), lambda b: (b, 0, 0))]
    for p in packed:
        in_specs.append(pl.BlockSpec(p.shape, _whole_array(p.ndim)))

    flops, transc, bytes_acc = _cost_numbers(plan, N, L, out_pad, out_itemsize,
                                             packed)
    est = _vmem_estimate(plan, b_tile, L, out_itemsize, mxu_depth)
    vmem_limit = int(min(64 << 20, max(32 << 20, 3 * est // 2)))

    out = pl.pallas_call(
        kernel,
        out_shape=jax.ShapeDtypeStruct((N, L_out, out_pad), out_dtype),
        grid_spec=pltpu.PrefetchScalarGridSpec(
            num_scalar_prefetch=0,
            grid=(N // b_tile,),
            in_specs=in_specs,
            out_specs=pl.BlockSpec((b_tile, L_out, out_pad),
                                   lambda b: (b, 0, 0)),
            scratch_shapes=[
                pltpu.VMEM((b_tile * Lp, F), jnp.bfloat16),         # zero-haloed activations
                pltpu.VMEM((b_tile * L, slab_cols), jnp.bfloat16),  # reusable im2col slab
            ],
        ),
        compiler_params=pltpu.CompilerParams(
            dimension_semantics=("parallel",),
            vmem_limit_bytes=vmem_limit),
        cost_estimate=pl.CostEstimate(flops=flops, transcendentals=transc,
                                      bytes_accessed=bytes_acc),
    )(x, *packed)
    return out[..., :3]          # lane-dense/padded store in-kernel; crop here


# --------------------------- parameter building -----------------------------

def _conv_w(key, cin, cout, k, mode):
    """Conv1d params in (K, Cin, Cout) layout."""
    if mode == "kaiming_out":                # kaiming_normal_(fan_out, relu), bias=0
        std = (2.0 / (cout * k)) ** 0.5
        w = std * jax.random.normal(key, (k, cin, cout), jnp.float32)
        b = jnp.zeros((cout,), jnp.float32)
    else:                                    # PyTorch default Conv1d init
        bound = 1.0 / float(cin * k) ** 0.5
        kw, kb = jax.random.split(key)
        w = jax.random.uniform(kw, (k, cin, cout), jnp.float32, -bound, bound)
        b = jax.random.uniform(kb, (cout,), jnp.float32, -bound, bound)
    return w, b


def _fold_bn(w, b, cout, eps=1e-5):
    """Fold eval-mode BatchNorm1d (fresh init) into conv weight/bias."""
    gamma = jnp.ones((cout,), jnp.float32)
    beta = jnp.zeros((cout,), jnp.float32)
    rmean = jnp.zeros((cout,), jnp.float32)
    rvar = jnp.ones((cout,), jnp.float32)
    s = gamma / jnp.sqrt(rvar + eps)
    return w * s, b * s + beta - rmean * s


def _push(lst, v):
    lst.append(v)
    return len(lst) - 1


def build_params(key, feat_dim, kernel_sizes, dilation_rates, CL):
    F = feat_dim
    n = len(kernel_sizes)
    for K in kernel_sizes:
        assert K % 2 == 1, "even kernel sizes give a shifted 'same' conv"
    has_end = [((i + 1) % 4 == 0) or (i + 1 == n) for i in range(n)]
    nkeys = 2 + 2 * n + sum(has_end) + 2
    ki = iter(jax.random.split(key, nkeys))

    biasF, w1x1, blk_flat = [], [], []
    blocks = []

    # ConvEncoder.conv1 (BasicConv 4 -> F, k=1) with folded BN
    w, b = _conv_w(next(ki), 4, F, 1, "kaiming_out")
    w, b = _fold_bn(w, b, F)
    w_first = w.reshape(4, F)
    b_conv1 = _push(biasF, b)

    # ConvEncoder.skip (Conv1d F -> F, k=1)
    w, b = _conv_w(next(ki), F, F, 1, "default")
    w_skip = _push(w1x1, w.reshape(F, F))
    b_skip = _push(biasF, b)

    # ConvBlocks
    for i, (K, d) in enumerate(zip(kernel_sizes, dilation_rates)):
        w1, b1 = _conv_w(next(ki), F, F, K, "kaiming_out")
        w1, b1 = _fold_bn(w1, b1, F)
        w2, b2 = _conv_w(next(ki), F, F, K, "kaiming_out")
        w2, b2 = _fold_bn(w2, b2, F)
        blk = dict(K=K, dil=d,
                   w1=_push(blk_flat, w1.reshape(K * F, F)),
                   w2=_push(blk_flat, w2.reshape(K * F, F)),
                   b1=_push(biasF, b1), b2=_push(biasF, b2), end=None)
        if has_end[i]:
            we, be = _conv_w(next(ki), F, F, 1, "default")
            blk['end'] = dict(w=_push(w1x1, we.reshape(F, F)),
                              b=_push(biasF, be))
        blocks.append(blk)

    # head: ConvSplice.conv1 (F -> 128) and conv2 (128 -> 3, padded to 128)
    wh1, bh1 = _conv_w(next(ki), F, 128, 1, "default")
    wh2, bh2 = _conv_w(next(ki), 128, 3, 1, "default")
    wh2p = jnp.zeros((128, 128), jnp.float32).at[:, :3].set(wh2.reshape(128, 3))
    bh2p = jnp.full((128,), -1e30, jnp.float32).at[:3].set(bh2)
    bhead = jnp.stack([bh1, bh2p], axis=0)              # (2, 128)

    # group dilated-conv weights by flat shape (K*F, F) for packing
    groups, gmap, loc = [], {}, []
    for wf in blk_flat:
        s = wf.shape
        if s not in gmap:
            gmap[s] = len(groups)
            groups.append([])
        g = gmap[s]
        loc.append((g, len(groups[g])))
        groups[g].append(wf)
    for blk in blocks:
        blk['w1'] = loc[blk['w1']]
        blk['w2'] = loc[blk['w2']]

    max_pad = max([d * (K - 1) // 2
                   for K, d in zip(kernel_sizes, dilation_rates)] + [0])
    if max_pad:
        max_pad = -(-max_pad // 16) * 16   # align halo to bf16 sublane tiles

    packed = [w_first.astype(jnp.bfloat16),
              jnp.stack(w1x1, 0).astype(jnp.bfloat16),
              jnp.stack(biasF, 0).astype(jnp.float32)]
    packed += [jnp.stack(g, 0).astype(jnp.bfloat16) for g in groups]
    packed += [wh1.reshape(F, 128).astype(jnp.bfloat16),
               wh2p.astype(jnp.bfloat16),
               bhead.astype(jnp.float32)]

    plan = dict(F=F, CL=CL, max_pad=max_pad, n_wblk_groups=len(groups),
                b_conv1=b_conv1, b_skip=b_skip, w_skip=w_skip, blocks=blocks)
    return packed, plan


# ----------------------------------- main ------------------------------------

if __name__ == "__main__":
    FEAT_DIM = 32
    KERNEL_SIZES = [3, 3, 5, 5]
    DILATION_RATES = [1, 1, 2, 2]
    CL = 16
    N, L = 2, 80

    key = jax.random.PRNGKey(0)
    k_in, k_par = jax.random.split(key)

    # one-hot DNA-like input, shape (N, L, 4)
    idx = jax.random.randint(k_in, (N, L), 0, 4)
    x = jax.nn.one_hot(idx, 4, dtype=jnp.float32)

    packed, plan = build_params(k_par, FEAT_DIM, KERNEL_SIZES, DILATION_RATES, CL)
    mxu_depth = _detect_mxu_depth()

    # auto b_tile: picker keeps grid >= 2 steps (b_tile=1 here); f32/128 output
    out = jax.block_until_ready(conv_splice_forward(x, packed, plan))
    # explicit b_tile=2 path: both samples fused into one grid step
    out_b2 = jax.block_until_ready(conv_splice_forward(x, packed, plan, b_tile=2))
    # reduced-writeback variant for mem-bound configs: bf16 output, pad 8
    out_nrw = jax.block_until_ready(
        conv_splice_forward(x, packed, plan, out_pad=8, out_dtype=jnp.bfloat16))

    # pure-JAX reference with identical math (bf16 matmuls, same tap chunking)
    G = plan['n_wblk_groups']
    pk = (packed[0], packed[1], packed[2], tuple(packed[3:3 + G]),
          packed[3 + G], packed[4 + G], packed[5 + G])
    L_out = L - CL
    lo = CL // 2
    ref_full = _forward(x.reshape(N * L, 4), pk, plan, N, L, scr=None,
                        slab=None, in_kernel=False, mxu_depth=mxu_depth)
    ref = jax.block_until_ready(
        ref_full.reshape(N, L, 128)[:, lo:lo + L_out, :3])

    assert out.shape == (N, L_out, 3), out.shape
    assert out_b2.shape == (N, L_out, 3), out_b2.shape
    assert out_nrw.shape == (N, L_out, 3), out_nrw.shape
    assert bool(jnp.all(jnp.isfinite(out)))
    assert bool(jnp.allclose(jnp.sum(out, axis=-1), 1.0, atol=1e-3))
    err = float(jnp.max(jnp.abs(out - ref)))
    err2 = float(jnp.max(jnp.abs(out_b2 - ref)))
    errn = float(jnp.max(jnp.abs(out_nrw.astype(jnp.float32) - ref)))
    assert err < 1e-2 and err2 < 1e-2, (err, err2)
    assert errn < 2e-2, errn

    print("KERNEL_OK")
</pallas_src>

<mosaic_0001>
module attributes {stable_mosaic.version = 11 : i64} {
  func.func @kernel(%arg0: i32, %arg1: memref<1x80x4xbf16, #tpu.memory_space<vmem>>, %arg2: memref<4x32xbf16, #tpu.memory_space<vmem>>, %arg3: memref<2x32x32xbf16, #tpu.memory_space<vmem>>, %arg4: memref<11x32xf32, #tpu.memory_space<vmem>>, %arg5: memref<4x96x32xbf16, #tpu.memory_space<vmem>>, %arg6: memref<4x160x32xbf16, #tpu.memory_space<vmem>>, %arg7: memref<32x128xbf16, #tpu.memory_space<vmem>>, %arg8: memref<128x128xbf16, #tpu.memory_space<vmem>>, %arg9: memref<2x128xf32, #tpu.memory_space<vmem>>, %arg10: memref<1x64x128xf32, #tpu.memory_space<vmem>>, %arg11: memref<112x32xbf16, #tpu.memory_space<vmem>>, %arg12: memref<80x160xbf16, #tpu.memory_space<vmem>>) attributes {dimension_semantics = [#tpu.dimension_semantics<parallel>], iteration_bounds = array<i64: 2>, scalar_prefetch = 0 : i64, scratch_operands = 2 : i64, tpu.core_type = #tpu.core_type<tc>, window_params = [{transform_indices = @transform_0, window_bounds = array<i64: 1, 80, 4>}, {pipeline_mode = #tpu.pipeline_mode<synchronous>, transform_indices = @transform_1, window_bounds = array<i64: 4, 32>}, {pipeline_mode = #tpu.pipeline_mode<synchronous>, transform_indices = @transform_2, window_bounds = array<i64: 2, 32, 32>}, {pipeline_mode = #tpu.pipeline_mode<synchronous>, transform_indices = @transform_3, window_bounds = array<i64: 11, 32>}, {pipeline_mode = #tpu.pipeline_mode<synchronous>, transform_indices = @transform_4, window_bounds = array<i64: 4, 96, 32>}, {pipeline_mode = #tpu.pipeline_mode<synchronous>, transform_indices = @transform_5, window_bounds = array<i64: 4, 160, 32>}, {pipeline_mode = #tpu.pipeline_mode<synchronous>, transform_indices = @transform_6, window_bounds = array<i64: 32, 128>}, {pipeline_mode = #tpu.pipeline_mode<synchronous>, transform_indices = @transform_7, window_bounds = array<i64: 128, 128>}, {pipeline_mode = #tpu.pipeline_mode<synchronous>, transform_indices = @transform_8, window_bounds = array<i64: 2, 128>}, {transform_indices = @transform_9, window_bounds = array<i64: 1, 64, 128>}]} {
    %c0_i32 = arith.constant 0 : i32
    %0 = arith.cmpi eq, %arg0, %c0_i32 : i32
    %1 = arith.extui %0 : i1 to i32
    %c0_i32_0 = arith.constant 0 : i32
    %2 = arith.cmpi ne, %1, %c0_i32_0 : i32
    scf.if %2 {
      %cst_235 = arith.constant 0.000000e+00 : bf16
      %230 = vector.broadcast %cst_235 : bf16 to vector<16x32xbf16>
      %c0_236 = arith.constant 0 : index
      %c0_237 = arith.constant 0 : index
      %231 = vector.load %arg11[%c0_236, %c0_237] : memref<112x32xbf16, #tpu.memory_space<vmem>>, vector<16x32xbf16>
      tpu.vector_store %arg11[%c0_236, %c0_237], %230 {strides = array<i32>} : memref<112x32xbf16, #tpu.memory_space<vmem>>, vector<16x32xbf16>,
      %c96_238 = arith.constant 96 : index
      %c0_239 = arith.constant 0 : index
      %232 = vector.load %arg11[%c96_238, %c0_239] : memref<112x32xbf16, #tpu.memory_space<vmem>>, vector<16x32xbf16>
      tpu.vector_store %arg11[%c96_238, %c0_239], %230 {strides = array<i32>} : memref<112x32xbf16, #tpu.memory_space<vmem>>, vector<16x32xbf16>,
    } else {
    }
    %c0 = arith.constant 0 : index
    %c0_1 = arith.constant 0 : index
    %c0_2 = arith.constant 0 : index
    %3 = vector.load %arg1[%c0, %c0_1, %c0_2] : memref<1x80x4xbf16, #tpu.memory_space<vmem>>, vector<1x80x4xbf16>
    %4 = vector.shape_cast %3 : vector<1x80x4xbf16> to vector<80x4xbf16>
    %c0_3 = arith.constant 0 : index
    %c0_4 = arith.constant 0 : index
    %5 = vector.load %arg2[%c0_3, %c0_4] : memref<4x32xbf16, #tpu.memory_space<vmem>>, vector<4x32xbf16>
    %cst = arith.constant dense<0.000000e+00> : vector<80x32xf32>
    %6 = tpu.matmul %4, %5, %cst {dimension_numbers = #tpu.dot_dimension_numbers<[1], [0], [0], [1], [0, 0, 1, 1], [], []>} : vector<80x4xbf16>, vector<4x32xbf16>, vector<80x32xf32> -> vector<80x32xf32>
    %c0_5 = arith.constant 0 : index
    %c0_6 = arith.constant 0 : index
    %7 = vector.load %arg4[%c0_5, %c0_6] : memref<11x32xf32, #tpu.memory_space<vmem>>, vector<1x32xf32>
    %8 = vector.broadcast %7 : vector<1x32xf32> to vector<80x32xf32>
    %9 = arith.addf %6, %8 : vector<80x32xf32>
    %cst_7 = arith.constant 0.000000e+00 : f32
    %10 = vector.broadcast %cst_7 : f32 to vector<80x32xf32>
    %11 = arith.subf %10, %9 : vector<80x32xf32>
    %12 = math.exp %11 : vector<80x32xf32>
    %cst_8 = arith.constant 1.000000e+00 : f32
    %13 = vector.broadcast %cst_8 : f32 to vector<80x32xf32>
    %14 = arith.addf %13, %12 : vector<80x32xf32>
    %15 = tpu.reciprocal %14 {approx = true} : vector<80x32xf32> -> vector<80x32xf32>
    %16 = arith.mulf %9, %15 : vector<80x32xf32>
    %17 = arith.truncf %16 : vector<80x32xf32> to vector<80x32xbf16>
    %c2 = arith.constant 2 : index
    %c0_9 = arith.constant 0 : index
    %18 = vector.load %arg4[%c2, %c0_9] : memref<11x32xf32, #tpu.memory_space<vmem>>, vector<1x32xf32>
    %19 = arith.truncf %16 : vector<80x32xf32> to vector<80x32xbf16>
    %c16 = arith.constant 16 : index
    %c0_10 = arith.constant 0 : index
    %20 = vector.load %arg11[%c16, %c0_10] : memref<112x32xbf16, #tpu.memory_space<vmem>>, vector<80x32xbf16>
    tpu.vector_store %arg11[%c16, %c0_10], %19 {strides = array<i32>} : memref<112x32xbf16, #tpu.memory_space<vmem>>, vector<80x32xbf16>,
    %c0_11 = arith.constant 0 : index
    %c0_12 = arith.constant 0 : index
    %c0_13 = arith.constant 0 : index
    %21 = vector.load %arg5[%c0_11, %c0_12, %c0_13] : memref<4x96x32xbf16, #tpu.memory_space<vmem>>, vector<1x96x32xbf16>
    %22 = vector.shape_cast %21 : vector<1x96x32xbf16> to vector<96x32xbf16>
    %c15 = arith.constant 15 : index
    %c0_14 = arith.constant 0 : index
    %23 = vector.load %arg11[%c15, %c0_14] : memref<112x32xbf16, #tpu.memory_space<vmem>>, vector<80x32xbf16>
    %c0_15 = arith.constant 0 : index
    %c0_16 = arith.constant 0 : index
    %24 = vector.load %arg12[%c0_15, %c0_16] : memref<80x160xbf16, #tpu.memory_space<vmem>>, vector<80x32xbf16>
    tpu.vector_store %arg12[%c0_15, %c0_16], %23 {strides = array<i32>} : memref<80x160xbf16, #tpu.memory_space<vmem>>, vector<80x32xbf16>,
    %c16_17 = arith.constant 16 : index
    %c0_18 = arith.constant 0 : index
    %25 = vector.load %arg11[%c16_17, %c0_18] : memref<112x32xbf16, #tpu.memory_space<vmem>>, vector<80x32xbf16>
    %c0_19 = arith.constant 0 : index
    %c32 = arith.constant 32 : index
    %26 = vector.load %arg12[%c0_19, %c32] : memref<80x160xbf16, #tpu.memory_space<vmem>>, vector<80x32xbf16>
    tpu.vector_store %arg12[%c0_19, %c32], %25 {strides = array<i32>} : memref<80x160xbf16, #tpu.memory_space<vmem>>, vector<80x32xbf16>,
    %c17 = arith.constant 17 : index
    %c0_20 = arith.constant 0 : index
    %27 = vector.load %arg11[%c17, %c0_20] : memref<112x32xbf16, #tpu.memory_space<vmem>>, vector<80x32xbf16>
    %c0_21 = arith.constant 0 : index
    %c64 = arith.constant 64 : index
    %28 = vector.load %arg12[%c0_21, %c64] : memref<80x160xbf16, #tpu.memory_space<vmem>>, vector<80x32xbf16>
    tpu.vector_store %arg12[%c0_21, %c64], %27 {strides = array<i32>} : memref<80x160xbf16, #tpu.memory_space<vmem>>, vector<80x32xbf16>,
    %c0_22 = arith.constant 0 : index
    %c0_23 = arith.constant 0 : index
    %29 = vector.load %arg12[%c0_22, %c0_23] : memref<80x160xbf16, #tpu.memory_space<vmem>>, vector<80x96xbf16>
    %cst_24 = arith.constant dense<0.000000e+00> : vector<80x32xf32>
    %30 = tpu.matmul %29, %22, %cst_24 {dimension_numbers = #tpu.dot_dimension_numbers<[1], [0], [0], [1], [0, 0, 1, 1], [], []>} : vector<80x96xbf16>, vector<96x32xbf16>, vector<80x32xf32> -> vector<80x32xf32>
    %31 = vector.broadcast %18 : vector<1x32xf32> to vector<80x32xf32>
    %32 = arith.addf %30, %31 : vector<80x32xf32>
    %cst_25 = arith.constant 0.000000e+00 : f32
    %33 = vector.broadcast %cst_25 : f32 to vector<80x32xf32>
    %34 = arith.subf %33, %32 : vector<80x32xf32>
    %35 = math.exp %34 : vector<80x32xf32>
    %cst_26 = arith.constant 1.000000e+00 : f32
    %36 = vector.broadcast %cst_26 : f32 to vector<80x32xf32>
    %37 = arith.addf %36, %35 : vector<80x32xf32>
    %38 = tpu.reciprocal %37 {approx = true} : vector<80x32xf32> -> vector<80x32xf32>
    %39 = arith.mulf %32, %38 : vector<80x32xf32>
    %c3 = arith.constant 3 : index
    %c0_27 = arith.constant 0 : index
    %40 = vector.load %arg4[%c3, %c0_27] : memref<11x32xf32, #tpu.memory_space<vmem>>, vector<1x32xf32>
    %41 = arith.truncf %39 : vector<80x32xf32> to vector<80x32xbf16>
    %c16_28 = arith.constant 16 : index
    %c0_29 = arith.constant 0 : index
    %42 = vector.load %arg11[%c16_28, %c0_29] : memref<112x32xbf16, #tpu.memory_space<vmem>>, vector<80x32xbf16>
    tpu.vector_store %arg11[%c16_28, %c0_29], %41 {strides = array<i32>} : memref<112x32xbf16, #tpu.memory_space<vmem>>, vector<80x32xbf16>,
    %c1 = arith.constant 1 : index
    %c0_30 = arith.constant 0 : index
    %c0_31 = arith.constant 0 : index
    %43 = vector.load %arg5[%c1, %c0_30, %c0_31] : memref<4x96x32xbf16, #tpu.memory_space<vmem>>, vector<1x96x32xbf16>
    %44 = vector.shape_cast %43 : vector<1x96x32xbf16> to vector<96x32xbf16>
    %c15_32 = arith.constant 15 : index
    %c0_33 = arith.constant 0 : index
    %45 = vector.load %arg11[%c15_32, %c0_33] : memref<112x32xbf16, #tpu.memory_space<vmem>>, vector<80x32xbf16>
    %c0_34 = arith.constant 0 : index
    %c0_35 = arith.constant 0 : index
    %46 = vector.load %arg12[%c0_34, %c0_35] : memref<80x160xbf16, #tpu.memory_space<vmem>>, vector<80x32xbf16>
    tpu.vector_store %arg12[%c0_34, %c0_35], %45 {strides = array<i32>} : memref<80x160xbf16, #tpu.memory_space<vmem>>, vector<80x32xbf16>,
    %c16_36 = arith.constant 16 : index
    %c0_37 = arith.constant 0 : index
    %47 = vector.load %arg11[%c16_36, %c0_37] : memref<112x32xbf16, #tpu.memory_space<vmem>>, vector<80x32xbf16>
    %c0_38 = arith.constant 0 : index
    %c32_39 = arith.constant 32 : index
    %48 = vector.load %arg12[%c0_38, %c32_39] : memref<80x160xbf16, #tpu.memory_space<vmem>>, vector<80x32xbf16>
    tpu.vector_store %arg12[%c0_38, %c32_39], %47 {strides = array<i32>} : memref<80x160xbf16, #tpu.memory_space<vmem>>, vector<80x32xbf16>,
    %c17_40 = arith.constant 17 : index
    %c0_41 = arith.constant 0 : index
    %49 = vector.load %arg11[%c17_40, %c0_41] : memref<112x32xbf16, #tpu.memory_space<vmem>>, vector<80x32xbf16>
    %c0_42 = arith.constant 0 : index
    %c64_43 = arith.constant 64 : index
    %50 = vector.load %arg12[%c0_42, %c64_43] : memref<80x160xbf16, #tpu.memory_space<vmem>>, vector<80x32xbf16>
    tpu.vector_store %arg12[%c0_42, %c64_43], %49 {strides = array<i32>} : memref<80x160xbf16, #tpu.memory_space<vmem>>, vector<80x32xbf16>,
    %c0_44 = arith.constant 0 : index
    %c0_45 = arith.constant 0 : index
    %51 = vector.load %arg12[%c0_44, %c0_45] : memref<80x160xbf16, #tpu.memory_space<vmem>>, vector<80x96xbf16>
    %cst_46 = arith.constant dense<0.000000e+00> : vector<80x32xf32>
    %52 = tpu.matmul %51, %44, %cst_46 {dimension_numbers = #tpu.dot_dimension_numbers<[1], [0], [0], [1], [0, 0, 1, 1], [], []>} : vector<80x96xbf16>, vector<96x32xbf16>, vector<80x32xf32> -> vector<80x32xf32>
    %53 = vector.broadcast %40 : vector<1x32xf32> to vector<80x32xf32>
    %54 = arith.addf %52, %53 : vector<80x32xf32>
    %55 = arith.addf %54, %16 : vector<80x32xf32>
    %c4 = arith.constant 4 : index
    %c0_47 = arith.constant 0 : index
    %56 = vector.load %arg4[%c4, %c0_47] : memref<11x32xf32, #tpu.memory_space<vmem>>, vector<1x32xf32>
    %57 = arith.truncf %55 : vector<80x32xf32> to vector<80x32xbf16>
    %c16_48 = arith.constant 16 : index
    %c0_49 = arith.constant 0 : index
    %58 = vector.load %arg11[%c16_48, %c0_49] : memref<112x32xbf16, #tpu.memory_space<vmem>>, vector<80x32xbf16>
    tpu.vector_store %arg11[%c16_48, %c0_49], %57 {strides = array<i32>} : memref<112x32xbf16, #tpu.memory_space<vmem>>, vector<80x32xbf16>,
    %c2_50 = arith.constant 2 : index
    %c0_51 = arith.constant 0 : index
    %c0_52 = arith.constant 0 : index
    %59 = vector.load %arg5[%c2_50, %c0_51, %c0_52] : memref<4x96x32xbf16, #tpu.memory_space<vmem>>, vector<1x96x32xbf16>
    %60 = vector.shape_cast %59 : vector<1x96x32xbf16> to vector<96x32xbf16>
    %c15_53 = arith.constant 15 : index
    %c0_54 = arith.constant 0 : index
    %61 = vector.load %arg11[%c15_53, %c0_54] : memref<112x32xbf16, #tpu.memory_space<vmem>>, vector<80x32xbf16>
    %c0_55 = arith.constant 0 : index
    %c0_56 = arith.constant 0 : index
    %62 = vector.load %arg12[%c0_55, %c0_56] : memref<80x160xbf16, #tpu.memory_space<vmem>>, vector<80x32xbf16>
    tpu.vector_store %arg12[%c0_55, %c0_56], %61 {strides = array<i32>} : memref<80x160xbf16, #tpu.memory_space<vmem>>, vector<80x32xbf16>,
    %c16_57 = arith.constant 16 : index
    %c0_58 = arith.constant 0 : index
    %63 = vector.load %arg11[%c16_57, %c0_58] : memref<112x32xbf16, #tpu.memory_space<vmem>>, vector<80x32xbf16>
    %c0_59 = arith.constant 0 : index
    %c32_60 = arith.constant 32 : index
    %64 = vector.load %arg12[%c0_59, %c32_60] : memref<80x160xbf16, #tpu.memory_space<vmem>>, vector<80x32xbf16>
    tpu.vector_store %arg12[%c0_59, %c32_60], %63 {strides = array<i32>} : memref<80x160xbf16, #tpu.memory_space<vmem>>, vector<80x32xbf16>,
    %c17_61 = arith.constant 17 : index
    %c0_62 = arith.constant 0 : index
    %65 = vector.load %arg11[%c17_61, %c0_62] : memref<112x32xbf16, #tpu.memory_space<vmem>>, vector<80x32xbf16>
    %c0_63 = arith.constant 0 : index
    %c64_64 = arith.constant 64 : index
    %66 = vector.load %arg12[%c0_63, %c64_64] : memref<80x160xbf16, #tpu.memory_space<vmem>>, vector<80x32xbf16>
    tpu.vector_store %arg12[%c0_63, %c64_64], %65 {strides = array<i32>} : memref<80x160xbf16, #tpu.memory_space<vmem>>, vector<80x32xbf16>,
    %c0_65 = arith.constant 0 : index
    %c0_66 = arith.constant 0 : index
    %67 = vector.load %arg12[%c0_65, %c0_66] : memref<80x160xbf16, #tpu.memory_space<vmem>>, vector<80x96xbf16>
    %cst_67 = arith.constant dense<0.000000e+00> : vector<80x32xf32>
    %68 = tpu.matmul %67, %60, %cst_67 {dimension_numbers = #tpu.dot_dimension_numbers<[1], [0], [0], [1], [0, 0, 1, 1], [], []>} : vector<80x96xbf16>, vector<96x32xbf16>, vector<80x32xf32> -> vector<80x32xf32>
    %69 = vector.broadcast %56 : vector<1x32xf32> to vector<80x32xf32>
    %70 = arith.addf %68, %69 : vector<80x32xf32>
    %cst_68 = arith.constant 0.000000e+00 : f32
    %71 = vector.broadcast %cst_68 : f32 to vector<80x32xf32>
    %72 = arith.subf %71, %70 : vector<80x32xf32>
    %73 = math.exp %72 : vector<80x32xf32>
    %cst_69 = arith.constant 1.000000e+00 : f32
    %74 = vector.broadcast %cst_69 : f32 to vector<80x32xf32>
    %75 = arith.addf %74, %73 : vector<80x32xf32>
    %76 = tpu.reciprocal %75 {approx = true} : vector<80x32xf32> -> vector<80x32xf32>
    %77 = arith.mulf %70, %76 : vector<80x32xf32>
    %c5 = arith.constant 5 : index
    %c0_70 = arith.constant 0 : index
    %78 = vector.load %arg4[%c5, %c0_70] : memref<11x32xf32, #tpu.memory_space<vmem>>, vector<1x32xf32>
    %79 = arith.truncf %77 : vector<80x32xf32> to vector<80x32xbf16>
    %c16_71 = arith.constant 16 : index
    %c0_72 = arith.constant 0 : index
    %80 = vector.load %arg11[%c16_71, %c0_72] : memref<112x32xbf16, #tpu.memory_space<vmem>>, vector<80x32xbf16>
    tpu.vector_store %arg11[%c16_71, %c0_72], %79 {strides = array<i32>} : memref<112x32xbf16, #tpu.memory_space<vmem>>, vector<80x32xbf16>,
    %c3_73 = arith.constant 3 : index
    %c0_74 = arith.constant 0 : index
    %c0_75 = arith.constant 0 : index
    %81 = vector.load %arg5[%c3_73, %c0_74, %c0_75] : memref<4x96x32xbf16, #tpu.memory_space<vmem>>, vector<1x96x32xbf16>
    %82 = vector.shape_cast %81 : vector<1x96x32xbf16> to vector<96x32xbf16>
    %c15_76 = arith.constant 15 : index
    %c0_77 = arith.constant 0 : index
    %83 = vector.load %arg11[%c15_76, %c0_77] : memref<112x32xbf16, #tpu.memory_space<vmem>>, vector<80x32xbf16>
    %c0_78 = arith.constant 0 : index
    %c0_79 = arith.constant 0 : index
    %84 = vector.load %arg12[%c0_78, %c0_79] : memref<80x160xbf16, #tpu.memory_space<vmem>>, vector<80x32xbf16>
    tpu.vector_store %arg12[%c0_78, %c0_79], %83 {strides = array<i32>} : memref<80x160xbf16, #tpu.memory_space<vmem>>, vector<80x32xbf16>,
    %c16_80 = arith.constant 16 : index
    %c0_81 = arith.constant 0 : index
    %85 = vector.load %arg11[%c16_80, %c0_81] : memref<112x32xbf16, #tpu.memory_space<vmem>>, vector<80x32xbf16>
    %c0_82 = arith.constant 0 : index
    %c32_83 = arith.constant 32 : index
    %86 = vector.load %arg12[%c0_82, %c32_83] : memref<80x160xbf16, #tpu.memory_space<vmem>>, vector<80x32xbf16>
    tpu.vector_store %arg12[%c0_82, %c32_83], %85 {strides = array<i32>} : memref<80x160xbf16, #tpu.memory_space<vmem>>, vector<80x32xbf16>,
    %c17_84 = arith.constant 17 : index
    %c0_85 = arith.constant 0 : index
    %87 = vector.load %arg11[%c17_84, %c0_85] : memref<112x32xbf16, #tpu.memory_space<vmem>>, vector<80x32xbf16>
    %c0_86 = arith.constant 0 : index
    %c64_87 = arith.constant 64 : index
    %88 = vector.load %arg12[%c0_86, %c64_87] : memref<80x160xbf16, #tpu.memory_space<vmem>>, vector<80x32xbf16>
    tpu.vector_store %arg12[%c0_86, %c64_87], %87 {strides = array<i32>} : memref<80x160xbf16, #tpu.memory_space<vmem>>, vector<80x32xbf16>,
    %c0_88 = arith.constant 0 : index
    %c0_89 = arith.constant 0 : index
    %89 = vector.load %arg12[%c0_88, %c0_89] : memref<80x160xbf16, #tpu.memory_space<vmem>>, vector<80x96xbf16>
    %cst_90 = arith.constant dense<0.000000e+00> : vector<80x32xf32>
    %90 = tpu.matmul %89, %82, %cst_90 {dimension_numbers = #tpu.dot_dimension_numbers<[1], [0], [0], [1], [0, 0, 1, 1], [], []>} : vector<80x96xbf16>, vector<96x32xbf16>, vector<80x32xf32> -> vector<80x32xf32>
    %91 = vector.broadcast %78 : vector<1x32xf32> to vector<80x32xf32>
    %92 = arith.addf %90, %91 : vector<80x32xf32>
    %93 = arith.addf %92, %55 : vector<80x32xf32>
    %c6 = arith.constant 6 : index
    %c0_91 = arith.constant 0 : index
    %94 = vector.load %arg4[%c6, %c0_91] : memref<11x32xf32, #tpu.memory_space<vmem>>, vector<1x32xf32>
    %95 = arith.truncf %93 : vector<80x32xf32> to vector<80x32xbf16>
    %c16_92 = arith.constant 16 : index
    %c0_93 = arith.constant 0 : index
    %96 = vector.load %arg11[%c16_92, %c0_93] : memref<112x32xbf16, #tpu.memory_space<vmem>>, vector<80x32xbf16>
    tpu.vector_store %arg11[%c16_92, %c0_93], %95 {strides = array<i32>} : memref<112x32xbf16, #tpu.memory_space<vmem>>, vector<80x32xbf16>,
    %c0_94 = arith.constant 0 : index
    %c0_95 = arith.constant 0 : index
    %c0_96 = arith.constant 0 : index
    %97 = vector.load %arg6[%c0_94, %c0_95, %c0_96] : memref<4x160x32xbf16, #tpu.memory_space<vmem>>, vector<1x160x32xbf16>
    %98 = vector.shape_cast %97 : vector<1x160x32xbf16> to vector<160x32xbf16>
    %c12 = arith.constant 12 : index
    %c0_97 = arith.constant 0 : index
    %99 = vector.load %arg11[%c12, %c0_97] : memref<112x32xbf16, #tpu.memory_space<vmem>>, vector<80x32xbf16>
    %c0_98 = arith.constant 0 : index
    %c0_99 = arith.constant 0 : index
    %100 = vector.load %arg12[%c0_98, %c0_99] : memref<80x160xbf16, #tpu.memory_space<vmem>>, vector<80x32xbf16>
    tpu.vector_store %arg12[%c0_98, %c0_99], %99 {strides = array<i32>} : memref<80x160xbf16, #tpu.memory_space<vmem>>, vector<80x32xbf16>,
    %c14 = arith.constant 14 : index
    %c0_100 = arith.constant 0 : index
    %101 = vector.load %arg11[%c14, %c0_100] : memref<112x32xbf16, #tpu.memory_space<vmem>>, vector<80x32xbf16>
    %c0_101 = arith.constant 0 : index
    %c32_102 = arith.constant 32 : index
    %102 = vector.load %arg12[%c0_101, %c32_102] : memref<80x160xbf16, #tpu.memory_space<vmem>>, vector<80x32xbf16>
    tpu.vector_store %arg12[%c0_101, %c32_102], %101 {strides = array<i32>} : memref<80x160xbf16, #tpu.memory_space<vmem>>, vector<80x32xbf16>,
    %c16_103 = arith.constant 16 : index
    %c0_104 = arith.constant 0 : index
    %103 = vector.load %arg11[%c16_103, %c0_104] : memref<112x32xbf16, #tpu.memory_space<vmem>>, vector<80x32xbf16>
    %c0_105 = arith.constant 0 : index
    %c64_106 = arith.constant 64 : index
    %104 = vector.load %arg12[%c0_105, %c64_106] : memref<80x160xbf16, #tpu.memory_space<vmem>>, vector<80x32xbf16>
    tpu.vector_store %arg12[%c0_105, %c64_106], %103 {strides = array<i32>} : memref<80x160xbf16, #tpu.memory_space<vmem>>, vector<80x32xbf16>,
    %c18 = arith.constant 18 : index
    %c0_107 = arith.constant 0 : index
    %105 = vector.load %arg11[%c18, %c0_107] : memref<112x32xbf16, #tpu.memory_space<vmem>>, vector<80x32xbf16>
    %c0_108 = arith.constant 0 : index
    %c96 = arith.constant 96 : index
    %106 = vector.load %arg12[%c0_108, %c96] : memref<80x160xbf16, #tpu.memory_space<vmem>>, vector<80x32xbf16>
    tpu.vector_store %arg12[%c0_108, %c96], %105 {strides = array<i32>} : memref<80x160xbf16, #tpu.memory_space<vmem>>, vector<80x32xbf16>,
    %c20 = arith.constant 20 : index
    %c0_109 = arith.constant 0 : index
    %107 = vector.load %arg11[%c20, %c0_109] : memref<112x32xbf16, #tpu.memory_space<vmem>>, vector<80x32xbf16>
    %c0_110 = arith.constant 0 : index
    %c128 = arith.constant 128 : index
    %108 = vector.load %arg12[%c0_110, %c128] : memref<80x160xbf16, #tpu.memory_space<vmem>>, vector<80x32xbf16>
    tpu.vector_store %arg12[%c0_110, %c128], %107 {strides = array<i32>} : memref<80x160xbf16, #tpu.memory_space<vmem>>, vector<80x32xbf16>,
    %c0_111 = arith.constant 0 : index
    %c0_112 = arith.constant 0 : index
    %109 = vector.load %arg12[%c0_111, %c0_112] : memref<80x160xbf16, #tpu.memory_space<vmem>>, vector<80x160xbf16>
    %cst_113 = arith.constant dense<0.000000e+00> : vector<80x32xf32>
    %110 = tpu.matmul %109, %98, %cst_113 {dimension_numbers = #tpu.dot_dimension_numbers<[1], [0], [0], [1], [0, 0, 1, 1], [], []>} : vector<80x160xbf16>, vector<160x32xbf16>, vector<80x32xf32> -> vector<80x32xf32>
    %111 = vector.broadcast %94 : vector<1x32xf32> to vector<80x32xf32>
    %112 = arith.addf %110, %111 : vector<80x32xf32>
    %cst_114 = arith.constant 0.000000e+00 : f32
    %113 = vector.broadcast %cst_114 : f32 to vector<80x32xf32>
    %114 = arith.subf %113, %112 : vector<80x32xf32>
    %115 = math.exp %114 : vector<80x32xf32>
    %cst_115 = arith.constant 1.000000e+00 : f32
    %116 = vector.broadcast %cst_115 : f32 to vector<80x32xf32>
    %117 = arith.addf %116, %115 : vector<80x32xf32>
    %118 = tpu.reciprocal %117 {approx = true} : vector<80x32xf32> -> vector<80x32xf32>
    %119 = arith.mulf %112, %118 : vector<80x32xf32>
    %c7 = arith.constant 7 : index
    %c0_116 = arith.constant 0 : index
    %120 = vector.load %arg4[%c7, %c0_116] : memref<11x32xf32, #tpu.memory_space<vmem>>, vector<1x32xf32>
    %121 = arith.truncf %119 : vector<80x32xf32> to vector<80x32xbf16>
    %c16_117 = arith.constant 16 : index
    %c0_118 = arith.constant 0 : index
    %122 = vector.load %arg11[%c16_117, %c0_118] : memref<112x32xbf16, #tpu.memory_space<vmem>>, vector<80x32xbf16>
    tpu.vector_store %arg11[%c16_117, %c0_118], %121 {strides = array<i32>} : memref<112x32xbf16, #tpu.memory_space<vmem>>, vector<80x32xbf16>,
    %c1_119 = arith.constant 1 : index
    %c0_120 = arith.constant 0 : index
    %c0_121 = arith.constant 0 : index
    %123 = vector.load %arg6[%c1_119, %c0_120, %c0_121] : memref<4x160x32xbf16, #tpu.memory_space<vmem>>, vector<1x160x32xbf16>
    %124 = vector.shape_cast %123 : vector<1x160x32xbf16> to vector<160x32xbf16>
    %c12_122 = arith.constant 12 : index
    %c0_123 = arith.constant 0 : index
    %125 = vector.load %arg11[%c12_122, %c0_123] : memref<112x32xbf16, #tpu.memory_space<vmem>>, vector<80x32xbf16>
    %c0_124 = arith.constant 0 : index
    %c0_125 = arith.constant 0 : index
    %126 = vector.load %arg12[%c0_124, %c0_125] : memref<80x160xbf16, #tpu.memory_space<vmem>>, vector<80x32xbf16>
    tpu.vector_store %arg12[%c0_124, %c0_125], %125 {strides = array<i32>} : memref<80x160xbf16, #tpu.memory_space<vmem>>, vector<80x32xbf16>,
    %c14_126 = arith.constant 14 : index
    %c0_127 = arith.constant 0 : index
    %127 = vector.load %arg11[%c14_126, %c0_127] : memref<112x32xbf16, #tpu.memory_space<vmem>>, vector<80x32xbf16>
    %c0_128 = arith.constant 0 : index
    %c32_129 = arith.constant 32 : index
    %128 = vector.load %arg12[%c0_128, %c32_129] : memref<80x160xbf16, #tpu.memory_space<vmem>>, vector<80x32xbf16>
    tpu.vector_store %arg12[%c0_128, %c32_129], %127 {strides = array<i32>} : memref<80x160xbf16, #tpu.memory_space<vmem>>, vector<80x32xbf16>,
    %c16_130 = arith.constant 16 : index
    %c0_131 = arith.constant 0 : index
    %129 = vector.load %arg11[%c16_130, %c0_131] : memref<112x32xbf16, #tpu.memory_space<vmem>>, vector<80x32xbf16>
    %c0_132 = arith.constant 0 : index
    %c64_133 = arith.constant 64 : index
    %130 = vector.load %arg12[%c0_132, %c64_133] : memref<80x160xbf16, #tpu.memory_space<vmem>>, vector<80x32xbf16>
    tpu.vector_store %arg12[%c0_132, %c64_133], %129 {strides = array<i32>} : memref<80x160xbf16, #tpu.memory_space<vmem>>, vector<80x32xbf16>,
    %c18_134 = arith.constant 18 : index
    %c0_135 = arith.constant 0 : index
    %131 = vector.load %arg11[%c18_134, %c0_135] : memref<112x32xbf16, #tpu.memory_space<vmem>>, vector<80x32xbf16>
    %c0_136 = arith.constant 0 : index
    %c96_137 = arith.constant 96 : index
    %132 = vector.load %arg12[%c0_136, %c96_137] : memref<80x160xbf16, #tpu.memory_space<vmem>>, vector<80x32xbf16>
    tpu.vector_store %arg12[%c0_136, %c96_137], %131 {strides = array<i32>} : memref<80x160xbf16, #tpu.memory_space<vmem>>, vector<80x32xbf16>,
    %c20_138 = arith.constant 20 : index
    %c0_139 = arith.constant 0 : index
    %133 = vector.load %arg11[%c20_138, %c0_139] : memref<112x32xbf16, #tpu.memory_space<vmem>>, vector<80x32xbf16>
    %c0_140 = arith.constant 0 : index
    %c128_141 = arith.constant 128 : index
    %134 = vector.load %arg12[%c0_140, %c128_141] : memref<80x160xbf16, #tpu.memory_space<vmem>>, vector<80x32xbf16>
    tpu.vector_store %arg12[%c0_140, %c128_141], %133 {strides = array<i32>} : memref<80x160xbf16, #tpu.memory_space<vmem>>, vector<80x32xbf16>,
    %c0_142 = arith.constant 0 : index
    %c0_143 = arith.constant 0 : index
    %135 = vector.load %arg12[%c0_142, %c0_143] : memref<80x160xbf16, #tpu.memory_space<vmem>>, vector<80x160xbf16>
    %cst_144 = arith.constant dense<0.000000e+00> : vector<80x32xf32>
    %136 = tpu.matmul %135, %124, %cst_144 {dimension_numbers = #tpu.dot_dimension_numbers<[1], [0], [0], [1], [0, 0, 1, 1], [], []>} : vector<80x160xbf16>, vector<160x32xbf16>, vector<80x32xf32> -> vector<80x32xf32>
    %137 = vector.broadcast %120 : vector<1x32xf32> to vector<80x32xf32>
    %138 = arith.addf %136, %137 : vector<80x32xf32>
    %139 = arith.addf %138, %93 : vector<80x32xf32>
    %c8 = arith.constant 8 : index
    %c0_145 = arith.constant 0 : index
    %140 = vector.load %arg4[%c8, %c0_145] : memref<11x32xf32, #tpu.memory_space<vmem>>, vector<1x32xf32>
    %141 = arith.truncf %139 : vector<80x32xf32> to vector<80x32xbf16>
    %c16_146 = arith.constant 16 : index
    %c0_147 = arith.constant 0 : index
    %142 = vector.load %arg11[%c16_146, %c0_147] : memref<112x32xbf16, #tpu.memory_space<vmem>>, vector<80x32xbf16>
    tpu.vector_store %arg11[%c16_146, %c0_147], %141 {strides = array<i32>} : memref<112x32xbf16, #tpu.memory_space<vmem>>, vector<80x32xbf16>,
    %c2_148 = arith.constant 2 : index
    %c0_149 = arith.constant 0 : index
    %c0_150 = arith.constant 0 : index
    %143 = vector.load %arg6[%c2_148, %c0_149, %c0_150] : memref<4x160x32xbf16, #tpu.memory_space<vmem>>, vector<1x160x32xbf16>
    %144 = vector.shape_cast %143 : vector<1x160x32xbf16> to vector<160x32xbf16>
    %c12_151 = arith.constant 12 : index
    %c0_152 = arith.constant 0 : index
    %145 = vector.load %arg11[%c12_151, %c0_152] : memref<112x32xbf16, #tpu.memory_space<vmem>>, vector<80x32xbf16>
    %c0_153 = arith.constant 0 : index
    %c0_154 = arith.constant 0 : index
    %146 = vector.load %arg12[%c0_153, %c0_154] : memref<80x160xbf16, #tpu.memory_space<vmem>>, vector<80x32xbf16>
    tpu.vector_store %arg12[%c0_153, %c0_154], %145 {strides = array<i32>} : memref<80x160xbf16, #tpu.memory_space<vmem>>, vector<80x32xbf16>,
    %c14_155 = arith.constant 14 : index
    %c0_156 = arith.constant 0 : index
    %147 = vector.load %arg11[%c14_155, %c0_156] : memref<112x32xbf16, #tpu.memory_space<vmem>>, vector<80x32xbf16>
    %c0_157 = arith.constant 0 : index
    %c32_158 = arith.constant 32 : index
    %148 = vector.load %arg12[%c0_157, %c32_158] : memref<80x160xbf16, #tpu.memory_space<vmem>>, vector<80x32xbf16>
    tpu.vector_store %arg12[%c0_157, %c32_158], %147 {strides = array<i32>} : memref<80x160xbf16, #tpu.memory_space<vmem>>, vector<80x32xbf16>,
    %c16_159 = arith.constant 16 : index
    %c0_160 = arith.constant 0 : index
    %149 = vector.load %arg11[%c16_159, %c0_160] : memref<112x32xbf16, #tpu.memory_space<vmem>>, vector<80x32xbf16>
    %c0_161 = arith.constant 0 : index
    %c64_162 = arith.constant 64 : index
    %150 = vector.load %arg12[%c0_161, %c64_162] : memref<80x160xbf16, #tpu.memory_space<vmem>>, vector<80x32xbf16>
    tpu.vector_store %arg12[%c0_161, %c64_162], %149 {strides = array<i32>} : memref<80x160xbf16, #tpu.memory_space<vmem>>, vector<80x32xbf16>,
    %c18_163 = arith.constant 18 : index
    %c0_164 = arith.constant 0 : index
    %151 = vector.load %arg11[%c18_163, %c0_164] : memref<112x32xbf16, #tpu.memory_space<vmem>>, vector<80x32xbf16>
    %c0_165 = arith.constant 0 : index
    %c96_166 = arith.constant 96 : index
    %152 = vector.load %arg12[%c0_165, %c96_166] : memref<80x160xbf16, #tpu.memory_space<vmem>>, vector<80x32xbf16>
    tpu.vector_store %arg12[%c0_165, %c96_166], %151 {strides = array<i32>} : memref<80x160xbf16, #tpu.memory_space<vmem>>, vector<80x32xbf16>,
    %c20_167 = arith.constant 20 : index
    %c0_168 = arith.constant 0 : index
    %153 = vector.load %arg11[%c20_167, %c0_168] : memref<112x32xbf16, #tpu.memory_space<vmem>>, vector<80x32xbf16>
    %c0_169 = arith.constant 0 : index
    %c128_170 = arith.constant 128 : index
    %154 = vector.load %arg12[%c0_169, %c128_170] : memref<80x160xbf16, #tpu.memory_space<vmem>>, vector<80x32xbf16>
    tpu.vector_store %arg12[%c0_169, %c128_170], %153 {strides = array<i32>} : memref<80x160xbf16, #tpu.memory_space<vmem>>, vector<80x32xbf16>,
    %c0_171 = arith.constant 0 : index
    %c0_172 = arith.constant 0 : index
    %155 = vector.load %arg12[%c0_171, %c0_172] : memref<80x160xbf16, #tpu.memory_space<vmem>>, vector<80x160xbf16>
    %cst_173 = arith.constant dense<0.000000e+00> : vector<80x32xf32>
    %156 = tpu.matmul %155, %144, %cst_173 {dimension_numbers = #tpu.dot_dimension_numbers<[1], [0], [0], [1], [0, 0, 1, 1], [], []>} : vector<80x160xbf16>, vector<160x32xbf16>, vector<80x32xf32> -> vector<80x32xf32>
    %157 = vector.broadcast %140 : vector<1x32xf32> to vector<80x32xf32>
    %158 = arith.addf %156, %157 : vector<80x32xf32>
    %cst_174 = arith.constant 0.000000e+00 : f32
    %159 = vector.broadcast %cst_174 : f32 to vector<80x32xf32>
    %160 = arith.subf %159, %158 : vector<80x32xf32>
    %161 = math.exp %160 : vector<80x32xf32>
    %cst_175 = arith.constant 1.000000e+00 : f32
    %162 = vector.broadcast %cst_175 : f32 to vector<80x32xf32>
    %163 = arith.addf %162, %161 : vector<80x32xf32>
    %164 = tpu.reciprocal %163 {approx = true} : vector<80x32xf32> -> vector<80x32xf32>
    %165 = arith.mulf %158, %164 : vector<80x32xf32>
    %c9 = arith.constant 9 : index
    %c0_176 = arith.constant 0 : index
    %166 = vector.load %arg4[%c9, %c0_176] : memref<11x32xf32, #tpu.memory_space<vmem>>, vector<1x32xf32>
    %167 = arith.truncf %165 : vector<80x32xf32> to vector<80x32xbf16>
    %c16_177 = arith.constant 16 : index
    %c0_178 = arith.constant 0 : index
    %168 = vector.load %arg11[%c16_177, %c0_178] : memref<112x32xbf16, #tpu.memory_space<vmem>>, vector<80x32xbf16>
    tpu.vector_store %arg11[%c16_177, %c0_178], %167 {strides = array<i32>} : memref<112x32xbf16, #tpu.memory_space<vmem>>, vector<80x32xbf16>,
    %c3_179 = arith.constant 3 : index
    %c0_180 = arith.constant 0 : index
    %c0_181 = arith.constant 0 : index
    %169 = vector.load %arg6[%c3_179, %c0_180, %c0_181] : memref<4x160x32xbf16, #tpu.memory_space<vmem>>, vector<1x160x32xbf16>
    %170 = vector.shape_cast %169 : vector<1x160x32xbf16> to vector<160x32xbf16>
    %c12_182 = arith.constant 12 : index
    %c0_183 = arith.constant 0 : index
    %171 = vector.load %arg11[%c12_182, %c0_183] : memref<112x32xbf16, #tpu.memory_space<vmem>>, vector<80x32xbf16>
    %c0_184 = arith.constant 0 : index
    %c0_185 = arith.constant 0 : index
    %172 = vector.load %arg12[%c0_184, %c0_185] : memref<80x160xbf16, #tpu.memory_space<vmem>>, vector<80x32xbf16>
    tpu.vector_store %arg12[%c0_184, %c0_185], %171 {strides = array<i32>} : memref<80x160xbf16, #tpu.memory_space<vmem>>, vector<80x32xbf16>,
    %c14_186 = arith.constant 14 : index
    %c0_187 = arith.constant 0 : index
    %173 = vector.load %arg11[%c14_186, %c0_187] : memref<112x32xbf16, #tpu.memory_space<vmem>>, vector<80x32xbf16>
    %c0_188 = arith.constant 0 : index
    %c32_189 = arith.constant 32 : index
    %174 = vector.load %arg12[%c0_188, %c32_189] : memref<80x160xbf16, #tpu.memory_space<vmem>>, vector<80x32xbf16>
    tpu.vector_store %arg12[%c0_188, %c32_189], %173 {strides = array<i32>} : memref<80x160xbf16, #tpu.memory_space<vmem>>, vector<80x32xbf16>,
    %c16_190 = arith.constant 16 : index
    %c0_191 = arith.constant 0 : index
    %175 = vector.load %arg11[%c16_190, %c0_191] : memref<112x32xbf16, #tpu.memory_space<vmem>>, vector<80x32xbf16>
    %c0_192 = arith.constant 0 : index
    %c64_193 = arith.constant 64 : index
    %176 = vector.load %arg12[%c0_192, %c64_193] : memref<80x160xbf16, #tpu.memory_space<vmem>>, vector<80x32xbf16>
    tpu.vector_store %arg12[%c0_192, %c64_193], %175 {strides = array<i32>} : memref<80x160xbf16, #tpu.memory_space<vmem>>, vector<80x32xbf16>,
    %c18_194 = arith.constant 18 : index
    %c0_195 = arith.constant 0 : index
    %177 = vector.load %arg11[%c18_194, %c0_195] : memref<112x32xbf16, #tpu.memory_space<vmem>>, vector<80x32xbf16>
    %c0_196 = arith.constant 0 : index
    %c96_197 = arith.constant 96 : index
    %178 = vector.load %arg12[%c0_196, %c96_197] : memref<80x160xbf16, #tpu.memory_space<vmem>>, vector<80x32xbf16>
    tpu.vector_store %arg12[%c0_196, %c96_197], %177 {strides = array<i32>} : memref<80x160xbf16, #tpu.memory_space<vmem>>, vector<80x32xbf16>,
    %c20_198 = arith.constant 20 : index
    %c0_199 = arith.constant 0 : index
    %179 = vector.load %arg11[%c20_198, %c0_199] : memref<112x32xbf16, #tpu.memory_space<vmem>>, vector<80x32xbf16>
    %c0_200 = arith.constant 0 : index
    %c128_201 = arith.constant 128 : index
    %180 = vector.load %arg12[%c0_200, %c128_201] : memref<80x160xbf16, #tpu.memory_space<vmem>>, vector<80x32xbf16>
    tpu.vector_store %arg12[%c0_200, %c128_201], %179 {strides = array<i32>} : memref<80x160xbf16, #tpu.memory_space<vmem>>, vector<80x32xbf16>,
    %c0_202 = arith.constant 0 : index
    %c0_203 = arith.constant 0 : index
    %181 = vector.load %arg12[%c0_202, %c0_203] : memref<80x160xbf16, #tpu.memory_space<vmem>>, vector<80x160xbf16>
    %cst_204 = arith.constant dense<0.000000e+00> : vector<80x32xf32>
    %182 = tpu.matmul %181, %170, %cst_204 {dimension_numbers = #tpu.dot_dimension_numbers<[1], [0], [0], [1], [0, 0, 1, 1], [], []>} : vector<80x160xbf16>, vector<160x32xbf16>, vector<80x32xf32> -> vector<80x32xf32>
    %183 = vector.broadcast %166 : vector<1x32xf32> to vector<80x32xf32>
    %184 = arith.addf %182, %183 : vector<80x32xf32>
    %185 = arith.addf %184, %139 : vector<80x32xf32>
    %186 = arith.truncf %185 : vector<80x32xf32> to vector<80x32xbf16>
    %c0_205 = arith.constant 0 : index
    %c0_206 = arith.constant 0 : index
    %c0_207 = arith.constant 0 : index
    %187 = vector.load %arg3[%c0_205, %c0_206, %c0_207] : memref<2x32x32xbf16, #tpu.memory_space<vmem>>, vector<2x32x32xbf16>
    %188 = vector.shape_cast %187 : vector<2x32x32xbf16> to vector<64x32xbf16>
    %c0_208 = arith.constant 0 : index
    %c0_209 = arith.constant 0 : index
    %189 = vector.load %arg12[%c0_208, %c0_209] : memref<80x160xbf16, #tpu.memory_space<vmem>>, vector<80x32xbf16>
    tpu.vector_store %arg12[%c0_208, %c0_209], %17 {strides = array<i32>} : memref<80x160xbf16, #tpu.memory_space<vmem>>, vector<80x32xbf16>,
    %c0_210 = arith.constant 0 : index
    %c32_211 = arith.constant 32 : index
    %190 = vector.load %arg12[%c0_210, %c32_211] : memref<80x160xbf16, #tpu.memory_space<vmem>>, vector<80x32xbf16>
    tpu.vector_store %arg12[%c0_210, %c32_211], %186 {strides = array<i32>} : memref<80x160xbf16, #tpu.memory_space<vmem>>, vector<80x32xbf16>,
    %c0_212 = arith.constant 0 : index
    %c0_213 = arith.constant 0 : index
    %191 = vector.load %arg12[%c0_212, %c0_213] : memref<80x160xbf16, #tpu.memory_space<vmem>>, vector<80x64xbf16>
    %cst_214 = arith.constant dense<0.000000e+00> : vector<80x32xf32>
    %192 = tpu.matmul %191, %188, %cst_214 {dimension_numbers = #tpu.dot_dimension_numbers<[1], [0], [0], [1], [0, 0, 1, 1], [], []>} : vector<80x64xbf16>, vector<64x32xbf16>, vector<80x32xf32> -> vector<80x32xf32>
    %c1_215 = arith.constant 1 : index
    %c0_216 = arith.constant 0 : index
    %193 = vector.load %arg4[%c1_215, %c0_216] : memref<11x32xf32, #tpu.memory_space<vmem>>, vector<1x32xf32>
    %194 = vector.broadcast %193 : vector<1x32xf32> to vector<80x32xf32>
    %195 = arith.addf %192, %194 : vector<80x32xf32>
    %c10 = arith.constant 10 : index
    %c0_217 = arith.constant 0 : index
    %196 = vector.load %arg4[%c10, %c0_217] : memref<11x32xf32, #tpu.memory_space<vmem>>, vector<1x32xf32>
    %197 = vector.broadcast %196 : vector<1x32xf32> to vector<80x32xf32>
    %198 = arith.addf %195, %197 : vector<80x32xf32>
    %199 = arith.truncf %198 : vector<80x32xf32> to vector<80x32xbf16>
    %c0_218 = arith.constant 0 : index
    %c0_219 = arith.constant 0 : index
    %200 = vector.load %arg7[%c0_218, %c0_219] : memref<32x128xbf16, #tpu.memory_space<vmem>>, vector<32x128xbf16>
    %cst_220 = arith.constant dense<0.000000e+00> : vector<80x128xf32>
    %201 = tpu.matmul %199, %200, %cst_220 {dimension_numbers = #tpu.dot_dimension_numbers<[1], [0], [0], [1], [0, 0, 1, 1], [], []>} : vector<80x32xbf16>, vector<32x128xbf16>, vector<80x128xf32> -> vector<80x128xf32>
    %c0_221 = arith.constant 0 : index
    %c0_222 = arith.constant 0 : index
    %202 = vector.load %arg9[%c0_221, %c0_222] : memref<2x128xf32, #tpu.memory_space<vmem>>, vector<1x128xf32>
    %203 = vector.broadcast %202 : vector<1x128xf32> to vector<80x128xf32>
    %204 = arith.addf %201, %203 : vector<80x128xf32>
    %cst_223 = arith.constant 0.000000e+00 : f32
    %205 = vector.broadcast %cst_223 : f32 to vector<80x128xf32>
    %206 = arith.subf %205, %204 : vector<80x128xf32>
    %207 = math.exp %206 : vector<80x128xf32>
    %cst_224 = arith.constant 1.000000e+00 : f32
    %208 = vector.broadcast %cst_224 : f32 to vector<80x128xf32>
    %209 = arith.addf %208, %207 : vector<80x128xf32>
    %210 = tpu.reciprocal %209 {approx = true} : vector<80x128xf32> -> vector<80x128xf32>
    %211 = arith.mulf %204, %210 : vector<80x128xf32>
    %212 = arith.truncf %211 : vector<80x128xf32> to vector<80x128xbf16>
    %c0_225 = arith.constant 0 : index
    %c0_226 = arith.constant 0 : index
    %213 = vector.load %arg8[%c0_225, %c0_226] : memref<128x128xbf16, #tpu.memory_space<vmem>>, vector<128x128xbf16>
    %cst_227 = arith.constant dense<0.000000e+00> : vector<80x128xf32>
    %214 = tpu.matmul %212, %213, %cst_227 {dimension_numbers = #tpu.dot_dimension_numbers<[1], [0], [0], [1], [0, 0, 1, 1], [], []>} : vector<80x128xbf16>, vector<128x128xbf16>, vector<80x128xf32> -> vector<80x128xf32>
    %c1_228 = arith.constant 1 : index
    %c0_229 = arith.constant 0 : index
    %215 = vector.load %arg9[%c1_228, %c0_229] : memref<2x128xf32, #tpu.memory_space<vmem>>, vector<1x128xf32>
    %216 = vector.broadcast %215 : vector<1x128xf32> to vector<80x128xf32>
    %217 = arith.addf %214, %216 : vector<80x128xf32>
    %cst_230 = arith.constant dense<0xFF800000> : vector<80xf32>
    %218 = vector.multi_reduction <maximumf>, %217, %cst_230 [1] : vector<80x128xf32> to vector<80xf32>
    %219 = vector.shape_cast %218 : vector<80xf32> to vector<80x1xf32>
    %220 = vector.broadcast %219 : vector<80x1xf32> to vector<80x128xf32>
    %221 = arith.subf %217, %220 : vector<80x128xf32>
    %222 = math.exp %221 : vector<80x128xf32>
    %cst_231 = arith.constant dense<0.000000e+00> : vector<80xf32>
    %223 = vector.multi_reduction <add>, %222, %cst_231 [1] : vector<80x128xf32> to vector<80xf32>
    %224 = vector.shape_cast %223 : vector<80xf32> to vector<80x1xf32>
    %225 = vector.broadcast %224 : vector<80x1xf32> to vector<80x128xf32>
    %226 = arith.divf %222, %225 : vector<80x128xf32>
    %227 = vector.shape_cast %226 : vector<80x128xf32> to vector<1x80x128xf32>
    %228 = vector.extract_strided_slice %227 {offsets = [0, 8, 0], sizes = [1, 64, 128], strides = [1, 1, 1]} : vector<1x80x128xf32> to vector<1x64x128xf32>
    %c0_232 = arith.constant 0 : index
    %c0_233 = arith.constant 0 : index
    %c0_234 = arith.constant 0 : index
    %229 = vector.load %arg10[%c0_232, %c0_233, %c0_234] : memref<1x64x128xf32, #tpu.memory_space<vmem>>, vector<1x64x128xf32>
    tpu.vector_store %arg10[%c0_232, %c0_233, %c0_234], %228 {strides = array<i32>} : memref<1x64x128xf32, #tpu.memory_space<vmem>>, vector<1x64x128xf32>,
    return
  }
  func.func @transform_0(%arg0: i32) -> (i32, i32, i32) {
    %c0_i32 = arith.constant 0 : i32
    %c0_i32_0 = arith.constant 0 : i32
    %c0_i32_1 = arith.constant 0 : i32
    return %arg0, %c0_i32, %c0_i32_0 : i32, i32, i32
  }
  func.func @transform_1(%arg0: i32) -> (i32, i32) {
    %c0_i32 = arith.constant 0 : i32
    %c0_i32_0 = arith.constant 0 : i32
    %c0_i32_1 = arith.constant 0 : i32
    return %c0_i32, %c0_i32_0 : i32, i32
  }
  func.func @transform_2(%arg0: i32) -> (i32, i32, i32) {
    %c0_i32 = arith.constant 0 : i32
    %c0_i32_0 = arith.constant 0 : i32
    %c0_i32_1 = arith.constant 0 : i32
    %c0_i32_2 = arith.constant 0 : i32
    return %c0_i32, %c0_i32_0, %c0_i32_1 : i32, i32, i32
  }
  func.func @transform_3(%arg0: i32) -> (i32, i32) {
    %c0_i32 = arith.constant 0 : i32
    %c0_i32_0 = arith.constant 0 : i32
    %c0_i32_1 = arith.constant 0 : i32
    return %c0_i32, %c0_i32_0 : i32, i32
  }
  func.func @transform_4(%arg0: i32) -> (i32, i32, i32) {
    %c0_i32 = arith.constant 0 : i32
    %c0_i32_0 = arith.constant 0 : i32
    %c0_i32_1 = arith.constant 0 : i32
    %c0_i32_2 = arith.constant 0 : i32
    return %c0_i32, %c0_i32_0, %c0_i32_1 : i32, i32, i32
  }
  func.func @transform_5(%arg0: i32) -> (i32, i32, i32) {
    %c0_i32 = arith.constant 0 : i32
    %c0_i32_0 = arith.constant 0 : i32
    %c0_i32_1 = arith.constant 0 : i32
    %c0_i32_2 = arith.constant 0 : i32
    return %c0_i32, %c0_i32_0, %c0_i32_1 : i32, i32, i32
  }
  func.func @transform_6(%arg0: i32) -> (i32, i32) {
    %c0_i32 = arith.constant 0 : i32
    %c0_i32_0 = arith.constant 0 : i32
    %c0_i32_1 = arith.constant 0 : i32
    return %c0_i32, %c0_i32_0 : i32, i32
  }
  func.func @transform_7(%arg0: i32) -> (i32, i32) {
    %c0_i32 = arith.constant 0 : i32
    %c0_i32_0 = arith.constant 0 : i32
    %c0_i32_1 = arith.constant 0 : i32
    return %c0_i32, %c0_i32_0 : i32, i32
  }
  func.func @transform_8(%arg0: i32) -> (i32, i32) {
    %c0_i32 = arith.constant 0 : i32
    %c0_i32_0 = arith.constant 0 : i32
    %c0_i32_1 = arith.constant 0 : i32
    return %c0_i32, %c0_i32_0 : i32, i32
  }
  func.func @transform_9(%arg0: i32) -> (i32, i32, i32) {
    %c0_i32 = arith.constant 0 : i32
    %c0_i32_0 = arith.constant 0 : i32
    %c0_i32_1 = arith.constant 0 : i32
    return %arg0, %c0_i32, %c0_i32_0 : i32, i32, i32
  }
}

</mosaic_0001>

<bundles_post_ra>
// kernel: tpu_custom_call.1
= control target key start
LH: loop header
LB: loop body
LE: loop exit
PB: predicated region body
PF: predicated region fallthrough
CT: control target
= control target key end

     0   :  { %14 = vsyncpa [#allocation5], 0  ;;  %s6903_s0 = inlined_call_operand.vmem [shape: bf16[2,80,4], index: 0, kind: input, shape index: {}]   ;;  %s6904_s1 = inlined_call_operand.vmem [shape: bf16[4,32], index: 1, kind: input, shape index: {}]   ;;  %s6905_s2 = inlined_call_operand.vmem [shape: bf16[2,32,32], index: 2, kind: input, shape index: {}]   ;;  %s6906_s3 = inlined_call_operand.vmem [shape: f32[11,32], index: 3, kind: input, shape index: {}]   ;;  %s6907_s4 = inlined_call_operand.vmem [shape: bf16[4,96,32], index: 4, kind: input, shape index: {}]   ;;  %s6908_s5 = inlined_call_operand.vmem [shape: bf16[4,160,32], index: 5, kind: input, shape index: {}]   ;;  %s6909_s6 = inlined_call_operand.vmem [shape: bf16[32,128], index: 6, kind: input, shape index: {}]   ;;  %s6910_s7 = inlined_call_operand.vmem [shape: bf16[128,128], index: 7, kind: input, shape index: {}]   ;;  %s6911_s8 = inlined_call_operand.vmem [shape: f32[2,128], index: 8, kind: input, shape index: {}]   ;;  %s6912_s9 = inlined_call_operand.hbm [shape: f32[2,64,128], index: 9, kind: output, shape index: {}]  }
   0x1   :  { %16 = vsyncpa [#allocation5 + $0x1], 0  ;;  %s5363_s30 = smov 0   ;;  %s5365_s10 = smov 0  }
   0x2   :  { %s5367_s11 = smov 0   ;;  %s5369_s12 = smov 0  }
   0x3 LB: > { %s5384_s13 = sadd.s32 4294967295, %s5301_s12   ;;  %s4250_s14 = sadd.s32 4294967294, %s5301_s12   ;;  %s5301_s12 = sphi %s5369_s12, %s6920_s12   ;;  %s5297_s11 = sphi %s5367_s11, %s6919_s11   ;;  %s5293_s10 = sphi %s5365_s10, %s6918_s10   ;;  %s5289_s30 = sphi %s5363_s30, %s6917_s30  }
   0x4   : > { %s5388_s15 = sadd.s32 1, %s5301_s12   ;;  %s223_s16 = sadd.s32 1, %s5297_s11 }
   0x5   : > { %s220_s17 = ssub.s32 %s5301_s12, %s5388_s15  ;;  %p233_p0 = scmp.ne.s32.totalorder %s5297_s11, %s5293_s10 }
   0x6   : > { %p221_p1 = scmp.eq.s32.totalorder %s220_s17, 0  ;;  %p234_p2 = scmp.eq.s32.totalorder %s5384_s13, 1 }
   0x7   : > { %p239_p3 = scmp.ne.s32.totalorder %s5293_s10, %s5289_s30  ;;  %p240_p4 = scmp.eq.s32.totalorder %s4250_s14, 1 }
   0x8   : > { %s5399_s18 = scalar_select %p221_p1, %s5297_s11, %s223_s16  }
   0x9   : > { %p5401_p5 = por %p234_p2, %p233_p0  ;;  %p5405_p6 = por %p240_p4, %p239_p3 }
   0xa   : > { %p4253_p7 = scmp.ge.s32.totalorder %s5301_s12, 1  ;;  %p290_p8 = scmp.lt.s32.totalorder %s5301_s12, 3 }
   0xc   : > { %p291_p9 = pnand %p4253_p7, %p290_p8 }
   0xd   : > { %s6913_s21 = sand.u32 (!%p291_p9), 1, %s5293_s10   ;;  %p326_p10 = scmp.lt.s32.totalorder (!%p291_p9), %s5384_s13, 1 }
   0xe   : > { %294 = sbr.rel (%p291_p9) target bundleno = 4465 (0x1171), region = 56  ;;  %s4254_s22 = sshll.u32 (!%p291_p9), %s6913_s21, 6 }
   0xf   : > { %s5421_s28 = scalar_lea.vmem (!%p291_p9), [#allocation4], %s4254_s22  ;;  %p4256_p11 = scmp.ne.s32.totalorder (!%p291_p9), %s5384_s13, 0 }
  0x15   : > { %s327_s23 = scalar_select %p326_p10, %s5384_s13, 1 }
  0x16   : > { %335 = sbr.rel (%p4256_p11) target bundleno = 29 (0x1d), region = 60  ;;  %vm336_vm0 = vcmask (!%p4256_p11), 261120   ;;  %v5303_v0 = vmov (!%p4256_p11), 0  }
  0x17   : > { %s4835_s24 = smul.u32 40, %s327_s23  ;;  %337 = vst.msk [vmem:[#allocation2] sm:$0xff] (!%p4256_p11), %vm336_vm0, %v5303_v0  ;;  %338 = vst.msk [vmem:[#allocation2 + $0x30] sm:$0xff] (!%p4256_p11), %vm336_vm0, %v5303_v0 }
  0x19   : > { %s5419_s27 = scalar_lea.vmem %s6903_s0, %s4835_s24 }
  0x1d PF: > { %v349_v1 = vld [vmem:[%s6904_s1] sm:$0x3]  ;;  %vm396_vm1 = vcmask 1041408   ;;  %v5304_v2 = vmov 0.0   ;;  %vm5305_vm2 = vmmov 0   ;;  %vm380_vm3 = vcmask 31744  }
  0x1e   : > { %4589 = vmatprep.subr.bf16.mxu0 %v5304_v2  ;;  %v398_v3 = vsel %vm396_vm1, %v349_v1, 0  ;;  %4591 = vmatprep.mubr.msk.bf16.mxu0 %vm5305_vm2, %v5304_v2  ;;  %v4884_v4 = vld [vmem:[%s5419_s27] sm:$0xff]   ;;  %v4885_v5 = vld [vmem:[%s5419_s27 + $0x8] sm:$0xff]   ;;  %v4886_v6 = vld [vmem:[%s5419_s27 + $0x10] sm:$0xff]   ;;  %vm539_vm4 = vcmask 261120   ;;  %s5306_s22 = smov 32  }
  0x1f   : > { %4590 = vmatpush3.bf16.msra.mxu0 %v398_v3  ;;  %4611 = vmatprep.subr.bf16.mxu1 %v5304_v2  ;;  %v4887_v7 = vld [vmem:[%s5419_s27 + $0x18] sm:$0xff]   ;;  %v4888_v8 = vld [vmem:[%s5419_s27 + $0x20] sm:$0xff]   ;;  %v4890_v62 = vld [vmem:[%s6907_s4 + $0x8] sm:$0xff]   ;;  %vm563_vm5 = vsmask.f32 256  ;;  %s5307_s25 = smov 64  }
  0x20   : > { %4623 = vmatprep.mubr.msk.bf16.mxu1 %vm5305_vm2, %v5304_v2  ;;  %4643 = vmatprep.subr.bf16.mxu0 %v5304_v2  ;;  %v4889_v9 = vld [vmem:[%s6907_s4] sm:$0xff]   ;;  %vm655_vm6 = vsmask.f32 7424  ;;  %vm643_vm7 = vcmask 523520   ;;  %vm715_vm8 = vcmask 785920   ;;  %vm766_vm9 = vcmask 785408  }
  0x21   : > { %4612 = vmatpush3.bf16.msra.mxu1 %v4889_v9  ;;  %v5462_v10 = vld [vmem:[%s6906_s3] ss:$0 sm:$0xff]  ;;  %vm2023_vm10 = vcmask 1040384   ;;  %vm2097_vm11 = vcmask 1046528   ;;  %vm2142_vm12 = vcmask 1045504   ;;  %s5309_s26 = smov 96  }
  0x22   : > { %4592 = vmatmul.mubr.msk.bf16.vlgmr.msra.gmra.mrb[0].mxu0 %vm380_vm3, %v4884_v4  ;;  %4613 = vmatprep.subr.bf16.mxu1 %v5304_v2  ;;  %vm2124_vm13 = vcmask 1048320   ;;  %vm3671_vm14 = vcmask 523264   ;;  %s4509_s17 = sshll.u32 %s5384_s13, 10  ;;  %s4188_s23 = sshll.u32 %s5421_s28, 4  ;;  %s6857_s23 = int_to_ptr.vmem [resolvable:$true] %s4188_s23 }
  0x23   : > { %4595 = vmatprep.mubr.msk.bf16.mxu0 %vm5305_vm2, %v5304_v2  ;;  %s6855_s29 = scalar_lea.hbm %s6912_s9, %s4509_s17  ;;  %s5310_s13 = smov [#allocation4]  }
  0x24   : > { %s5243_s14 = sshll.u32 %s5310_s13, 4  ;;  %s5244_s14 = int_to_ptr.vmem [resolvable:$false] %s5243_s14 }
  0x25   : > { %4614 = vmatpush3.bf16.msra.mxu1 %v4890_v62  ;;  %s5245_s16 = scalar_lea.vmem %s5244_s14, 2048  ;;  %p5246_p1 = scmp.lt.s32.totalorder %s6857_s23, %s5244_s14 }
  0x26   : > { %4615 = vmatprep.subr.bf16.mxu1 %v5304_v2 }
  0x2a   : > { %4596 = vmatmul.mubr.msk.bf16.gmra.mrb[4].mxu0 %vm380_vm3, %v4885_v5 }
  0x2b   : > { %4599 = vmatprep.mubr.msk.bf16.mxu0 %vm5305_vm2, %v5304_v2 }
  0x32   : > { %4600 = vmatmul.mubr.msk.bf16.gmra.mrb[8].mxu0 %vm380_vm3, %v4886_v6 }
  0x33   : > { %4603 = vmatprep.mubr.msk.bf16.mxu0 %vm5305_vm2, %v5304_v2 }
  0x3a   : > { %4604 = vmatmul.mubr.msk.bf16.gmra.mrb[12].mxu0 %vm380_vm3, %v4887_v7  ;;  %v4891_v7 = vld [vmem:[%s6907_s4 + $0x10] sm:$0xff]  }
  0x3b   : > { %4607 = vmatprep.mubr.msk.bf16.mxu0 %vm5305_vm2, %v5304_v2  ;;  %4616 = vmatpush3.bf16.msra.mxu1 %v4891_v7 }
  0x3c   : > { %4617 = vmatprep.subr.bf16.mxu1 %v5304_v2 }
  0x42   : > { %4608 = vmatmul.mubr.msk.bf16.gmra.mrb[16].mxu0 %vm380_vm3, %v4888_v8 }
  0x43   : > { %4655 = vmatprep.mubr.msk.bf16.mxu0 %vm5305_vm2, %v5304_v2 }
  0xf5   : > { %v434_v11 = vpop.f32.mrb[0].mxu0 }
  0xf6   : > { %v5465_v12 = vadd.f32 %v5462_v10, %v434_v11  ;;  %v4593_v13 = vpop.f32.mrb[1].mxu0 }
  0xf7   : > { %v437_v14 = vpop.f32.mrb[2].mxu0 }
  0xf8   : > { %v473_v15 = vsub.f32 0.0, %v5465_v12  ;;  %v438_v16 = vadd.f32 %v5462_v10, %v437_v14  ;;  %v4594_v17 = vpop.f32.mrb[3].mxu0 }
  0xfa   : > { %v483_v18 = vmul.f32 1.442695, %v473_v15  ;;  %v474_v19 = vsub.f32 0.0, %v438_v16 }
  0xfc   : > { %4967 = vpow2.f32 %v483_v18  ;;  %v485_v20 = vmul.f32 1.442695, %v474_v19  ;;  %v557_v19 = vld [vmem:[#allocation2] sm:$0x80] }
  0xfd   : > { %v442_v21 = vpop.f32.mrb[4].mxu0 }
  0xfe   : > { %4969 = vpow2.f32 %v485_v20  ;;  %v5470_v22 = vadd.f32 %v5462_v10, %v442_v21  ;;  %v4597_v23 = vpop.f32.mrb[5].mxu0  ;;  %v4892_v20 = vld [vmem:[%s6907_s4 + $0x18] sm:$0xff]  }
  0xff   : > { %v445_v24 = vpop.f32.mrb[6].mxu0  ;;  %4618 = vmatpush3.bf16.msra.mxu1 %v4892_v20 }
 0x100   : > { %v475_v25 = vsub.f32 0.0, %v5470_v22  ;;  %v5474_v26 = vadd.f32 %v5462_v10, %v445_v24  ;;  %v4598_v27 = vpop.f32.mrb[7].mxu0  ;;  %4619 = vmatprep.subr.bf16.mxu1 %v5304_v2 }
 0x102   : > { %v487_v28 = vmul.f32 1.442695, %v475_v25  ;;  %v476_v29 = vsub.f32 0.0, %v5474_v26 }
 0x104   : > { %4971 = vpow2.f32 %v487_v28  ;;  %v489_v30 = vmul.f32 1.442695, %v476_v29  ;;  %v565_v29 = vshrl.u32 %v557_v19, 16 }
 0x105   : > { %v450_v31 = vpop.f32.mrb[8].mxu0 }
 0x106   : > { %v4968_v32 = vpop.eup %4967  ;;  %4973 = vpow2.f32 %v489_v30  ;;  %v5478_v33 = vadd.f32 %v5462_v10, %v450_v31  ;;  %v4601_v34 = vpop.f32.mrb[9].mxu0 }
 0x107   : > { %v503_v35 = vadd.f32 1.0, %v4968_v32  ;;  %v453_v36 = vpop.f32.mrb[10].mxu0 }
 0x108   : > { %v4970_v37 = vpop.eup %4969  ;;  %v477_v38 = vsub.f32 0.0, %v5478_v33  ;;  %v5482_v39 = vadd.f32 %v5462_v10, %v453_v36  ;;  %v4602_v40 = vpop.f32.mrb[11].mxu0 }
 0x109   : > { %4975 = vrcp.f32 %v503_v35  ;;  %v504_v41 = vadd.f32 1.0, %v4970_v37  ;;  %v567_v35 = vrot.slane %v565_v29, 7  ;;  %v654_v29 = vld [vmem:[#allocation2 + $0x30] sm:$0x1] }
 0x10a   : > { %v491_v42 = vmul.f32 1.442695, %v477_v38  ;;  %v478_v43 = vsub.f32 0.0, %v5482_v39  ;;  %v4894_v38 = vld [vmem:[%s6907_s4 + $0x28] sm:$0xff]  }
 0x10b   : > { %4977 = vrcp.f32 %v504_v41 }
 0x10c   : > { %4979 = vpow2.f32 %v491_v42  ;;  %v493_v44 = vmul.f32 1.442695, %v478_v43 }
 0x10d   : > { %v458_v45 = vpop.f32.mrb[12].mxu0 }
 0x10e   : > { %v4972_v46 = vpop.eup %4971  ;;  %4981 = vpow2.f32 %v493_v44  ;;  %v5486_v47 = vadd.f32 %v5462_v10, %v458_v45  ;;  %v4605_v48 = vpop.f32.mrb[13].mxu0 }
 0x10f   : > { %v505_v49 = vadd.f32 1.0, %v4972_v46  ;;  %v461_v50 = vpop.f32.mrb[14].mxu0 }
 0x110   : > { %v4974_v51 = vpop.eup %4973  ;;  %v479_v52 = vsub.f32 0.0, %v5486_v47  ;;  %v5490_v53 = vadd.f32 %v5462_v10, %v461_v50  ;;  %v4606_v54 = vpop.f32.mrb[15].mxu0 }
 0x111   : > { %4983 = vrcp.f32 %v505_v49  ;;  %v506_v55 = vadd.f32 1.0, %v4974_v51 }
 0x112   : > { %v495_v56 = vmul.f32 1.442695, %v479_v52  ;;  %v480_v57 = vsub.f32 0.0, %v5490_v53 }
 0x113   : > { %v4976_v58 = vpop.eup %4975  ;;  %4985 = vrcp.f32 %v506_v55 }
 0x114   : > { %4987 = vpow2.f32 %v495_v56  ;;  %v497_v59 = vmul.f32 1.442695, %v480_v57  ;;  %v5497_v0 = vmul.f32 %v4976_v58, %v5465_v12 }
 0x115   : > { %v4978_v60 = vpop.eup %4977  ;;  %v466_v61 = vpop.f32.mrb[16].mxu0 }
 0x116   : > { %v4980_v63 = vpop.eup %4979  ;;  %v5499_v1 = vmul.f32 %v4978_v60, %v438_v16  ;;  %4989 = vpow2.f32 %v497_v59  ;;  %v5502_v3 = vadd.f32 %v5462_v10, %v466_v61  ;;  %v4609_v4 = vpop.f32.mrb[17].mxu0 }
 0x117   : > { %v507_v5 = vadd.f32 1.0, %v4980_v63  ;;  %v469_v6 = vpop.f32.mrb[18].mxu0 }
 0x118   : > { %v4982_v8 = vpop.eup %4981  ;;  %v5509_v9 = vpack.c.bf16 %v5499_v1, %v5497_v0  ;;  %v481_v11 = vsub.f32 0.0, %v5502_v3  ;;  %v5513_v12 = vadd.f32 %v5462_v10, %v469_v6  ;;  %v4610_v13 = vpop.f32.mrb[19].mxu0 }
 0x119   : > { %4991 = vrcp.f32 %v507_v5  ;;  %v508_v14 = vadd.f32 1.0, %v4982_v8 }
 0x11a   : > { %540 = vst.msk [vmem:[#allocation2 + $0x8] sm:$0xff] %vm539_vm4, %v5509_v9  ;;  %v499_v15 = vmul.f32 1.442695, %v481_v11  ;;  %v482_v16 = vsub.f32 0.0, %v5513_v12 }
 0x11b   : > { %v4984_v17 = vpop.eup %4983  ;;  %4993 = vrcp.f32 %v508_v14 }
 0x11c   : > { %4995 = vpow2.f32 %v499_v15  ;;  %v501_v18 = vmul.f32 1.442695, %v482_v16  ;;  %v5524_v23 = vmul.f32 %v4984_v17, %v5470_v22  ;;  %v4893_v22 = vld [vmem:[%s6907_s4 + $0x20] sm:$0xff]  }
 0x11d   : > { %v4986_v10 = vpop.eup %4985  ;;  %4620 = vmatpush3.bf16.msra.mxu1 %v4893_v22 }
 0x11e   : > { %v4988_v21 = vpop.eup %4987  ;;  %v5527_v24 = vmul.f32 %v4986_v10, %v5474_v26  ;;  %4997 = vpow2.f32 %v501_v18  ;;  %4621 = vmatprep.subr.bf16.mxu1 %v5304_v2 }
 0x11f   : > { %v509_v25 = vadd.f32 1.0, %v4988_v21 }
 0x120   : > { %v4990_v27 = vpop.eup %4989  ;;  %v5531_v28 = vpack.c.bf16 %v5527_v24, %v5524_v23 }
 0x121   : > { %4999 = vrcp.f32 %v509_v25  ;;  %v510_v30 = vadd.f32 1.0, %v4990_v27  ;;  %v618_v31 = vld [vmem:[#allocation2 + $0x8] sm:$0xff]  ;;  %4622 = vmatpush3.bf16.msra.mxu1 %v4894_v38 }
 0x122   : > { %541 = vst.msk [vmem:[#allocation2 + $0x10] sm:$0xff] %vm539_vm4, %v5531_v28  ;;  %628 = vrot.lane.b32.xlu0 %v618_v31, %s5306_s22  ;;  %v657_v26 = vshrl.u32 %v618_v31, 16  ;;  %v659_v34 = vshll.u32 %v618_v31, 16  ;;  %4675 = vmatprep.subr.bf16.mxu1 %v5304_v2 }
 0x123   : > { %v4992_v32 = vpop.eup %4991  ;;  %5001 = vrcp.f32 %v510_v30 }
 0x124   : > { %v571_v36 = vrot.slane %v657_v26, 7  ;;  %v5545_v41 = vmul.f32 %v4992_v32, %v5478_v33  ;;  %v661_v48 = vrot.slane %v659_v34, 1  ;;  %v696_v32 = vshll.u32 %v654_v29, 16 }
 0x125   : > { %v4994_v37 = vpop.eup %4993 }
 0x126   : > { %v4996_v40 = vpop.eup %4995  ;;  %v5548_v42 = vmul.f32 %v4994_v37, %v5482_v39  ;;  %v574_v43 = vor.u32 %v659_v34, %v571_v36  ;;  %v662_v54 = vor.u32 %v661_v48, %v657_v26 }
 0x127   : > { %v511_v44 = vadd.f32 1.0, %v4996_v40  ;;  %v698_v40 = vrot.slane %v696_v32, 1 }
 0x128   : > { %v4998_v45 = vpop.eup %4997  ;;  %v5552_v46 = vpack.c.bf16 %v5548_v42, %v5545_v41  ;;  %v575_v49 = vsel %vm563_vm5, %v567_v35, %v574_v43 }
 0x129   : > { %5003 = vrcp.f32 %v511_v44  ;;  %v512_v50 = vadd.f32 1.0, %v4998_v45  ;;  %v619_v33 = vld [vmem:[#allocation2 + $0x10] sm:$0xff]  ;;  %613 = vst.msk [vmem:[#allocation3] sm:$0xff] %vm539_vm4, %v575_v49 }
 0x12a   : > { %542 = vst.msk [vmem:[#allocation2 + $0x18] sm:$0xff] %vm539_vm4, %v5552_v46  ;;  %630 = vrot.lane.b32.xlu1 %v619_v33, %s5306_s22  ;;  %v664_v39 = vshll.u32 %v619_v33, 16  ;;  %v668_v51 = vshrl.u32 %v619_v33, 16 }
 0x12b   : > { %v5000_v52 = vpop.eup %4999  ;;  %5005 = vrcp.f32 %v512_v50 }
 0x12c   : > { %v666_v55 = vrot.slane %v664_v39, 1  ;;  %v579_v56 = vrot.slane %v668_v51, 7  ;;  %v5561_v58 = vmul.f32 %v5000_v52, %v5486_v47 }
 0x12d   : > { %v5002_v57 = vpop.eup %5001 }
 0x12e   : > { %v5564_v59 = vmul.f32 %v5002_v57, %v5490_v53  ;;  %v667_v60 = vsel %vm655_vm6, %v662_v54, %v666_v55  ;;  %v582_v61 = vor.u32 %v664_v39, %v579_v56  ;;  %v670_v6 = vor.u32 %v668_v51, %v666_v55 }
 0x12f   : > { %700 = vrot.lane.b32.xlu0 %v667_v60, %s5307_s25 }
 0x130   : > { %v5570_v62 = vpack.c.bf16 %v5564_v59, %v5561_v58  ;;  %v583_v63 = vsel %vm563_vm5, %v571_v36, %v582_v61 }
 0x131   : > { %v620_v4 = vld [vmem:[#allocation2 + $0x18] sm:$0xff]  ;;  %614 = vst.msk [vmem:[#allocation3 + $0x10] sm:$0xff] %vm539_vm4, %v583_v63 }
 0x132   : > { %543 = vst.msk [vmem:[#allocation2 + $0x20] sm:$0xff] %vm539_vm4, %v5570_v62  ;;  %v672_v47 = vshll.u32 %v620_v4, 16  ;;  %v676_v53 = vshrl.u32 %v620_v4, 16 }
 0x133   : > { %v5004_v5 = vpop.eup %5003  ;;  %632 = vrot.lane.b32.xlu0 %v620_v4, %s5306_s22 }
 0x134   : > { %v674_v7 = vrot.slane %v672_v47, 1  ;;  %v587_v8 = vrot.slane %v676_v53, 7  ;;  %v5578_v13 = vmul.f32 %v5004_v5, %v5502_v3  ;;  %v4897_v5 = vld [vmem:[%s6907_s4 + $0x40] sm:$0xff]  }
 0x135   : > { %v5006_v11 = vpop.eup %5005 }
 0x136   : > { %v5581_v14 = vmul.f32 %v5006_v11, %v5513_v12  ;;  %v675_v15 = vsel %vm655_vm6, %v670_v6, %v674_v7  ;;  %v590_v16 = vor.u32 %v672_v47, %v587_v8  ;;  %v678_v19 = vor.u32 %v676_v53, %v674_v7  ;;  %v4895_v47 = vld [vmem:[%s6907_s4 + $0x30] sm:$0xff]   ;;  %v4896_v53 = vld [vmem:[%s6907_s4 + $0x38] sm:$0xff]   ;;  %v5645_v6 = vld [vmem:[%s6906_s3 + $0x2] ss:$0 sm:$0xff] }
 0x137   : > { %702 = vrot.lane.b32.xlu1 %v675_v15, %s5307_s25  ;;  %4644 = vmatpush3.bf16.msra.mxu0 %v4895_v47 }
 0x138   : > { %v5587_v17 = vpack.c.bf16 %v5581_v14, %v5578_v13  ;;  %v591_v18 = vsel %vm563_vm5, %v579_v56, %v590_v16  ;;  %4645 = vmatprep.subr.bf16.mxu0 %v5304_v2 }
 0x139   : > { %v621_v10 = vld [vmem:[#allocation2 + $0x20] sm:$0xff]  ;;  %615 = vst.msk [vmem:[#allocation3 + $0x20] sm:$0xff] %vm539_vm4, %v591_v18 }
 0x13a   : > { %544 = vst.msk [vmem:[#allocation2 + $0x28] sm:$0xff] %vm539_vm4, %v5587_v17  ;;  %634 = vrot.lane.b32.xlu0 %v621_v10, %s5306_s22  ;;  %v680_v3 = vshll.u32 %v621_v10, 16  ;;  %v684_v12 = vshrl.u32 %v621_v10, 16 }
 0x13b   : > { %4646 = vmatpush3.bf16.msra.mxu0 %v4896_v53 }
 0x13c   : > { %v682_v20 = vrot.slane %v680_v3, 1  ;;  %v595_v21 = vrot.slane %v684_v12, 7  ;;  %4647 = vmatprep.subr.bf16.mxu0 %v5304_v2 }
 0x13e   : > { %v683_v25 = vsel %vm655_vm6, %v678_v19, %v682_v20  ;;  %v598_v27 = vor.u32 %v680_v3, %v595_v21  ;;  %v686_v34 = vor.u32 %v684_v12, %v682_v20 }
 0x13f   : > { %704 = vrot.lane.b32.xlu1 %v683_v25, %s5307_s25  ;;  %4648 = vmatpush3.bf16.msra.mxu0 %v4897_v5 }
 0x140   : > { %v599_v30 = vsel %vm563_vm5, %v587_v8, %v598_v27  ;;  %4649 = vmatprep.subr.bf16.mxu0 %v5304_v2 }
 0x141   : > { %v622_v31 = vld [vmem:[#allocation2 + $0x28] sm:$0xff]  ;;  %616 = vst.msk [vmem:[#allocation3 + $0x30] sm:$0xff] %vm539_vm4, %v599_v30 }
 0x142   : > { %636 = vrot.lane.b32.xlu0 %v622_v31, %s5306_s22  ;;  %v688_v22 = vshll.u32 %v622_v31, 16  ;;  %v692_v26 = vshrl.u32 %v622_v31, 16 }
 0x144   : > { %v690_v35 = vrot.slane %v688_v22, 1  ;;  %v603_v36 = vrot.slane %v692_v26, 7 }
 0x146   : > { %v691_v37 = vsel %vm655_vm6, %v686_v34, %v690_v35  ;;  %v694_v38 = vor.u32 %v692_v26, %v690_v35  ;;  %v606_v43 = vor.u32 %v688_v22, %v603_v36 }
 0x147   : > { %706 = vrot.lane.b32.xlu1 %v691_v37, %s5307_s25 }
 0x148   : > { %v607_v44 = vsel %vm563_vm5, %v595_v21, %v606_v43  ;;  %v699_v45 = vsel %vm655_vm6, %v694_v38, %v698_v40 }
 0x149   : > { %617 = vst.msk [vmem:[#allocation3 + $0x40] sm:$0xff] %vm539_vm4, %v607_v44 }
 0x14b   : > { %708 = vrot.lane.b32.xlu1 %v699_v45, %s5307_s25 }
 0x194   : > { %v629_v48 = vpop.permute.xlu0 %628 }
 0x195   : > { %644 = vst.msk [vmem:[#allocation3] sm:$0xff] %vm643_vm7, %v629_v48 }
 0x19c   : > { %v631_v49 = vpop.permute.xlu1 %630 }
 0x19d   : > { %645 = vst.msk [vmem:[#allocation3 + $0x10] sm:$0xff] %vm643_vm7, %v631_v49 }
 0x1a1   : > { %v701_v50 = vpop.permute.xlu0 %700 }
 0x1a2   : > { %716 = vst.msk [vmem:[#allocation3] sm:$0xff] %vm715_vm8, %v701_v50 }
 0x1a5   : > { %v633_v33 = vpop.permute.xlu0 %632 }
 0x1a6   : > { %646 = vst.msk [vmem:[#allocation3 + $0x20] sm:$0xff] %vm643_vm7, %v633_v33 }
 0x1a9   : > { %v703_v39 = vpop.permute.xlu1 %702  ;;  %v721_v51 = vld [vmem:[#allocation3] sm:$0xff] }
 0x1aa   : > { %717 = vst.msk [vmem:[#allocation3 + $0x10] sm:$0xff] %vm715_vm8, %v703_v39  ;;  %4624 = vmatmul.mubr.msk.bf16.vlgmr.msra.gmra.mrb[0].mxu1 %vm766_vm9, %v721_v51 }
 0x1ab   : > { %4627 = vmatprep.mubr.msk.bf16.mxu1 %vm5305_vm2, %v5304_v2 }
 0x1ac   : > { %v635_v52 = vpop.permute.xlu0 %634 }
 0x1ad   : > { %647 = vst.msk [vmem:[#allocation3 + $0x30] sm:$0xff] %vm643_vm7, %v635_v52 }
 0x1b1   : > { %v705_v54 = vpop.permute.xlu1 %704  ;;  %v722_v55 = vld [vmem:[#allocation3 + $0x10] sm:$0xff] }
 0x1b2   : > { %718 = vst.msk [vmem:[#allocation3 + $0x20] sm:$0xff] %vm715_vm8, %v705_v54  ;;  %4628 = vmatmul.mubr.msk.bf16.gmra.mrb[4].mxu1 %vm766_vm9, %v722_v55 }
 0x1b3   : > { %4631 = vmatprep.mubr.msk.bf16.mxu1 %vm5305_vm2, %v5304_v2 }
 0x1b4   : > { %v637_v56 = vpop.permute.xlu0 %636 }
 0x1b5   : > { %648 = vst.msk [vmem:[#allocation3 + $0x40] sm:$0xff] %vm643_vm7, %v637_v56 }
 0x1b9   : > { %v707_v57 = vpop.permute.xlu1 %706  ;;  %v723_v60 = vld [vmem:[#allocation3 + $0x20] sm:$0xff] }
 0x1ba   : > { %719 = vst.msk [vmem:[#allocation3 + $0x30] sm:$0xff] %vm715_vm8, %v707_v57  ;;  %4632 = vmatmul.mubr.msk.bf16.gmra.mrb[8].mxu1 %vm766_vm9, %v723_v60 }
 0x1bb   : > { %4635 = vmatprep.mubr.msk.bf16.mxu1 %vm5305_vm2, %v5304_v2 }
 0x1bd   : > { %v709_v61 = vpop.permute.xlu1 %708 }
 0x1be   : > { %720 = vst.msk [vmem:[#allocation3 + $0x40] sm:$0xff] %vm715_vm8, %v709_v61 }
 0x1c1   : > { %v724_v63 = vld [vmem:[#allocation3 + $0x30] sm:$0xff] }
 0x1c2   : > { %4636 = vmatmul.mubr.msk.bf16.gmra.mrb[12].mxu1 %vm766_vm9, %v724_v63 }
 0x1c3   : > { %4639 = vmatprep.mubr.msk.bf16.mxu1 %vm5305_vm2, %v5304_v2 }
 0x1c5   : > { %v725_v4 = vld [vmem:[#allocation3 + $0x40] sm:$0xff] }
 0x1ca   : > { %4640 = vmatmul.mubr.msk.bf16.gmra.mrb[16].mxu1 %vm766_vm9, %v725_v4 }
 0x1cb   : > { %4687 = vmatprep.mubr.msk.bf16.mxu1 %vm5305_vm2, %v5304_v2 }
 0x27d   : > { %v816_v7 = vpop.f32.mrb[0].mxu1 }
 0x27e   : > { %v5648_v8 = vadd.f32 %v5645_v6, %v816_v7  ;;  %v4625_v11 = vpop.f32.mrb[1].mxu1 }
 0x27f   : > { %v819_v15 = vpop.f32.mrb[2].mxu1 }
 0x280   : > { %v855_v16 = vsub.f32 0.0, %v5648_v8  ;;  %v820_v18 = vadd.f32 %v5645_v6, %v819_v15  ;;  %v4626_v10 = vpop.f32.mrb[3].mxu1 }
 0x281   : > { %v4898_v10 = vld [vmem:[%s6907_s4 + $0x48] sm:$0xff]  }
 0x282   : > { %v865_v3 = vmul.f32 1.442695, %v855_v16  ;;  %v856_v12 = vsub.f32 0.0, %v820_v18  ;;  %4650 = vmatpush3.bf16.msra.mxu0 %v4898_v10 }
 0x283   : > { %4651 = vmatprep.subr.bf16.mxu0 %v5304_v2 }
 0x284   : > { %5007 = vpow2.f32 %v865_v3  ;;  %v867_v19 = vmul.f32 1.442695, %v856_v12 }
 0x285   : > { %v824_v20 = vpop.f32.mrb[4].mxu1 }
 0x286   : > { %5009 = vpow2.f32 %v867_v19  ;;  %v5653_v21 = vadd.f32 %v5645_v6, %v824_v20  ;;  %v4629_v25 = vpop.f32.mrb[5].mxu1 }
 0x287   : > { %v827_v27 = vpop.f32.mrb[6].mxu1 }
 0x288   : > { %v857_v29 = vsub.f32 0.0, %v5653_v21  ;;  %v5657_v30 = vadd.f32 %v5645_v6, %v827_v27  ;;  %v4630_v31 = vpop.f32.mrb[7].mxu1 }
 0x28a   : > { %v869_v22 = vmul.f32 1.442695, %v857_v29  ;;  %v858_v26 = vsub.f32 0.0, %v5657_v30 }
 0x28c   : > { %5011 = vpow2.f32 %v869_v22  ;;  %v871_v32 = vmul.f32 1.442695, %v858_v26 }
 0x28d   : > { %v832_v34 = vpop.f32.mrb[8].mxu1 }
 0x28e   : > { %v5008_v35 = vpop.eup %5007  ;;  %5013 = vpow2.f32 %v871_v32  ;;  %v5661_v36 = vadd.f32 %v5645_v6, %v832_v34  ;;  %v4633_v37 = vpop.f32.mrb[9].mxu1 }
 0x28f   : > { %v885_v38 = vadd.f32 1.0, %v5008_v35  ;;  %v835_v40 = vpop.f32.mrb[10].mxu1 }
 0x290   : > { %v5010_v43 = vpop.eup %5009  ;;  %v859_v44 = vsub.f32 0.0, %v5661_v36  ;;  %v5665_v45 = vadd.f32 %v5645_v6, %v835_v40  ;;  %v4634_v48 = vpop.f32.mrb[11].mxu1 }
 0x291   : > { %5015 = vrcp.f32 %v885_v38  ;;  %v886_v49 = vadd.f32 1.0, %v5010_v43  ;;  %v939_v43 = vld [vmem:[#allocation2] sm:$0x80] }
 0x292   : > { %v873_v50 = vmul.f32 1.442695, %v859_v44  ;;  %v860_v33 = vsub.f32 0.0, %v5665_v45 }
 0x293   : > { %5017 = vrcp.f32 %v886_v49 }
 0x294   : > { %5019 = vpow2.f32 %v873_v50  ;;  %v875_v39 = vmul.f32 1.442695, %v860_v33 }
 0x295   : > { %v840_v51 = vpop.f32.mrb[12].mxu1 }
 0x296   : > { %v5012_v52 = vpop.eup %5011  ;;  %5021 = vpow2.f32 %v875_v39  ;;  %v5669_v54 = vadd.f32 %v5645_v6, %v840_v51  ;;  %v4637_v55 = vpop.f32.mrb[13].mxu1  ;;  %v946_v51 = vshrl.u32 %v939_v43, 16 }
 0x297   : > { %v887_v56 = vadd.f32 1.0, %v5012_v52  ;;  %v843_v57 = vpop.f32.mrb[14].mxu1 }
 0x298   : > { %v5014_v60 = vpop.eup %5013  ;;  %v861_v61 = vsub.f32 0.0, %v5669_v54  ;;  %v5673_v63 = vadd.f32 %v5645_v6, %v843_v57  ;;  %v4638_v4 = vpop.f32.mrb[15].mxu1 }
 0x299   : > { %5023 = vrcp.f32 %v887_v56  ;;  %v888_v47 = vadd.f32 1.0, %v5014_v60  ;;  %v948_v60 = vrot.slane %v946_v51, 7 }
 0x29a   : > { %v877_v53 = vmul.f32 1.442695, %v861_v61  ;;  %v862_v5 = vsub.f32 0.0, %v5673_v63 }
 0x29b   : > { %v5016_v7 = vpop.eup %5015  ;;  %5025 = vrcp.f32 %v888_v47 }
 0x29c   : > { %5027 = vpow2.f32 %v877_v53  ;;  %v879_v11 = vmul.f32 1.442695, %v862_v5  ;;  %v905_v12 = vmul.f32 %v5016_v7, %v5648_v8 }
 0x29d   : > { %v5018_v15 = vpop.eup %5017  ;;  %v848_v16 = vpop.f32.mrb[16].mxu1 }
 0x29e   : > { %v5020_v3 = vpop.eup %5019  ;;  %v906_v19 = vmul.f32 %v5018_v15, %v820_v18  ;;  %5029 = vpow2.f32 %v879_v11  ;;  %v5681_v20 = vadd.f32 %v5645_v6, %v848_v16  ;;  %v4641_v25 = vpop.f32.mrb[17].mxu1 }
 0x29f   : > { %v889_v27 = vadd.f32 1.0, %v5020_v3  ;;  %v851_v29 = vpop.f32.mrb[18].mxu1 }
 0x2a0   : > { %v5022_v31 = vpop.eup %5021  ;;  %v916_v22 = vpack.c.bf16 %v906_v19, %v905_v12  ;;  %v863_v26 = vsub.f32 0.0, %v5681_v20  ;;  %v5685_v32 = vadd.f32 %v5645_v6, %v851_v29  ;;  %v4642_v34 = vpop.f32.mrb[19].mxu1  ;;  %v4899_v6 = vld [vmem:[%s6907_s4 + $0x50] sm:$0xff]  }
 0x2a1   : > { %5031 = vrcp.f32 %v889_v27  ;;  %v890_v8 = vadd.f32 1.0, %v5022_v31  ;;  %4652 = vmatpush3.bf16.msra.mxu0 %v4899_v6 }
 0x2a2   : > { %921 = vst.msk [vmem:[#allocation2 + $0x8] sm:$0xff] %vm539_vm4, %v916_v22  ;;  %v881_v18 = vmul.f32 1.442695, %v863_v26  ;;  %v864_v35 = vsub.f32 0.0, %v5685_v32  ;;  %4653 = vmatprep.subr.bf16.mxu0 %v5304_v2 }
 0x2a3   : > { %v5024_v37 = vpop.eup %5023  ;;  %5033 = vrcp.f32 %v890_v8 }
 0x2a4   : > { %5035 = vpow2.f32 %v881_v18  ;;  %v883_v38 = vmul.f32 1.442695, %v864_v35  ;;  %v907_v48 = vmul.f32 %v5024_v37, %v5653_v21  ;;  %v4900_v21 = vld [vmem:[%s6907_s4 + $0x58] sm:$0xff]  }
 0x2a5   : > { %v5026_v40 = vpop.eup %5025  ;;  %4654 = vmatpush3.bf16.msra.mxu0 %v4900_v21 }
 0x2a6   : > { %v5028_v44 = vpop.eup %5027  ;;  %v908_v49 = vmul.f32 %v5026_v40, %v5657_v30  ;;  %5037 = vpow2.f32 %v883_v38  ;;  %4707 = vmatprep.subr.bf16.mxu0 %v5304_v2 }
 0x2a7   : > { %v891_v50 = vadd.f32 1.0, %v5028_v44 }
 0x2a8   : > { %v5030_v33 = vpop.eup %5029  ;;  %v917_v39 = vpack.c.bf16 %v908_v49, %v907_v48 }
 0x2a9   : > { %5039 = vrcp.f32 %v891_v50  ;;  %v892_v52 = vadd.f32 1.0, %v5030_v33  ;;  %v999_v55 = vld [vmem:[#allocation2 + $0x8] sm:$0xff] }
 0x2aa   : > { %922 = vst.msk [vmem:[#allocation2 + $0x10] sm:$0xff] %vm539_vm4, %v917_v39  ;;  %1009 = vrot.lane.b32.xlu0 %v999_v55, %s5306_s22  ;;  %v1036_v56 = vshrl.u32 %v999_v55, 16  ;;  %v1038_v57 = vshll.u32 %v999_v55, 16 }
 0x2ab   : > { %v5032_v30 = vpop.eup %5031  ;;  %5041 = vrcp.f32 %v892_v52 }
 0x2ac   : > { %v952_v61 = vrot.slane %v1036_v56, 7  ;;  %v909_v53 = vmul.f32 %v5032_v30, %v5661_v36  ;;  %v1040_v10 = vrot.slane %v1038_v57, 1 }
 0x2ad   : > { %v5034_v4 = vpop.eup %5033 }
 0x2ae   : > { %v5036_v47 = vpop.eup %5035  ;;  %v910_v5 = vmul.f32 %v5034_v4, %v5665_v45  ;;  %v955_v7 = vor.u32 %v1038_v57, %v952_v61  ;;  %v1041_v45 = vor.u32 %v1040_v10, %v1036_v56 }
 0x2af   : > { %v893_v11 = vadd.f32 1.0, %v5036_v47 }
 0x2b0   : > { %v5038_v15 = vpop.eup %5037  ;;  %v918_v16 = vpack.c.bf16 %v910_v5, %v909_v53  ;;  %v956_v3 = vsel %vm563_vm5, %v948_v60, %v955_v7 }
 0x2b1   : > { %5043 = vrcp.f32 %v893_v11  ;;  %v894_v12 = vadd.f32 1.0, %v5038_v15  ;;  %v1000_v19 = vld [vmem:[#allocation2 + $0x10] sm:$0xff]  ;;  %994 = vst.msk [vmem:[#allocation3] sm:$0xff] %vm539_vm4, %v956_v3 }
 0x2b2   : > { %923 = vst.msk [vmem:[#allocation2 + $0x18] sm:$0xff] %vm539_vm4, %v918_v16  ;;  %1011 = vrot.lane.b32.xlu0 %v1000_v19, %s5306_s22  ;;  %v1043_v25 = vshll.u32 %v1000_v19, 16  ;;  %v1047_v36 = vshrl.u32 %v1000_v19, 16 }
 0x2b3   : > { %v5040_v27 = vpop.eup %5039  ;;  %5045 = vrcp.f32 %v894_v12 }
 0x2b4   : > { %v1045_v29 = vrot.slane %v1043_v25, 1  ;;  %v960_v31 = vrot.slane %v1047_v36, 7  ;;  %v911_v26 = vmul.f32 %v5040_v27, %v5669_v54 }
 0x2b5   : > { %v5042_v22 = vpop.eup %5041 }
 0x2b6   : > { %v912_v34 = vmul.f32 %v5042_v22, %v5673_v63  ;;  %v1046_v8 = vsel %vm655_vm6, %v1041_v45, %v1045_v29  ;;  %v963_v18 = vor.u32 %v1043_v25, %v960_v31  ;;  %v1049_v6 = vor.u32 %v1047_v36, %v1045_v29 }
 0x2b7   : > { %1079 = vrot.lane.b32.xlu1 %v1046_v8, %s5307_s25 }
 0x2b8   : > { %v919_v35 = vpack.c.bf16 %v912_v34, %v911_v26  ;;  %v964_v37 = vsel %vm563_vm5, %v952_v61, %v963_v18  ;;  %v1034_v61 = vld [vmem:[#allocation2 + $0x30] sm:$0x1] }
 0x2b9   : > { %v1001_v38 = vld [vmem:[#allocation2 + $0x18] sm:$0xff]  ;;  %995 = vst.msk [vmem:[#allocation3 + $0x10] sm:$0xff] %vm539_vm4, %v964_v37  ;;  %v1075_v7 = vshll.u32 %v1034_v61, 16 }
 0x2ba   : > { %924 = vst.msk [vmem:[#allocation2 + $0x20] sm:$0xff] %vm539_vm4, %v919_v35  ;;  %1013 = vrot.lane.b32.xlu0 %v1001_v38, %s5306_s22  ;;  %v1051_v40 = vshll.u32 %v1001_v38, 16  ;;  %v1055_v43 = vshrl.u32 %v1001_v38, 16 }
 0x2bb   : > { %v5044_v54 = vpop.eup %5043  ;;  %v1077_v12 = vrot.slane %v1075_v7, 1 }
 0x2bc   : > { %v1053_v63 = vrot.slane %v1051_v40, 1  ;;  %v968_v44 = vrot.slane %v1055_v43, 7  ;;  %v913_v49 = vmul.f32 %v5044_v54, %v5681_v20 }
 0x2bd   : > { %v5046_v48 = vpop.eup %5045 }
 0x2be   : > { %v914_v50 = vmul.f32 %v5046_v48, %v5685_v32  ;;  %v1054_v33 = vsel %vm655_vm6, %v1049_v6, %v1053_v63  ;;  %v971_v39 = vor.u32 %v1051_v40, %v968_v44  ;;  %v1057_v20 = vor.u32 %v1055_v43, %v1053_v63  ;;  %v4901_v6 = vld [vmem:[%s6907_s4 + $0x60] sm:$0xff]   ;;  %v4902_v63 = vld [vmem:[%s6907_s4 + $0x68] sm:$0xff]  }
 0x2bf   : > { %1081 = vrot.lane.b32.xlu1 %v1054_v33, %s5307_s25  ;;  %4676 = vmatpush3.bf16.msra.mxu1 %v4901_v6  ;;  %v5775_v48 = vld [vmem:[%s6906_s3 + $0x3] ss:$0 sm:$0xff] }
 0x2c0   : > { %v920_v51 = vpack.c.bf16 %v914_v50, %v913_v49  ;;  %v972_v52 = vsel %vm563_vm5, %v960_v31, %v971_v39  ;;  %4677 = vmatprep.subr.bf16.mxu1 %v5304_v2 }
 0x2c1   : > { %v1002_v55 = vld [vmem:[#allocation2 + $0x20] sm:$0xff]  ;;  %996 = vst.msk [vmem:[#allocation3 + $0x20] sm:$0xff] %vm539_vm4, %v972_v52 }
 0x2c2   : > { %925 = vst.msk [vmem:[#allocation2 + $0x28] sm:$0xff] %vm539_vm4, %v920_v51  ;;  %1015 = vrot.lane.b32.xlu0 %v1002_v55, %s5306_s22  ;;  %v1059_v56 = vshll.u32 %v1002_v55, 16  ;;  %v1063_v21 = vshrl.u32 %v1002_v55, 16  ;;  %v4904_v55 = vld [vmem:[%s6907_s4 + $0x78] sm:$0xff]  }
 0x2c3   : > { %4678 = vmatpush3.bf16.msra.mxu1 %v4902_v63 }
 0x2c4   : > { %v1061_v30 = vrot.slane %v1059_v56, 1  ;;  %v976_v32 = vrot.slane %v1063_v21, 7  ;;  %4679 = vmatprep.subr.bf16.mxu1 %v5304_v2 }
 0x2c6   : > { %v1062_v57 = vsel %vm655_vm6, %v1057_v20, %v1061_v30  ;;  %v979_v60 = vor.u32 %v1059_v56, %v976_v32  ;;  %v1065_v11 = vor.u32 %v1063_v21, %v1061_v30 }
 0x2c7   : > { %1083 = vrot.lane.b32.xlu1 %v1062_v57, %s5307_s25 }
 0x2c8   : > { %v980_v4 = vsel %vm563_vm5, %v968_v44, %v979_v60  ;;  %v4903_v44 = vld [vmem:[%s6907_s4 + $0x70] sm:$0xff]  }
 0x2c9   : > { %v1003_v47 = vld [vmem:[#allocation2 + $0x28] sm:$0xff]  ;;  %997 = vst.msk [vmem:[#allocation3 + $0x30] sm:$0xff] %vm539_vm4, %v980_v4  ;;  %4680 = vmatpush3.bf16.msra.mxu1 %v4903_v44  ;;  %v1266_v4 = vld [vmem:[#allocation2] sm:$0x80] }
 0x2ca   : > { %1017 = vrot.lane.b32.xlu0 %v1003_v47, %s5306_s22  ;;  %v1067_v53 = vshll.u32 %v1003_v47, 16  ;;  %v1071_v5 = vshrl.u32 %v1003_v47, 16  ;;  %4681 = vmatprep.subr.bf16.mxu1 %v5304_v2  ;;  %v1273_v7 = vshrl.u32 %v1266_v4, 16 }
 0x2cc   : > { %v1069_v15 = vrot.slane %v1067_v53, 1  ;;  %v984_v16 = vrot.slane %v1071_v5, 7 }
 0x2cd   : > { %4682 = vmatpush3.bf16.msra.mxu1 %v4904_v55 }
 0x2ce   : > { %v1070_v10 = vsel %vm655_vm6, %v1065_v11, %v1069_v15  ;;  %v1073_v3 = vor.u32 %v1071_v5, %v1069_v15  ;;  %v987_v19 = vor.u32 %v1067_v53, %v984_v16  ;;  %4683 = vmatprep.subr.bf16.mxu1 %v5304_v2 }
 0x2cf   : > { %1085 = vrot.lane.b32.xlu1 %v1070_v10, %s5307_s25 }
 0x2d0   : > { %v988_v25 = vsel %vm563_vm5, %v976_v32, %v987_v19  ;;  %v1078_v36 = vsel %vm655_vm6, %v1073_v3, %v1077_v12 }
 0x2d1   : > { %998 = vst.msk [vmem:[#allocation3 + $0x40] sm:$0xff] %vm539_vm4, %v988_v25 }
 0x2d3   : > { %1087 = vrot.lane.b32.xlu1 %v1078_v36, %s5307_s25  ;;  %v1275_v36 = vrot.slane %v1273_v7, 7 }
 0x31c   : > { %v1010_v27 = vpop.permute.xlu0 %1009 }
 0x31d   : > { %1024 = vst.msk [vmem:[#allocation3] sm:$0xff] %vm643_vm7, %v1010_v27 }
 0x324   : > { %v1012_v45 = vpop.permute.xlu0 %1011 }
 0x325   : > { %1025 = vst.msk [vmem:[#allocation3 + $0x10] sm:$0xff] %vm643_vm7, %v1012_v45 }
 0x329   : > { %v1080_v29 = vpop.permute.xlu1 %1079 }
 0x32a   : > { %1094 = vst.msk [vmem:[#allocation3] sm:$0xff] %vm715_vm8, %v1080_v29 }
 0x32c   : > { %v1014_v31 = vpop.permute.xlu0 %1013 }
 0x32d   : > { %1026 = vst.msk [vmem:[#allocation3 + $0x20] sm:$0xff] %vm643_vm7, %v1014_v31 }
 0x331   : > { %v1082_v22 = vpop.permute.xlu1 %1081  ;;  %v1099_v26 = vld [vmem:[#allocation3] sm:$0xff] }
 0x332   : > { %1095 = vst.msk [vmem:[#allocation3 + $0x10] sm:$0xff] %vm715_vm8, %v1082_v22  ;;  %4656 = vmatmul.mubr.msk.bf16.vlgmr.msra.gmra.mrb[20].mxu0 %vm766_vm9, %v1099_v26 }
 0x333   : > { %4659 = vmatprep.mubr.msk.bf16.mxu0 %vm5305_vm2, %v5304_v2 }
 0x334   : > { %v1016_v34 = vpop.permute.xlu0 %1015 }
 0x335   : > { %1027 = vst.msk [vmem:[#allocation3 + $0x30] sm:$0xff] %vm643_vm7, %v1016_v34 }
 0x339   : > { %v1084_v8 = vpop.permute.xlu1 %1083  ;;  %v1100_v18 = vld [vmem:[#allocation3 + $0x10] sm:$0xff] }
 0x33a   : > { %1096 = vst.msk [vmem:[#allocation3 + $0x20] sm:$0xff] %vm715_vm8, %v1084_v8  ;;  %4660 = vmatmul.mubr.msk.bf16.gmra.mrb[24].mxu0 %vm766_vm9, %v1100_v18 }
 0x33b   : > { %4663 = vmatprep.mubr.msk.bf16.mxu0 %vm5305_vm2, %v5304_v2 }
 0x33c   : > { %v1018_v35 = vpop.permute.xlu0 %1017 }
 0x33d   : > { %1028 = vst.msk [vmem:[#allocation3 + $0x40] sm:$0xff] %vm643_vm7, %v1018_v35 }
 0x341   : > { %v1086_v37 = vpop.permute.xlu1 %1085  ;;  %v1101_v38 = vld [vmem:[#allocation3 + $0x20] sm:$0xff] }
 0x342   : > { %1097 = vst.msk [vmem:[#allocation3 + $0x30] sm:$0xff] %vm715_vm8, %v1086_v37  ;;  %4664 = vmatmul.mubr.msk.bf16.gmra.mrb[28].mxu0 %vm766_vm9, %v1101_v38 }
 0x343   : > { %4667 = vmatprep.mubr.msk.bf16.mxu0 %vm5305_vm2, %v5304_v2 }
 0x345   : > { %v1088_v40 = vpop.permute.xlu1 %1087 }
 0x346   : > { %1098 = vst.msk [vmem:[#allocation3 + $0x40] sm:$0xff] %vm715_vm8, %v1088_v40 }
 0x349   : > { %v1102_v43 = vld [vmem:[#allocation3 + $0x30] sm:$0xff] }
 0x34a   : > { %4668 = vmatmul.mubr.msk.bf16.gmra.mrb[32].mxu0 %vm766_vm9, %v1102_v43 }
 0x34b   : > { %4671 = vmatprep.mubr.msk.bf16.mxu0 %vm5305_vm2, %v5304_v2 }
 0x34d   : > { %v1103_v54 = vld [vmem:[#allocation3 + $0x40] sm:$0xff] }
 0x352   : > { %4672 = vmatmul.mubr.msk.bf16.gmra.mrb[36].mxu0 %vm766_vm9, %v1103_v54 }
 0x353   : > { %4719 = vmatprep.mubr.msk.bf16.mxu0 %vm5305_vm2, %v5304_v2 }
 0x405   : > { %v1193_v49 = vpop.f32.mrb[20].mxu0 }
 0x406   : > { %v1194_v50 = vadd.f32 %v5775_v48, %v1193_v49  ;;  %v4657_v33 = vpop.f32.mrb[21].mxu0 }
 0x407   : > { %v1196_v39 = vpop.f32.mrb[22].mxu0 }
 0x408   : > { %v1197_v51 = vadd.f32 %v5775_v48, %v1196_v39  ;;  %v4658_v52 = vpop.f32.mrb[23].mxu0  ;;  %v5783_v56 = vadd.f32 %v1194_v50, %v5497_v0 }
 0x40a   : > { %v5786_v21 = vadd.f32 %v1197_v51, %v5499_v1  ;;  %v4905_v1 = vld [vmem:[%s6907_s4 + $0x80] sm:$0xff]  }
 0x40b   : > { %4684 = vmatpush3.bf16.msra.mxu1 %v4905_v1 }
 0x40c   : > { %v1243_v20 = vpack.c.bf16 %v5786_v21, %v5783_v56  ;;  %4685 = vmatprep.subr.bf16.mxu1 %v5304_v2 }
 0x40d   : > { %v1201_v30 = vpop.f32.mrb[24].mxu0 }
 0x40e   : > { %1248 = vst.msk [vmem:[#allocation2 + $0x8] sm:$0xff] %vm539_vm4, %v1243_v20  ;;  %v1202_v32 = vadd.f32 %v5775_v48, %v1201_v30  ;;  %v4661_v57 = vpop.f32.mrb[25].mxu0 }
 0x40f   : > { %v1204_v60 = vpop.f32.mrb[26].mxu0 }
 0x410   : > { %v1205_v61 = vadd.f32 %v5775_v48, %v1204_v60  ;;  %v4662_v0 = vpop.f32.mrb[27].mxu0  ;;  %v5798_v47 = vadd.f32 %v1202_v32, %v5524_v23 }
 0x412   : > { %v5801_v53 = vadd.f32 %v1205_v61, %v5527_v24  ;;  %v4906_v24 = vld [vmem:[%s6907_s4 + $0x88] sm:$0xff]  }
 0x413   : > { %4686 = vmatpush3.bf16.msra.mxu1 %v4906_v24 }
 0x414   : > { %v1244_v5 = vpack.c.bf16 %v5801_v53, %v5798_v47 }
 0x415   : > { %v1209_v11 = vpop.f32.mrb[28].mxu0  ;;  %v1326_v15 = vld [vmem:[#allocation2 + $0x8] sm:$0xff] }
 0x416   : > { %1249 = vst.msk [vmem:[#allocation2 + $0x10] sm:$0xff] %vm539_vm4, %v1244_v5  ;;  %v1210_v16 = vadd.f32 %v5775_v48, %v1209_v11  ;;  %1336 = vrot.lane.b32.xlu0 %v1326_v15, %s5306_s22  ;;  %v4665_v23 = vpop.f32.mrb[29].mxu0  ;;  %v1363_v10 = vshrl.u32 %v1326_v15, 16  ;;  %v1365_v25 = vshll.u32 %v1326_v15, 16 }
 0x417   : > { %v1212_v3 = vpop.f32.mrb[30].mxu0 }
 0x418   : > { %v1213_v12 = vadd.f32 %v5775_v48, %v1212_v3  ;;  %v4666_v19 = vpop.f32.mrb[31].mxu0  ;;  %v1279_v27 = vrot.slane %v1363_v10, 7  ;;  %v5814_v45 = vadd.f32 %v1210_v16, %v5545_v41  ;;  %v1367_v26 = vrot.slane %v1365_v25, 1 }
 0x419   : > { %v1361_v19 = vld [vmem:[#allocation2 + $0x30] sm:$0x1] }
 0x41a   : > { %v5817_v29 = vadd.f32 %v1213_v12, %v5548_v42  ;;  %v1282_v31 = vor.u32 %v1365_v25, %v1279_v27  ;;  %v1368_v54 = vor.u32 %v1367_v26, %v1363_v10 }
 0x41c   : > { %v1245_v22 = vpack.c.bf16 %v5817_v29, %v5814_v45  ;;  %v1283_v34 = vsel %vm563_vm5, %v1275_v36, %v1282_v31 }
 0x41d   : > { %v1217_v8 = vpop.f32.mrb[32].mxu0  ;;  %v1327_v18 = vld [vmem:[#allocation2 + $0x10] sm:$0xff]  ;;  %1321 = vst.msk [vmem:[#allocation3] sm:$0xff] %vm539_vm4, %v1283_v34 }
 0x41e   : > { %1250 = vst.msk [vmem:[#allocation2 + $0x18] sm:$0xff] %vm539_vm4, %v1245_v22  ;;  %v1218_v35 = vadd.f32 %v5775_v48, %v1217_v8  ;;  %1338 = vrot.lane.b32.xlu0 %v1327_v18, %s5306_s22  ;;  %v4669_v41 = vpop.f32.mrb[33].mxu0  ;;  %v1370_v42 = vshll.u32 %v1327_v18, 16  ;;  %v1374_v37 = vshrl.u32 %v1327_v18, 16  ;;  %v1402_v22 = vshll.u32 %v1361_v19, 16 }
 0x41f   : > { %v1220_v38 = vpop.f32.mrb[34].mxu0 }
 0x420   : > { %v1221_v40 = vadd.f32 %v5775_v48, %v1220_v38  ;;  %v4670_v43 = vpop.f32.mrb[35].mxu0  ;;  %v1372_v6 = vrot.slane %v1370_v42, 1  ;;  %v1287_v63 = vrot.slane %v1374_v37, 7  ;;  %v5828_v44 = vadd.f32 %v1218_v35, %v5561_v58 }
 0x421   : > { %v1404_v41 = vrot.slane %v1402_v22, 1 }
 0x422   : > { %v5831_v49 = vadd.f32 %v1221_v40, %v5564_v59  ;;  %v1373_v50 = vsel %vm655_vm6, %v1368_v54, %v1372_v6  ;;  %v1290_v33 = vor.u32 %v1370_v42, %v1287_v63  ;;  %v1376_v61 = vor.u32 %v1374_v37, %v1372_v6 }
 0x423   : > { %1406 = vrot.lane.b32.xlu1 %v1373_v50, %s5307_s25 }
 0x424   : > { %v1246_v39 = vpack.c.bf16 %v5831_v49, %v5828_v44  ;;  %v1291_v51 = vsel %vm563_vm5, %v1279_v27, %v1290_v33 }
 0x425   : > { %v1225_v52 = vpop.f32.mrb[36].mxu0  ;;  %v1328_v55 = vld [vmem:[#allocation2 + $0x18] sm:$0xff]  ;;  %1322 = vst.msk [vmem:[#allocation3 + $0x10] sm:$0xff] %vm539_vm4, %v1291_v51 }
 0x426   : > { %1251 = vst.msk [vmem:[#allocation2 + $0x20] sm:$0xff] %vm539_vm4, %v1246_v39  ;;  %v1226_v58 = vadd.f32 %v5775_v48, %v1225_v52  ;;  %1340 = vrot.lane.b32.xlu0 %v1328_v55, %s5306_s22  ;;  %v4673_v59 = vpop.f32.mrb[37].mxu0  ;;  %v1378_v20 = vshll.u32 %v1328_v55, 16  ;;  %v1382_v30 = vshrl.u32 %v1328_v55, 16 }
 0x427   : > { %v1228_v32 = vpop.f32.mrb[38].mxu0 }
 0x428   : > { %v1229_v57 = vadd.f32 %v5775_v48, %v1228_v32  ;;  %v4674_v60 = vpop.f32.mrb[39].mxu0  ;;  %v1380_v0 = vrot.slane %v1378_v20, 1  ;;  %v1295_v4 = vrot.slane %v1382_v30, 7  ;;  %v5844_v1 = vadd.f32 %v1226_v58, %v5578_v13  ;;  %v4907_v32 = vld [vmem:[%s6907_s4 + $0x90] sm:$0xff]  }
 0x429   : > { %4708 = vmatpush3.bf16.msra.mxu0 %v4907_v32  ;;  %v4909_v60 = vld [vmem:[%s6907_s4 + $0xa0] sm:$0xff]  }
 0x42a   : > { %v5847_v5 = vadd.f32 %v1229_v57, %v5581_v14  ;;  %v1381_v7 = vsel %vm655_vm6, %v1376_v61, %v1380_v0  ;;  %v1298_v11 = vor.u32 %v1378_v20, %v1295_v4  ;;  %v1384_v23 = vor.u32 %v1382_v30, %v1380_v0  ;;  %v4908_v57 = vld [vmem:[%s6907_s4 + $0x98] sm:$0xff]   ;;  %4709 = vmatprep.subr.bf16.mxu0 %v5304_v2  ;;  %v5906_v61 = vld [vmem:[%s6906_s3 + $0x4] ss:$0 sm:$0xff] }
 0x42b   : > { %1408 = vrot.lane.b32.xlu1 %v1381_v7, %s5307_s25 }
 0x42c   : > { %v1247_v15 = vpack.c.bf16 %v5847_v5, %v5844_v1  ;;  %v1299_v48 = vsel %vm563_vm5, %v1287_v63, %v1298_v11 }
 0x42d   : > { %v1329_v16 = vld [vmem:[#allocation2 + $0x20] sm:$0xff]  ;;  %1323 = vst.msk [vmem:[#allocation3 + $0x20] sm:$0xff] %vm539_vm4, %v1299_v48  ;;  %4710 = vmatpush3.bf16.msra.mxu0 %v4908_v57 }
 0x42e   : > { %1252 = vst.msk [vmem:[#allocation2 + $0x28] sm:$0xff] %vm539_vm4, %v1247_v15  ;;  %1342 = vrot.lane.b32.xlu0 %v1329_v16, %s5306_s22  ;;  %v1386_v13 = vshll.u32 %v1329_v16, 16  ;;  %v1390_v14 = vshrl.u32 %v1329_v16, 16  ;;  %4711 = vmatprep.subr.bf16.mxu0 %v5304_v2 }
 0x430   : > { %v1388_v10 = vrot.slane %v1386_v13, 1  ;;  %v1303_v24 = vrot.slane %v1390_v14, 7 }
 0x431   : > { %4712 = vmatpush3.bf16.msra.mxu0 %v4909_v60 }
 0x432   : > { %v1389_v3 = vsel %vm655_vm6, %v1384_v23, %v1388_v10  ;;  %v1306_v12 = vor.u32 %v1386_v13, %v1303_v24  ;;  %v1392_v26 = vor.u32 %v1390_v14, %v1388_v10  ;;  %4713 = vmatprep.subr.bf16.mxu0 %v5304_v2 }
 0x433   : > { %1410 = vrot.lane.b32.xlu1 %v1389_v3, %s5307_s25 }
 0x434   : > { %v1307_v25 = vsel %vm563_vm5, %v1295_v4, %v1306_v12 }
 0x435   : > { %v1330_v36 = vld [vmem:[#allocation2 + $0x28] sm:$0xff]  ;;  %1324 = vst.msk [vmem:[#allocation3 + $0x30] sm:$0xff] %vm539_vm4, %v1307_v25 }
 0x436   : > { %1344 = vrot.lane.b32.xlu0 %v1330_v36, %s5306_s22  ;;  %v1394_v27 = vshll.u32 %v1330_v36, 16  ;;  %v1398_v31 = vshrl.u32 %v1330_v36, 16 }
 0x438   : > { %v1396_v34 = vrot.slane %v1394_v27, 1  ;;  %v1311_v8 = vrot.slane %v1398_v31, 7 }
 0x43a   : > { %v1397_v18 = vsel %vm655_vm6, %v1392_v26, %v1396_v34  ;;  %v1400_v35 = vor.u32 %v1398_v31, %v1396_v34  ;;  %v1314_v42 = vor.u32 %v1394_v27, %v1311_v8 }
 0x43b   : > { %1412 = vrot.lane.b32.xlu1 %v1397_v18, %s5307_s25 }
 0x43c   : > { %v1315_v37 = vsel %vm563_vm5, %v1303_v24, %v1314_v42  ;;  %v1405_v38 = vsel %vm655_vm6, %v1400_v35, %v1404_v41 }
 0x43d   : > { %1325 = vst.msk [vmem:[#allocation3 + $0x40] sm:$0xff] %vm539_vm4, %v1315_v37 }
 0x43f   : > { %1414 = vrot.lane.b32.xlu1 %v1405_v38, %s5307_s25 }
 0x488   : > { %v1337_v40 = vpop.permute.xlu0 %1336 }
 0x489   : > { %1351 = vst.msk [vmem:[#allocation3] sm:$0xff] %vm643_vm7, %v1337_v40 }
 0x490   : > { %v1339_v43 = vpop.permute.xlu0 %1338 }
 0x491   : > { %1352 = vst.msk [vmem:[#allocation3 + $0x10] sm:$0xff] %vm643_vm7, %v1339_v43 }
 0x495   : > { %v1407_v54 = vpop.permute.xlu1 %1406 }
 0x496   : > { %1421 = vst.msk [vmem:[#allocation3] sm:$0xff] %vm715_vm8, %v1407_v54 }
 0x498   : > { %v1341_v6 = vpop.permute.xlu0 %1340 }
 0x499   : > { %1353 = vst.msk [vmem:[#allocation3 + $0x20] sm:$0xff] %vm643_vm7, %v1341_v6 }
 0x49d   : > { %v1409_v63 = vpop.permute.xlu1 %1408  ;;  %v1426_v50 = vld [vmem:[#allocation3] sm:$0xff] }
 0x49e   : > { %1422 = vst.msk [vmem:[#allocation3 + $0x10] sm:$0xff] %vm715_vm8, %v1409_v63  ;;  %4688 = vmatmul.mubr.msk.bf16.vlgmr.msra.gmra.mrb[20].mxu1 %vm766_vm9, %v1426_v50 }
 0x49f   : > { %4691 = vmatprep.mubr.msk.bf16.mxu1 %vm5305_vm2, %v5304_v2 }
 0x4a0   : > { %v1343_v33 = vpop.permute.xlu0 %1342 }
 0x4a1   : > { %1354 = vst.msk [vmem:[#allocation3 + $0x30] sm:$0xff] %vm643_vm7, %v1343_v33 }
 0x4a5   : > { %v1411_v39 = vpop.permute.xlu1 %1410  ;;  %v1427_v51 = vld [vmem:[#allocation3 + $0x10] sm:$0xff] }
 0x4a6   : > { %1423 = vst.msk [vmem:[#allocation3 + $0x20] sm:$0xff] %vm715_vm8, %v1411_v39  ;;  %4692 = vmatmul.mubr.msk.bf16.gmra.mrb[24].mxu1 %vm766_vm9, %v1427_v51 }
 0x4a7   : > { %4695 = vmatprep.mubr.msk.bf16.mxu1 %vm5305_vm2, %v5304_v2 }
 0x4a8   : > { %v1345_v52 = vpop.permute.xlu0 %1344 }
 0x4a9   : > { %1355 = vst.msk [vmem:[#allocation3 + $0x40] sm:$0xff] %vm643_vm7, %v1345_v52 }
 0x4ad   : > { %v1413_v55 = vpop.permute.xlu1 %1412  ;;  %v1428_v58 = vld [vmem:[#allocation3 + $0x20] sm:$0xff] }
 0x4ae   : > { %1424 = vst.msk [vmem:[#allocation3 + $0x30] sm:$0xff] %vm715_vm8, %v1413_v55  ;;  %4696 = vmatmul.mubr.msk.bf16.gmra.mrb[28].mxu1 %vm766_vm9, %v1428_v58 }
 0x4af   : > { %4699 = vmatprep.mubr.msk.bf16.mxu1 %vm5305_vm2, %v5304_v2 }
 0x4b1   : > { %v1415_v59 = vpop.permute.xlu1 %1414 }
 0x4b2   : > { %1425 = vst.msk [vmem:[#allocation3 + $0x40] sm:$0xff] %vm715_vm8, %v1415_v59 }
 0x4b5   : > { %v1429_v20 = vld [vmem:[#allocation3 + $0x30] sm:$0xff] }
 0x4b6   : > { %4700 = vmatmul.mubr.msk.bf16.gmra.mrb[32].mxu1 %vm766_vm9, %v1429_v20 }
 0x4b7   : > { %4703 = vmatprep.mubr.msk.bf16.mxu1 %vm5305_vm2, %v5304_v2 }
 0x4b9   : > { %v1430_v30 = vld [vmem:[#allocation3 + $0x40] sm:$0xff] }
 0x4be   : > { %4704 = vmatmul.mubr.msk.bf16.gmra.mrb[36].mxu1 %vm766_vm9, %v1430_v30 }
 0x571   : > { %v1520_v0 = vpop.f32.mrb[20].mxu1 }
 0x572   : > { %v5909_v4 = vadd.f32 %v5906_v61, %v1520_v0  ;;  %v4689_v7 = vpop.f32.mrb[21].mxu1 }
 0x573   : > { %v1523_v11 = vpop.f32.mrb[22].mxu1 }
 0x574   : > { %v1559_v15 = vsub.f32 0.0, %v5909_v4  ;;  %v1524_v48 = vadd.f32 %v5906_v61, %v1523_v11  ;;  %v4690_v16 = vpop.f32.mrb[23].mxu1 }
 0x575   : > { %v4910_v16 = vld [vmem:[%s6907_s4 + $0xa8] sm:$0xff]  }
 0x576   : > { %v1569_v13 = vmul.f32 1.442695, %v1559_v15  ;;  %v1560_v14 = vsub.f32 0.0, %v1524_v48  ;;  %4714 = vmatpush3.bf16.msra.mxu0 %v4910_v16 }
 0x577   : > { %4715 = vmatprep.subr.bf16.mxu0 %v5304_v2 }
 0x578   : > { %5047 = vpow2.f32 %v1569_v13  ;;  %v1571_v23 = vmul.f32 1.442695, %v1560_v14 }
 0x579   : > { %v1528_v10 = vpop.f32.mrb[24].mxu1 }
 0x57a   : > { %5049 = vpow2.f32 %v1571_v23  ;;  %v5914_v24 = vadd.f32 %v5906_v61, %v1528_v10  ;;  %v4693_v3 = vpop.f32.mrb[25].mxu1 }
 0x57b   : > { %v1531_v12 = vpop.f32.mrb[26].mxu1 }
 0x57c   : > { %v1561_v19 = vsub.f32 0.0, %v5914_v24  ;;  %v5918_v25 = vadd.f32 %v5906_v61, %v1531_v12  ;;  %v4694_v36 = vpop.f32.mrb[27].mxu1 }
 0x57e   : > { %v1573_v27 = vmul.f32 1.442695, %v1561_v19  ;;  %v1562_v31 = vsub.f32 0.0, %v5918_v25 }
 0x580   : > { %5051 = vpow2.f32 %v1573_v27  ;;  %v1575_v22 = vmul.f32 1.442695, %v1562_v31 }
 0x581   : > { %v1536_v26 = vpop.f32.mrb[28].mxu1 }
 0x582   : > { %v5048_v34 = vpop.eup %5047  ;;  %5053 = vpow2.f32 %v1575_v22  ;;  %v5922_v8 = vadd.f32 %v5906_v61, %v1536_v26  ;;  %v4697_v18 = vpop.f32.mrb[29].mxu1 }
 0x583   : > { %v1589_v35 = vadd.f32 1.0, %v5048_v34  ;;  %v1539_v41 = vpop.f32.mrb[30].mxu1 }
 0x584   : > { %v5050_v42 = vpop.eup %5049  ;;  %v1563_v37 = vsub.f32 0.0, %v5922_v8  ;;  %v5926_v38 = vadd.f32 %v5906_v61, %v1539_v41  ;;  %v4698_v40 = vpop.f32.mrb[31].mxu1 }
 0x585   : > { %5055 = vrcp.f32 %v1589_v35  ;;  %v1590_v43 = vadd.f32 1.0, %v5050_v42  ;;  %v1643_v42 = vld [vmem:[#allocation2] sm:$0x80] }
 0x586   : > { %v1577_v54 = vmul.f32 1.442695, %v1563_v37  ;;  %v1564_v6 = vsub.f32 0.0, %v5926_v38 }
 0x587   : > { %5057 = vrcp.f32 %v1590_v43 }
 0x588   : > { %5059 = vpow2.f32 %v1577_v54  ;;  %v1579_v63 = vmul.f32 1.442695, %v1564_v6 }
 0x589   : > { %v1544_v50 = vpop.f32.mrb[32].mxu1 }
 0x58a   : > { %v5052_v33 = vpop.eup %5051  ;;  %5061 = vpow2.f32 %v1579_v63  ;;  %v5930_v39 = vadd.f32 %v5906_v61, %v1544_v50  ;;  %v4701_v51 = vpop.f32.mrb[33].mxu1  ;;  %v1650_v50 = vshrl.u32 %v1643_v42, 16 }
 0x58b   : > { %v1591_v52 = vadd.f32 1.0, %v5052_v33  ;;  %v1547_v55 = vpop.f32.mrb[34].mxu1 }
 0x58c   : > { %v5054_v58 = vpop.eup %5053  ;;  %v1565_v59 = vsub.f32 0.0, %v5930_v39  ;;  %v5934_v20 = vadd.f32 %v5906_v61, %v1547_v55  ;;  %v4702_v30 = vpop.f32.mrb[35].mxu1 }
 0x58d   : > { %5063 = vrcp.f32 %v1591_v52  ;;  %v1592_v32 = vadd.f32 1.0, %v5054_v58  ;;  %v1652_v58 = vrot.slane %v1650_v50, 7 }
 0x58e   : > { %v1581_v57 = vmul.f32 1.442695, %v1565_v59  ;;  %v1566_v60 = vsub.f32 0.0, %v5934_v20 }
 0x58f   : > { %v5056_v0 = vpop.eup %5055  ;;  %5065 = vrcp.f32 %v1592_v32 }
 0x590   : > { %5067 = vpow2.f32 %v1581_v57  ;;  %v1583_v7 = vmul.f32 1.442695, %v1566_v60  ;;  %v1609_v14 = vmul.f32 %v5056_v0, %v5909_v4 }
 0x591   : > { %v5058_v11 = vpop.eup %5057  ;;  %v1552_v15 = vpop.f32.mrb[36].mxu1 }
 0x592   : > { %v5060_v13 = vpop.eup %5059  ;;  %v1610_v23 = vmul.f32 %v5058_v11, %v1524_v48  ;;  %5069 = vpow2.f32 %v1583_v7  ;;  %v5942_v10 = vadd.f32 %v5906_v61, %v1552_v15  ;;  %v4705_v3 = vpop.f32.mrb[37].mxu1 }
 0x593   : > { %v1593_v12 = vadd.f32 1.0, %v5060_v13  ;;  %v1555_v19 = vpop.f32.mrb[38].mxu1 }
 0x594   : > { %v5062_v36 = vpop.eup %5061  ;;  %v1620_v27 = vpack.c.bf16 %v1610_v23, %v1609_v14  ;;  %v1567_v31 = vsub.f32 0.0, %v5942_v10  ;;  %v5946_v22 = vadd.f32 %v5906_v61, %v1555_v19  ;;  %v4706_v26 = vpop.f32.mrb[39].mxu1  ;;  %v4911_v61 = vld [vmem:[%s6907_s4 + $0xb0] sm:$0xff]  }
 0x595   : > { %5071 = vrcp.f32 %v1593_v12  ;;  %v1594_v4 = vadd.f32 1.0, %v5062_v36  ;;  %4716 = vmatpush3.bf16.msra.mxu0 %v4911_v61 }
 0x596   : > { %1625 = vst.msk [vmem:[#allocation2 + $0x8] sm:$0xff] %vm539_vm4, %v1620_v27  ;;  %v1585_v48 = vmul.f32 1.442695, %v1567_v31  ;;  %v1568_v34 = vsub.f32 0.0, %v5946_v22  ;;  %4717 = vmatprep.subr.bf16.mxu0 %v5304_v2 }
 0x597   : > { %v5064_v18 = vpop.eup %5063  ;;  %5073 = vrcp.f32 %v1594_v4 }
 0x598   : > { %5075 = vpow2.f32 %v1585_v48  ;;  %v1587_v35 = vmul.f32 1.442695, %v1568_v34  ;;  %v1611_v40 = vmul.f32 %v5064_v18, %v5914_v24  ;;  %v4912_v24 = vld [vmem:[%s6907_s4 + $0xb8] sm:$0xff]  }
 0x599   : > { %v5066_v41 = vpop.eup %5065  ;;  %4718 = vmatpush3.bf16.msra.mxu0 %v4912_v24 }
 0x59a   : > { %v5068_v37 = vpop.eup %5067  ;;  %v1612_v43 = vmul.f32 %v5066_v41, %v5918_v25  ;;  %5077 = vpow2.f32 %v1587_v35 }
 0x59b   : > { %v1595_v54 = vadd.f32 1.0, %v5068_v37 }
 0x59c   : > { %v5070_v6 = vpop.eup %5069  ;;  %v1621_v63 = vpack.c.bf16 %v1612_v43, %v1611_v40 }
 0x59d   : > { %5079 = vrcp.f32 %v1595_v54  ;;  %v1596_v33 = vadd.f32 1.0, %v5070_v6  ;;  %v1703_v51 = vld [vmem:[#allocation2 + $0x8] sm:$0xff] }
 0x59e   : > { %1626 = vst.msk [vmem:[#allocation2 + $0x10] sm:$0xff] %vm539_vm4, %v1621_v63  ;;  %1713 = vrot.lane.b32.xlu0 %v1703_v51, %s5306_s22  ;;  %v1740_v52 = vshrl.u32 %v1703_v51, 16  ;;  %v1742_v55 = vshll.u32 %v1703_v51, 16 }
 0x59f   : > { %v5072_v25 = vpop.eup %5071  ;;  %5081 = vrcp.f32 %v1596_v33 }
 0x5a0   : > { %v1656_v59 = vrot.slane %v1740_v52, 7  ;;  %v1613_v57 = vmul.f32 %v5072_v25, %v5922_v8  ;;  %v1744_v16 = vrot.slane %v1742_v55, 1 }
 0x5a1   : > { %v5074_v30 = vpop.eup %5073 }
 0x5a2   : > { %v5076_v32 = vpop.eup %5075  ;;  %v1614_v60 = vmul.f32 %v5074_v30, %v5926_v38  ;;  %v1659_v0 = vor.u32 %v1742_v55, %v1656_v59  ;;  %v1745_v38 = vor.u32 %v1744_v16, %v1740_v52 }
 0x5a3   : > { %v1597_v7 = vadd.f32 1.0, %v5076_v32 }
 0x5a4   : > { %v5078_v11 = vpop.eup %5077  ;;  %v1622_v15 = vpack.c.bf16 %v1614_v60, %v1613_v57  ;;  %v1660_v13 = vsel %vm563_vm5, %v1652_v58, %v1659_v0 }
 0x5a5   : > { %5083 = vrcp.f32 %v1597_v7  ;;  %v1598_v14 = vadd.f32 1.0, %v5078_v11  ;;  %v1704_v23 = vld [vmem:[#allocation2 + $0x10] sm:$0xff]  ;;  %1698 = vst.msk [vmem:[#allocation3] sm:$0xff] %vm539_vm4, %v1660_v13 }
 0x5a6   : > { %1627 = vst.msk [vmem:[#allocation2 + $0x18] sm:$0xff] %vm539_vm4, %v1622_v15  ;;  %1715 = vrot.lane.b32.xlu0 %v1704_v23, %s5306_s22  ;;  %v1747_v3 = vshll.u32 %v1704_v23, 16  ;;  %v1751_v8 = vshrl.u32 %v1704_v23, 16 }
 0x5a7   : > { %v5080_v12 = vpop.eup %5079  ;;  %5085 = vrcp.f32 %v1598_v14 }
 0x5a8   : > { %v1749_v19 = vrot.slane %v1747_v3, 1  ;;  %v1664_v36 = vrot.slane %v1751_v8, 7  ;;  %v1615_v31 = vmul.f32 %v5080_v12, %v5930_v39 }
 0x5a9   : > { %v5082_v27 = vpop.eup %5081 }
 0x5aa   : > { %v1616_v26 = vmul.f32 %v5082_v27, %v5934_v20  ;;  %v1750_v4 = vsel %vm655_vm6, %v1745_v38, %v1749_v19  ;;  %v1667_v48 = vor.u32 %v1747_v3, %v1664_v36  ;;  %v1753_v61 = vor.u32 %v1751_v8, %v1749_v19 }
 0x5ab   : > { %1783 = vrot.lane.b32.xlu1 %v1750_v4, %s5307_s25 }
 0x5ac   : > { %v1623_v34 = vpack.c.bf16 %v1616_v26, %v1615_v31  ;;  %v1668_v18 = vsel %vm563_vm5, %v1656_v59, %v1667_v48  ;;  %v1738_v59 = vld [vmem:[#allocation2 + $0x30] sm:$0x1] }
 0x5ad   : > { %v1705_v35 = vld [vmem:[#allocation2 + $0x18] sm:$0xff]  ;;  %1699 = vst.msk [vmem:[#allocation3 + $0x10] sm:$0xff] %vm539_vm4, %v1668_v18  ;;  %v1779_v0 = vshll.u32 %v1738_v59, 16 }
 0x5ae   : > { %1628 = vst.msk [vmem:[#allocation2 + $0x20] sm:$0xff] %vm539_vm4, %v1623_v34  ;;  %1717 = vrot.lane.b32.xlu0 %v1705_v35, %s5306_s22  ;;  %v1755_v41 = vshll.u32 %v1705_v35, 16  ;;  %v1759_v42 = vshrl.u32 %v1705_v35, 16 }
 0x5af   : > { %v5084_v39 = vpop.eup %5083  ;;  %v1781_v14 = vrot.slane %v1779_v0, 1  ;;  %v2011_v0 = vld [vmem:[#allocation2] sm:$0x80] }
 0x5b0   : > { %v1757_v20 = vrot.slane %v1755_v41, 1  ;;  %v1672_v37 = vrot.slane %v1759_v42, 7  ;;  %v1617_v43 = vmul.f32 %v5084_v39, %v5942_v10 }
 0x5b1   : > { %v5086_v40 = vpop.eup %5085 }
 0x5b2   : > { %v1618_v54 = vmul.f32 %v5086_v40, %v5946_v22  ;;  %v1758_v6 = vsel %vm655_vm6, %v1753_v61, %v1757_v20  ;;  %v1675_v63 = vor.u32 %v1755_v41, %v1672_v37  ;;  %v1761_v10 = vor.u32 %v1759_v42, %v1757_v20  ;;  %v4913_v61 = vld [vmem:[%s6908_s5] sm:$0xff]   ;;  %v4915_v40 = vld [vmem:[%s6908_s5 + $0x10] sm:$0xff]  }
 0x5b3   : > { %1785 = vrot.lane.b32.xlu1 %v1758_v6, %s5307_s25  ;;  %v5308_v20 = vmov 0   ;;  %v4918_v6 = vld [vmem:[%s6908_s5 + $0x28] sm:$0xff]  }
 0x5b4   : > { %v1624_v50 = vpack.c.bf16 %v1618_v54, %v1617_v43  ;;  %v1676_v33 = vsel %vm563_vm5, %v1664_v36, %v1675_v63  ;;  %2253 = vmatprep.subr.bf16.mxu1 %v5308_v20  ;;  %2689 = vmatprep.subr.bf16.mxu0 %v5308_v20  ;;  %v4916_v43 = vld [vmem:[%s6908_s5 + $0x18] sm:$0xff]   ;;  %v4917_v54 = vld [vmem:[%s6908_s5 + $0x20] sm:$0xff]  }
 0x5b5   : > { %v1706_v51 = vld [vmem:[#allocation2 + $0x20] sm:$0xff]  ;;  %1700 = vst.msk [vmem:[#allocation3 + $0x20] sm:$0xff] %vm539_vm4, %v1676_v33  ;;  %2254 = vmatpush1.bf16.msra.mxu1 %v4913_v61  ;;  %v6047_v63 = vld [vmem:[%s6906_s3 + $0x5] ss:$0 sm:$0xff] }
 0x5b6   : > { %1629 = vst.msk [vmem:[#allocation2 + $0x28] sm:$0xff] %vm539_vm4, %v1624_v50  ;;  %1719 = vrot.lane.b32.xlu0 %v1706_v51, %s5306_s22  ;;  %v1763_v52 = vshll.u32 %v1706_v51, 16  ;;  %v1767_v24 = vshrl.u32 %v1706_v51, 16  ;;  %2255 = vmatprep.subr.bf16.mxu1 %v5308_v20 }
 0x5b8   : > { %v1765_v25 = vrot.slane %v1763_v52, 1  ;;  %v1680_v22 = vrot.slane %v1767_v24, 7 }
 0x5ba   : > { %v1766_v55 = vsel %vm655_vm6, %v1761_v10, %v1765_v25  ;;  %v1683_v58 = vor.u32 %v1763_v52, %v1680_v22  ;;  %v1769_v7 = vor.u32 %v1767_v24, %v1765_v25 }
 0x5bb   : > { %1787 = vrot.lane.b32.xlu1 %v1766_v55, %s5307_s25 }
 0x5bc   : > { %v1684_v30 = vsel %vm563_vm5, %v1672_v37, %v1683_v58  ;;  %v4914_v37 = vld [vmem:[%s6908_s5 + $0x8] sm:$0xff]   ;;  %v4919_v58 = vld [vmem:[%s6908_s5 + $0x30] sm:$0xff]  }
 0x5bd   : > { %v1707_v32 = vld [vmem:[#allocation2 + $0x28] sm:$0xff]  ;;  %1701 = vst.msk [vmem:[#allocation3 + $0x30] sm:$0xff] %vm539_vm4, %v1684_v30  ;;  %2256 = vmatpush1.bf16.msra.mxu1 %v4914_v37 }
 0x5be   : > { %1721 = vrot.lane.b32.xlu0 %v1707_v32, %s5306_s22  ;;  %v1771_v57 = vshll.u32 %v1707_v32, 16  ;;  %v1775_v60 = vshrl.u32 %v1707_v32, 16  ;;  %2257 = vmatprep.subr.bf16.mxu1 %v5308_v20 }
 0x5c0   : > { %v1773_v11 = vrot.slane %v1771_v57, 1  ;;  %v1688_v15 = vrot.slane %v1775_v60, 7 }
 0x5c1   : > { %2258 = vmatpush1.bf16.msra.mxu1 %v4915_v40 }
 0x5c2   : > { %v1774_v16 = vsel %vm655_vm6, %v1769_v7, %v1773_v11  ;;  %v1777_v13 = vor.u32 %v1775_v60, %v1773_v11  ;;  %v1691_v23 = vor.u32 %v1771_v57, %v1688_v15  ;;  %2259 = vmatprep.subr.bf16.mxu1 %v5308_v20  ;;  %v1977_v15 = vld [vmem:[#allocation2] sm:$0xc0] }
 0x5c3   : > { %1789 = vrot.lane.b32.xlu1 %v1774_v16, %s5307_s25 }
 0x5c4   : > { %v1692_v3 = vsel %vm563_vm5, %v1680_v22, %v1691_v23  ;;  %v1782_v8 = vsel %vm655_vm6, %v1777_v13, %v1781_v14  ;;  %v2024_v13 = vrot.slane %v2011_v0, 7  ;;  %v4921_v14 = vld [vmem:[%s6908_s5 + $0x40] sm:$0xff]  }
 0x5c5   : > { %1702 = vst.msk [vmem:[#allocation3 + $0x40] sm:$0xff] %vm539_vm4, %v1692_v3  ;;  %2260 = vmatpush1.bf16.msra.mxu1 %v4916_v43 }
 0x5c6   : > { %2261 = vmatprep.subr.bf16.mxu1 %v5308_v20 }
 0x5c7   : > { %1791 = vrot.lane.b32.xlu1 %v1782_v8, %s5307_s25 }
 0x5c9   : > { %2262 = vmatpush1.bf16.msra.mxu1 %v4917_v54 }
 0x5ca   : > { %2263 = vmatprep.subr.bf16.mxu1 %v5308_v20 }
 0x5cd   : > { %2264 = vmatpush1.bf16.msra.mxu1 %v4918_v6 }
 0x5ce   : > { %2265 = vmatprep.subr.bf16.mxu1 %v5308_v20 }
 0x5d1   : > { %2266 = vmatpush1.bf16.msra.mxu1 %v4919_v58 }
 0x5d2   : > { %2267 = vmatprep.subr.bf16.mxu1 %v5308_v20 }
 0x610   : > { %v1714_v12 = vpop.permute.xlu0 %1713 }
 0x611   : > { %1728 = vst.msk [vmem:[#allocation3] sm:$0xff] %vm643_vm7, %v1714_v12 }
 0x618   : > { %v1716_v38 = vpop.permute.xlu0 %1715 }
 0x619   : > { %1729 = vst.msk [vmem:[#allocation3 + $0x10] sm:$0xff] %vm643_vm7, %v1716_v38 }
 0x61d   : > { %v1784_v19 = vpop.permute.xlu1 %1783 }
 0x61e   : > { %1798 = vst.msk [vmem:[#allocation3] sm:$0xff] %vm715_vm8, %v1784_v19 }
 0x620   : > { %v1718_v36 = vpop.permute.xlu0 %1717 }
 0x621   : > { %1730 = vst.msk [vmem:[#allocation3 + $0x20] sm:$0xff] %vm643_vm7, %v1718_v36 }
 0x625   : > { %v1786_v27 = vpop.permute.xlu1 %1785  ;;  %v1803_v31 = vld [vmem:[#allocation3] sm:$0xff] }
 0x626   : > { %1799 = vst.msk [vmem:[#allocation3 + $0x10] sm:$0xff] %vm715_vm8, %v1786_v27  ;;  %4720 = vmatmul.mubr.msk.bf16.vlgmr.msra.gmra.mrb[40].mxu0 %vm766_vm9, %v1803_v31 }
 0x627   : > { %4723 = vmatprep.mubr.msk.bf16.mxu0 %vm5305_vm2, %v5304_v2 }
 0x628   : > { %v1720_v26 = vpop.permute.xlu0 %1719 }
 0x629   : > { %1731 = vst.msk [vmem:[#allocation3 + $0x30] sm:$0xff] %vm643_vm7, %v1720_v26  ;;  %v4922_v26 = vld [vmem:[%s6908_s5 + $0x48] sm:$0xff]  }
 0x62d   : > { %v1788_v4 = vpop.permute.xlu1 %1787  ;;  %v1804_v48 = vld [vmem:[#allocation3 + $0x10] sm:$0xff] }
 0x62e   : > { %1800 = vst.msk [vmem:[#allocation3 + $0x20] sm:$0xff] %vm715_vm8, %v1788_v4  ;;  %4724 = vmatmul.mubr.msk.bf16.gmra.mrb[44].mxu0 %vm766_vm9, %v1804_v48 }
 0x62f   : > { %4727 = vmatprep.mubr.msk.bf16.mxu0 %vm5305_vm2, %v5304_v2 }
 0x630   : > { %v1722_v34 = vpop.permute.xlu0 %1721 }
 0x631   : > { %1732 = vst.msk [vmem:[#allocation3 + $0x40] sm:$0xff] %vm643_vm7, %v1722_v34 }
 0x635   : > { %v1790_v18 = vpop.permute.xlu1 %1789  ;;  %v1805_v35 = vld [vmem:[#allocation3 + $0x20] sm:$0xff] }
 0x636   : > { %1801 = vst.msk [vmem:[#allocation3 + $0x30] sm:$0xff] %vm715_vm8, %v1790_v18  ;;  %4728 = vmatmul.mubr.msk.bf16.gmra.mrb[48].mxu0 %vm766_vm9, %v1805_v35 }
 0x637   : > { %4731 = vmatprep.mubr.msk.bf16.mxu0 %vm5305_vm2, %v5304_v2 }
 0x639   : > { %v1792_v41 = vpop.permute.xlu1 %1791 }
 0x63a   : > { %1802 = vst.msk [vmem:[#allocation3 + $0x40] sm:$0xff] %vm715_vm8, %v1792_v41 }
 0x63d   : > { %v1806_v42 = vld [vmem:[#allocation3 + $0x30] sm:$0xff] }
 0x63e   : > { %4732 = vmatmul.mubr.msk.bf16.gmra.mrb[52].mxu0 %vm766_vm9, %v1806_v42 }
 0x63f   : > { %4735 = vmatprep.mubr.msk.bf16.mxu0 %vm5305_vm2, %v5304_v2 }
 0x641   : > { %v1807_v39 = vld [vmem:[#allocation3 + $0x40] sm:$0xff] }
 0x646   : > { %4736 = vmatmul.mubr.msk.bf16.gmra.mrb[56].mxu0 %vm766_vm9, %v1807_v39 }
 0x6f9   : > { %v1897_v50 = vpop.f32.mrb[40].mxu0 }
 0x6fa   : > { %v1898_v33 = vadd.f32 %v6047_v63, %v1897_v50  ;;  %v4721_v51 = vpop.f32.mrb[41].mxu0 }
 0x6fb   : > { %v1900_v52 = vpop.f32.mrb[42].mxu0 }
 0x6fc   : > { %v1901_v24 = vadd.f32 %v6047_v63, %v1900_v52  ;;  %v4722_v10 = vpop.f32.mrb[43].mxu0  ;;  %v6052_v25 = vadd.f32 %v1898_v33, %v5783_v56  ;;  %v4920_v56 = vld [vmem:[%s6908_s5 + $0x38] sm:$0xff]  }
 0x6fd   : > { %2268 = vmatpush1.bf16.msra.mxu1 %v4920_v56 }
 0x6fe   : > { %v6055_v22 = vadd.f32 %v1901_v24, %v5786_v21  ;;  %2269 = vmatprep.subr.bf16.mxu1 %v5308_v20 }
 0x700   : > { %v1947_v55 = vpack.c.bf16 %v6055_v22, %v6052_v25 }
 0x701   : > { %v1905_v59 = vpop.f32.mrb[44].mxu0  ;;  %2270 = vmatpush1.bf16.msra.mxu1 %v4921_v14 }
 0x702   : > { %1952 = vst.msk [vmem:[#allocation2 + $0x8] sm:$0xff] %vm539_vm4, %v1947_v55  ;;  %v1906_v30 = vadd.f32 %v6047_v63, %v1905_v59  ;;  %v4725_v32 = vpop.f32.mrb[45].mxu0  ;;  %2271 = vmatprep.subr.bf16.mxu1 %v5308_v20 }
 0x703   : > { %v1908_v21 = vpop.f32.mrb[46].mxu0 }
 0x704   : > { %v1909_v57 = vadd.f32 %v6047_v63, %v1908_v21  ;;  %v4726_v60 = vpop.f32.mrb[47].mxu0  ;;  %v6070_v7 = vadd.f32 %v1906_v30, %v5798_v47  ;;  %v1990_v47 = vrot.slane %v1977_v15, 6 }
 0x705   : > { %2272 = vmatpush1.bf16.msra.mxu1 %v4922_v26 }
 0x706   : > { %v6073_v11 = vadd.f32 %v1909_v57, %v5801_v53  ;;  %3075 = vmatprep.subr.bf16.mxu1 %v5308_v20 }
 0x708   : > { %v1948_v16 = vpack.c.bf16 %v6073_v11, %v6070_v7 }
 0x709   : > { %v1913_v23 = vpop.f32.mrb[48].mxu0  ;;  %v2055_v3 = vld [vmem:[#allocation2 + $0x8] sm:$0xff] }
 0x70a   : > { %1953 = vst.msk [vmem:[#allocation2 + $0x10] sm:$0xff] %vm539_vm4, %v1948_v16  ;;  %v1914_v53 = vadd.f32 %v6047_v63, %v1913_v23  ;;  %2065 = vrot.lane.b32.xlu1 %v2055_v3, %s5307_s25  ;;  %v4729_v8 = vpop.f32.mrb[49].mxu0  ;;  %v2025_v12 = vrot.slane %v2055_v3, 7  ;;  %v1991_v19 = vrot.slane %v2055_v3, 6  ;;  %v2085_v18 = vld [vmem:[#allocation2 + $0x8] sm:$0xfe] }
 0x70b   : > { %v1916_v38 = vpop.f32.mrb[50].mxu0  ;;  %v2130_v41 = vld [vmem:[#allocation2 + $0x8] sm:$0xfc]  ;;  %v2098_v61 = vrot.slane %v2085_v18, 1  ;;  %v2135_v18 = vld [vmem:[#allocation2 + $0x30] sm:$0x3] }
 0x70c   : > { %v1917_v36 = vadd.f32 %v6047_v63, %v1916_v38  ;;  %v4730_v27 = vpop.f32.mrb[51].mxu0  ;;  %v2026_v31 = vsel %vm2023_vm10, %v2024_v13, %v2025_v12  ;;  %v1992_v4 = vsel %vm396_vm1, %v1990_v47, %v1991_v19  ;;  %v6093_v48 = vadd.f32 %v1914_v53, %v5814_v45 }
 0x70d   : > { %2035 = vrot.lane.b32.xlu0 %v2026_v31, %s5306_s22  ;;  %2006 = vst.msk [vmem:[#allocation3] sm:$0xff] %vm539_vm4, %v1992_v4  ;;  %v2143_v6 = vrot.slane %v2130_v41, 2 }
 0x70e   : > { %v6096_v34 = vadd.f32 %v1917_v36, %v5817_v29 }
 0x710   : > { %v1949_v35 = vpack.c.bf16 %v6096_v34, %v6093_v48 }
 0x711   : > { %v1921_v42 = vpop.f32.mrb[52].mxu0  ;;  %v2086_v39 = vld [vmem:[#allocation2 + $0x10] sm:$0xff] }
 0x712   : > { %1954 = vst.msk [vmem:[#allocation2 + $0x18] sm:$0xff] %vm539_vm4, %v1949_v35  ;;  %v1922_v45 = vadd.f32 %v6047_v63, %v1921_v42  ;;  %v4733_v29 = vpop.f32.mrb[53].mxu0  ;;  %v2099_v37 = vrot.slane %v2086_v39, 1  ;;  %v2027_v40 = vrot.slane %v2086_v39, 7  ;;  %v2144_v43 = vrot.slane %v2086_v39, 2 }
 0x713   : > { %v1924_v54 = vpop.f32.mrb[54].mxu0  ;;  %v1993_v50 = vrot.slane %v2086_v39, 6  ;;  %v2090_v35 = vld [vmem:[#allocation2 + $0x30] sm:$0x1] }
 0x714   : > { %v1925_v33 = vadd.f32 %v6047_v63, %v1924_v54  ;;  %v4734_v51 = vpop.f32.mrb[55].mxu0  ;;  %v2100_v52 = vsel %vm2097_vm11, %v2098_v61, %v2099_v37  ;;  %v2028_v24 = vsel %vm2023_vm10, %v2025_v12, %v2027_v40  ;;  %v2145_v10 = vsel %vm2142_vm12, %v2143_v6, %v2144_v43 }
 0x715   : > { %2109 = vrot.lane.b32.xlu0 %v2100_v52, %s5309_s26  ;;  %2037 = vrot.lane.b32.xlu1 %v2028_v24, %s5306_s22  ;;  %v1994_v55 = vsel %vm396_vm1, %v1991_v19, %v1993_v50  ;;  %v6112_v58 = vadd.f32 %v1922_v45, %v5828_v44  ;;  %2159 = vst.msk [vmem:[#allocation3 + $0x8] sm:$0xff] %vm539_vm4, %v2145_v10  ;;  %v2152_v61 = vrot.slane %v2135_v18, 2  ;;  %v2107_v6 = vrot.slane %v2090_v35, 1  ;;  %v6212_v18 = vld [vmem:[%s6906_s3 + $0x6] ss:$0 sm:$0xff] }
 0x716   : > { %v6115_v59 = vadd.f32 %v1925_v33, %v5831_v49  ;;  %2007 = vst.msk [vmem:[#allocation3 + $0x10] sm:$0xff] %vm539_vm4, %v1994_v55 }
 0x718   : > { %v1950_v30 = vpack.c.bf16 %v6115_v59, %v6112_v58 }
 0x719   : > { %2067 = vrot.lane.b32.xlu0 %v2086_v39, %s5307_s25  ;;  %v1929_v32 = vpop.f32.mrb[56].mxu0  ;;  %v2087_v56 = vld [vmem:[#allocation2 + $0x18] sm:$0xff] }
 0x71a   : > { %1955 = vst.msk [vmem:[#allocation2 + $0x20] sm:$0xff] %vm539_vm4, %v1950_v30  ;;  %v1930_v21 = vadd.f32 %v6047_v63, %v1929_v32  ;;  %v4737_v44 = vpop.f32.mrb[57].mxu0  ;;  %v2101_v57 = vrot.slane %v2087_v56, 1  ;;  %v2029_v60 = vrot.slane %v2087_v56, 7  ;;  %v1995_v49 = vrot.slane %v2087_v56, 6 }
 0x71b   : > { %v1932_v0 = vpop.f32.mrb[58].mxu0  ;;  %v2146_v15 = vrot.slane %v2087_v56, 2 }
 0x71c   : > { %v1933_v16 = vadd.f32 %v6047_v63, %v1932_v0  ;;  %v4738_v13 = vpop.f32.mrb[59].mxu0  ;;  %v2102_v14 = vsel %vm2097_vm11, %v2099_v37, %v2101_v57  ;;  %v2030_v23 = vsel %vm2023_vm10, %v2027_v40, %v2029_v60  ;;  %v2165_v3 = vld [vmem:[#allocation3 + $0x8] sm:$0xff]  ;;  %v1996_v47 = vsel %vm396_vm1, %v1993_v50, %v1995_v49 }
 0x71d   : > { %2111 = vrot.lane.b32.xlu1 %v2102_v14, %s5309_s26  ;;  %2039 = vrot.lane.b32.xlu0 %v2030_v23, %s5306_s22  ;;  %v2147_v53 = vsel %vm2142_vm12, %v2144_v43, %v2146_v15  ;;  %v6132_v8 = vadd.f32 %v1930_v21, %v5844_v1  ;;  %2008 = vst.msk [vmem:[#allocation3 + $0x20] sm:$0xff] %vm539_vm4, %v1996_v47 }
 0x71e   : > { %v6135_v12 = vadd.f32 %v1933_v16, %v5847_v5  ;;  %4363 = vmatprep.mubr.msk.bf16.mxu1 %vm539_vm4, %v2165_v3  ;;  %2160 = vst.msk [vmem:[#allocation3 + $0x18] sm:$0xff] %vm539_vm4, %v2147_v53 }
 0x720   : > { %v1951_v63 = vpack.c.bf16 %v6135_v12, %v6132_v8 }
 0x721   : > { %2069 = vrot.lane.b32.xlu1 %v2087_v56, %s5307_s25  ;;  %v2088_v38 = vld [vmem:[#allocation2 + $0x20] sm:$0xff] }
 0x722   : > { %1956 = vst.msk [vmem:[#allocation2 + $0x28] sm:$0xff] %vm539_vm4, %v1951_v63  ;;  %v2103_v19 = vrot.slane %v2088_v38, 1  ;;  %v2031_v1 = vrot.slane %v2088_v38, 7  ;;  %v1997_v36 = vrot.slane %v2088_v38, 6  ;;  %v2148_v27 = vrot.slane %v2088_v38, 2 }
 0x724   : > { %v2104_v5 = vsel %vm2097_vm11, %v2101_v57, %v2103_v19  ;;  %v2032_v31 = vsel %vm2023_vm10, %v2029_v60, %v2031_v1  ;;  %v1998_v26 = vsel %vm396_vm1, %v1995_v49, %v1997_v36  ;;  %v2149_v4 = vsel %vm2142_vm12, %v2146_v15, %v2148_v27 }
 0x725   : > { %2113 = vrot.lane.b32.xlu0 %v2104_v5, %s5309_s26  ;;  %2041 = vrot.lane.b32.xlu1 %v2032_v31, %s5306_s22  ;;  %2009 = vst.msk [vmem:[#allocation3 + $0x30] sm:$0xff] %vm539_vm4, %v1998_v26  ;;  %2161 = vst.msk [vmem:[#allocation3 + $0x28] sm:$0xff] %vm539_vm4, %v2149_v4  ;;  %v2167_v57 = vld [vmem:[#allocation3 + $0x18] sm:$0xff]  ;;  %v4926_v31 = vld [vmem:[%s6908_s5 + $0x68] sm:$0xff]  }
 0x726   : > { %v4925_v5 = vld [vmem:[%s6908_s5 + $0x60] sm:$0xff]   ;;  %v4927_v26 = vld [vmem:[%s6908_s5 + $0x70] sm:$0xff]   ;;  %v4928_v4 = vld [vmem:[%s6908_s5 + $0x78] sm:$0xff]  }
 0x729   : > { %2071 = vrot.lane.b32.xlu0 %v2088_v38, %s5307_s25  ;;  %v2089_v41 = vld [vmem:[#allocation2 + $0x28] sm:$0xff] }
 0x72a   : > { %v2016_v42 = vld [vmem:[#allocation2 + $0x28] sm:$0x7f]  ;;  %v2105_v45 = vrot.slane %v2089_v41, 1  ;;  %v2150_v40 = vrot.slane %v2089_v41, 2 }
 0x72b   : > { %v1982_v39 = vld [vmem:[#allocation2 + $0x28] sm:$0x3f]  ;;  %v2033_v29 = vrot.slane %v2016_v42, 7 }
 0x72c   : > { %v1999_v37 = vrot.slane %v1982_v39, 6  ;;  %v2106_v43 = vsel %vm2097_vm11, %v2103_v19, %v2105_v45  ;;  %v2151_v33 = vsel %vm2142_vm12, %v2148_v27, %v2150_v40  ;;  %v2153_v51 = vsel %vm2142_vm12, %v2150_v40, %v2152_v61  ;;  %v2169_v16 = vld [vmem:[#allocation3 + $0x28] sm:$0xff]  ;;  %v4924_v27 = vld [vmem:[%s6908_s5 + $0x58] sm:$0xff]  }
 0x72d   : > { %v2034_v54 = vsel %vm2023_vm10, %v2031_v1, %v2033_v29  ;;  %2115 = vrot.lane.b32.xlu1 %v2106_v43, %s5309_s26  ;;  %2162 = vst.msk [vmem:[#allocation3 + $0x38] sm:$0xff] %vm539_vm4, %v2151_v33  ;;  %2163 = vst.msk [vmem:[#allocation3 + $0x48] sm:$0xff] %vm539_vm4, %v2153_v51  ;;  %v2108_v52 = vsel %vm2097_vm11, %v2105_v45, %v2107_v6 }
 0x72e   : > { %v2000_v50 = vsel %vm396_vm1, %v1997_v36, %v1999_v37  ;;  %2043 = vrot.lane.b32.xlu0 %v2034_v54, %s5306_s22  ;;  %v4923_v36 = vld [vmem:[%s6908_s5 + $0x50] sm:$0xff]  }
 0x72f   : > { %2010 = vst.msk [vmem:[#allocation3 + $0x40] sm:$0xff] %vm539_vm4, %v2000_v50  ;;  %2690 = vmatpush1.bf16.msra.mxu0 %v4923_v36 }
 0x730   : > { %2691 = vmatprep.subr.bf16.mxu0 %v5308_v20 }
 0x731   : > { %2073 = vrot.lane.b32.xlu1 %v2089_v41, %s5307_s25 }
 0x732   : > { %2117 = vrot.lane.b32.xlu0 %v2108_v52, %s5309_s26 }
 0x733   : > { %2692 = vmatpush1.bf16.msra.mxu0 %v4924_v27 }
 0x734   : > { %v2171_v47 = vld [vmem:[#allocation3 + $0x38] sm:$0xff]  ;;  %v2173_v19 = vld [vmem:[#allocation3 + $0x48] sm:$0xff]  ;;  %2693 = vmatprep.subr.bf16.mxu0 %v5308_v20 }
 0x737   : > { %2694 = vmatpush1.bf16.msra.mxu0 %v4925_v5 }
 0x738   : > { %2695 = vmatprep.subr.bf16.mxu0 %v5308_v20 }
 0x73b   : > { %2696 = vmatpush1.bf16.msra.mxu0 %v4926_v31 }
 0x73c   : > { %2697 = vmatprep.subr.bf16.mxu0 %v5308_v20 }
 0x73f   : > { %2698 = vmatpush1.bf16.msra.mxu0 %v4927_v26 }
 0x740   : > { %2699 = vmatprep.subr.bf16.mxu0 %v5308_v20 }
 0x743   : > { %2700 = vmatpush1.bf16.msra.mxu0 %v4928_v4 }
 0x744   : > { %2701 = vmatprep.subr.bf16.mxu0 %v5308_v20 }
 0x77c   : > { %v2066_v10 = vpop.permute.xlu1 %2065 }
 0x77f   : > { %v2036_v24 = vpop.permute.xlu0 %2035 }
 0x780   : > { %2050 = vst.msk [vmem:[#allocation3] sm:$0xff] %vm643_vm7, %v2036_v24 }
 0x781   : > { %2080 = vst.msk [vmem:[#allocation3] sm:$0xff] %vm715_vm8, %v2066_v10 }
 0x787   : > { %v2110_v55 = vpop.permute.xlu0 %2109  ;;  %v2038_v30 = vpop.permute.xlu1 %2037 }
 0x788   : > { %2125 = vst.msk [vmem:[#allocation3] sm:$0xff] %vm2124_vm13, %v2110_v55 }
 0x789   : > { %2051 = vst.msk [vmem:[#allocation3 + $0x10] sm:$0xff] %vm643_vm7, %v2038_v30 }
 0x78b   : > { %v2068_v32 = vpop.permute.xlu0 %2067 }
 0x78c   : > { %2081 = vst.msk [vmem:[#allocation3 + $0x10] sm:$0xff] %vm715_vm8, %v2068_v32 }
 0x78f   : > { %v2112_v56 = vpop.permute.xlu1 %2111  ;;  %v2040_v21 = vpop.permute.xlu0 %2039  ;;  %v2164_v44 = vld [vmem:[#allocation3] sm:$0xff] }
 0x790   : > { %2126 = vst.msk [vmem:[#allocation3 + $0x10] sm:$0xff] %vm2124_vm13, %v2112_v56  ;;  %2286 = vmatmul.mubr.bf16.vlgmr.msra.gmra.mrb[40].mxu1 %v2164_v44 }
 0x791   : > { %2052 = vst.msk [vmem:[#allocation3 + $0x20] sm:$0xff] %vm643_vm7, %v2040_v21  ;;  %4364 = vmatprep.mubr.msk.bf16.mxu1 %vm539_vm4, %v2167_v57 }
 0x793   : > { %v2070_v60 = vpop.permute.xlu1 %2069 }
 0x794   : > { %2082 = vst.msk [vmem:[#allocation3 + $0x20] sm:$0xff] %vm715_vm8, %v2070_v60 }
 0x797   : > { %v2114_v49 = vpop.permute.xlu0 %2113  ;;  %v2042_v0 = vpop.permute.xlu1 %2041  ;;  %v2166_v15 = vld [vmem:[#allocation3 + $0x10] sm:$0xff] }
 0x798   : > { %2127 = vst.msk [vmem:[#allocation3 + $0x20] sm:$0xff] %vm2124_vm13, %v2114_v49  ;;  %2294 = vmatmul.mubr.bf16.gmra.mrb[44].mxu1 %v2166_v15 }
 0x799   : > { %2053 = vst.msk [vmem:[#allocation3 + $0x30] sm:$0xff] %vm643_vm7, %v2042_v0  ;;  %4365 = vmatprep.mubr.msk.bf16.mxu1 %vm539_vm4, %v2169_v16 }
 0x79b   : > { %v2072_v13 = vpop.permute.xlu0 %2071 }
 0x79c   : > { %2083 = vst.msk [vmem:[#allocation3 + $0x30] sm:$0xff] %vm715_vm8, %v2072_v13 }
 0x79f   : > { %v2116_v14 = vpop.permute.xlu1 %2115  ;;  %v2168_v3 = vld [vmem:[#allocation3 + $0x20] sm:$0xff] }
 0x7a0   : > { %v2044_v23 = vpop.permute.xlu0 %2043  ;;  %2128 = vst.msk [vmem:[#allocation3 + $0x30] sm:$0xff] %vm2124_vm13, %v2116_v14  ;;  %2302 = vmatmul.mubr.bf16.gmra.mrb[48].mxu1 %v2168_v3 }
 0x7a1   : > { %2054 = vst.msk [vmem:[#allocation3 + $0x40] sm:$0xff] %vm643_vm7, %v2044_v23  ;;  %4366 = vmatprep.mubr.msk.bf16.mxu1 %vm539_vm4, %v2171_v47 }
 0x7a3   : > { %v2074_v53 = vpop.permute.xlu1 %2073 }
 0x7a4   : > { %v2118_v63 = vpop.permute.xlu0 %2117  ;;  %2084 = vst.msk [vmem:[#allocation3 + $0x40] sm:$0xff] %vm715_vm8, %v2074_v53 }
 0x7a5   : > { %2129 = vst.msk [vmem:[#allocation3 + $0x40] sm:$0xff] %vm2124_vm13, %v2118_v63 }
 0x7a7   : > { %v2170_v38 = vld [vmem:[#allocation3 + $0x30] sm:$0xff] }
 0x7a8   : > { %2310 = vmatmul.mubr.bf16.gmra.mrb[52].mxu1 %v2170_v38 }
 0x7a9   : > { %4367 = vmatprep.mubr.msk.bf16.mxu1 %vm539_vm4, %v2173_v19 }
 0x7ac   : > { %v2172_v1 = vld [vmem:[#allocation3 + $0x40] sm:$0xff] }
 0x7b0   : > { %2318 = vmatmul.mubr.bf16.gmra.mrb[56].mxu1 %v2172_v1 }
 0x863   : > { %v2287_v35 = vpop.f32.mrb[40].mxu1 }
 0x864   : > { %v2288_v41 = vadd.f32 %v6212_v18, %v2287_v35  ;;  %v2289_v42 = vpop.f32.mrb[41].mxu1 }
 0x865   : > { %v2290_v39 = vpop.f32.mrb[42].mxu1 }
 0x866   : > { %v2326_v61 = vsub.f32 0.0, %v2288_v41  ;;  %v2291_v45 = vadd.f32 %v6212_v18, %v2290_v39  ;;  %v2292_v29 = vpop.f32.mrb[43].mxu1 }
 0x868   : > { %v2336_v37 = vmul.f32 1.442695, %v2326_v61  ;;  %v2327_v40 = vsub.f32 0.0, %v2291_v45 }
 0x86a   : > { %5087 = vpow2.f32 %v2336_v37  ;;  %v2338_v43 = vmul.f32 1.442695, %v2327_v40 }
 0x86b   : > { %v2295_v54 = vpop.f32.mrb[44].mxu1 }
 0x86c   : > { %5089 = vpow2.f32 %v2338_v43  ;;  %v6217_v6 = vadd.f32 %v6212_v18, %v2295_v54  ;;  %v2297_v50 = vpop.f32.mrb[45].mxu1 }
 0x86d   : > { %v2298_v33 = vpop.f32.mrb[46].mxu1 }
 0x86e   : > { %v2328_v51 = vsub.f32 0.0, %v6217_v6  ;;  %v6221_v52 = vadd.f32 %v6212_v18, %v2298_v33  ;;  %v2300_v24 = vpop.f32.mrb[47].mxu1 }
 0x870   : > { %v2340_v10 = vmul.f32 1.442695, %v2328_v51  ;;  %v2329_v55 = vsub.f32 0.0, %v6221_v52 }
 0x872   : > { %5091 = vpow2.f32 %v2340_v10  ;;  %v2342_v30 = vmul.f32 1.442695, %v2329_v55 }
 0x873   : > { %v2303_v32 = vpop.f32.mrb[48].mxu1 }
 0x874   : > { %v5088_v56 = vpop.eup %5087  ;;  %5093 = vpow2.f32 %v2342_v30  ;;  %v6225_v21 = vadd.f32 %v6212_v18, %v2303_v32  ;;  %v2305_v44 = vpop.f32.mrb[49].mxu1 }
 0x875   : > { %v2356_v57 = vadd.f32 1.0, %v5088_v56  ;;  %v2306_v60 = vpop.f32.mrb[50].mxu1 }
 0x876   : > { %v5090_v49 = vpop.eup %5089  ;;  %v2330_v0 = vsub.f32 0.0, %v6225_v21  ;;  %v6229_v15 = vadd.f32 %v6212_v18, %v2306_v60  ;;  %v2308_v16 = vpop.f32.mrb[51].mxu1 }
 0x877   : > { %5095 = vrcp.f32 %v2356_v57  ;;  %v2357_v13 = vadd.f32 1.0, %v5090_v49  ;;  %v4930_v57 = vld [vmem:[%s6908_s5 + $0x88] sm:$0xff]   ;;  %v2418_v16 = vld [vmem:[#allocation2] sm:$0xc0] }
 0x878   : > { %v2344_v14 = vmul.f32 1.442695, %v2330_v0  ;;  %v2331_v23 = vsub.f32 0.0, %v6229_v15  ;;  %v2451_v0 = vld [vmem:[#allocation2] sm:$0x80] }
 0x879   : > { %5097 = vrcp.f32 %v2357_v13 }
 0x87a   : > { %5099 = vpow2.f32 %v2344_v14  ;;  %v2346_v3 = vmul.f32 1.442695, %v2331_v23 }
 0x87b   : > { %v2311_v47 = vpop.f32.mrb[52].mxu1 }
 0x87c   : > { %v5092_v53 = vpop.eup %5091  ;;  %5101 = vpow2.f32 %v2346_v3  ;;  %v6233_v63 = vadd.f32 %v6212_v18, %v2311_v47  ;;  %v2313_v38 = vpop.f32.mrb[53].mxu1 }
 0x87d   : > { %v2358_v19 = vadd.f32 1.0, %v5092_v53  ;;  %v2314_v1 = vpop.f32.mrb[54].mxu1  ;;  %v2463_v38 = vrot.slane %v2451_v0, 7 }
 0x87e   : > { %v5094_v36 = vpop.eup %5093  ;;  %v2332_v27 = vsub.f32 0.0, %v6233_v63  ;;  %v6237_v5 = vadd.f32 %v6212_v18, %v2314_v1  ;;  %v2316_v31 = vpop.f32.mrb[55].mxu1  ;;  %v4931_v1 = vld [vmem:[%s6908_s5 + $0x90] sm:$0xff]  }
 0x87f   : > { %5103 = vrcp.f32 %v2358_v19  ;;  %v2359_v26 = vadd.f32 1.0, %v5094_v36  ;;  %v2430_v19 = vrot.slane %v2418_v16, 6 }
 0x880   : > { %v2348_v4 = vmul.f32 1.442695, %v2332_v27  ;;  %v2333_v35 = vsub.f32 0.0, %v6237_v5 }
 0x881   : > { %v5096_v42 = vpop.eup %5095  ;;  %5105 = vrcp.f32 %v2359_v26 }
 0x882   : > { %5107 = vpow2.f32 %v2348_v4  ;;  %v2350_v39 = vmul.f32 1.442695, %v2333_v35  ;;  %v2376_v40 = vmul.f32 %v5096_v42, %v2288_v41  ;;  %v4929_v41 = vld [vmem:[%s6908_s5 + $0x80] sm:$0xff]   ;;  %v4932_v35 = vld [vmem:[%s6908_s5 + $0x98] sm:$0xff]  }
 0x883   : > { %v5098_v61 = vpop.eup %5097  ;;  %v2319_v29 = vpop.f32.mrb[56].mxu1  ;;  %2702 = vmatpush1.bf16.msra.mxu0 %v4929_v41 }
 0x884   : > { %v5100_v37 = vpop.eup %5099  ;;  %v2377_v43 = vmul.f32 %v5098_v61, %v2291_v45  ;;  %5109 = vpow2.f32 %v2350_v39  ;;  %v6241_v54 = vadd.f32 %v6212_v18, %v2319_v29  ;;  %v2321_v50 = vpop.f32.mrb[57].mxu1  ;;  %2703 = vmatprep.subr.bf16.mxu0 %v5308_v20 }
 0x885   : > { %v2360_v33 = vadd.f32 1.0, %v5100_v37  ;;  %v2322_v51 = vpop.f32.mrb[58].mxu1 }
 0x886   : > { %v5102_v24 = vpop.eup %5101  ;;  %v2387_v10 = vpack.c.bf16 %v2377_v43, %v2376_v40  ;;  %v2334_v55 = vsub.f32 0.0, %v6241_v54  ;;  %v6245_v30 = vadd.f32 %v6212_v18, %v2322_v51  ;;  %v2324_v32 = vpop.f32.mrb[59].mxu1 }
 0x887   : > { %5111 = vrcp.f32 %v2360_v33  ;;  %v2361_v45 = vadd.f32 1.0, %v5102_v24  ;;  %2704 = vmatpush1.bf16.msra.mxu0 %v4930_v57 }
 0x888   : > { %2392 = vst.msk [vmem:[#allocation2 + $0x8] sm:$0xff] %vm539_vm4, %v2387_v10  ;;  %v2352_v56 = vmul.f32 1.442695, %v2334_v55  ;;  %v2335_v44 = vsub.f32 0.0, %v6245_v30  ;;  %2705 = vmatprep.subr.bf16.mxu0 %v5308_v20 }
 0x889   : > { %v5104_v60 = vpop.eup %5103  ;;  %5113 = vrcp.f32 %v2361_v45 }
 0x88a   : > { %5115 = vpow2.f32 %v2352_v56  ;;  %v2354_v18 = vmul.f32 1.442695, %v2335_v44  ;;  %v2378_v14 = vmul.f32 %v5104_v60, %v6217_v6 }
 0x88b   : > { %v5106_v49 = vpop.eup %5105  ;;  %2706 = vmatpush1.bf16.msra.mxu0 %v4931_v1 }
 0x88c   : > { %v5108_v13 = vpop.eup %5107  ;;  %v2379_v23 = vmul.f32 %v5106_v49, %v6221_v52  ;;  %5117 = vpow2.f32 %v2354_v18  ;;  %2707 = vmatprep.subr.bf16.mxu0 %v5308_v20 }
 0x88d   : > { %v2362_v3 = vadd.f32 1.0, %v5108_v13 }
 0x88e   : > { %v5110_v47 = vpop.eup %5109  ;;  %v2388_v53 = vpack.c.bf16 %v2379_v23, %v2378_v14 }
 0x88f   : > { %5119 = vrcp.f32 %v2362_v3  ;;  %v2363_v36 = vadd.f32 1.0, %v5110_v47  ;;  %v2494_v27 = vld [vmem:[#allocation2 + $0x8] sm:$0xff]  ;;  %2708 = vmatpush1.bf16.msra.mxu0 %v4932_v35 }
 0x890   : > { %2393 = vst.msk [vmem:[#allocation2 + $0x10] sm:$0xff] %vm539_vm4, %v2388_v53  ;;  %2504 = vrot.lane.b32.xlu0 %v2494_v27, %s5307_s25  ;;  %v2464_v6 = vrot.slane %v2494_v27, 7  ;;  %v2431_v52 = vrot.slane %v2494_v27, 6  ;;  %v2524_v37 = vld [vmem:[#allocation2 + $0x8] sm:$0xfe]  ;;  %3511 = vmatprep.subr.bf16.mxu0 %v5308_v20 }
 0x891   : > { %v5112_v31 = vpop.eup %5111  ;;  %5121 = vrcp.f32 %v2363_v36  ;;  %v2567_v40 = vld [vmem:[#allocation2 + $0x8] sm:$0xfc]  ;;  %v2536_v10 = vrot.slane %v2524_v37, 1  ;;  %v2529_v37 = vld [vmem:[#allocation2 + $0x30] sm:$0x1] }
 0x892   : > { %v2465_v26 = vsel %vm2023_vm10, %v2463_v38, %v2464_v6  ;;  %v2432_v4 = vsel %vm396_vm1, %v2430_v19, %v2431_v52  ;;  %v2380_v61 = vmul.f32 %v5112_v31, %v6225_v21  ;;  %v2579_v55 = vrot.slane %v2567_v40, 2 }
 0x893   : > { %v5114_v42 = vpop.eup %5113  ;;  %2474 = vrot.lane.b32.xlu1 %v2465_v26, %s5306_s22  ;;  %2446 = vst.msk [vmem:[#allocation3] sm:$0xff] %vm539_vm4, %v2432_v4 }
 0x894   : > { %v5116_v39 = vpop.eup %5115  ;;  %v2381_v29 = vmul.f32 %v5114_v42, %v6229_v15 }
 0x895   : > { %v2364_v43 = vadd.f32 1.0, %v5116_v39 }
 0x896   : > { %v5118_v50 = vpop.eup %5117  ;;  %v2389_v33 = vpack.c.bf16 %v2381_v29, %v2380_v61  ;;  %v2572_v29 = vld [vmem:[#allocation2 + $0x30] sm:$0x3] }
 0x897   : > { %5123 = vrcp.f32 %v2364_v43  ;;  %v2365_v51 = vadd.f32 1.0, %v5118_v50  ;;  %v2525_v24 = vld [vmem:[#allocation2 + $0x10] sm:$0xff] }
 0x898   : > { %2394 = vst.msk [vmem:[#allocation2 + $0x18] sm:$0xff] %vm539_vm4, %v2389_v33  ;;  %v2537_v32 = vrot.slane %v2525_v24, 1  ;;  %v2466_v41 = vrot.slane %v2525_v24, 7  ;;  %v2580_v21 = vrot.slane %v2525_v24, 2  ;;  %v2433_v45 = vrot.slane %v2525_v24, 6 }
 0x899   : > { %v5120_v15 = vpop.eup %5119  ;;  %5125 = vrcp.f32 %v2365_v51  ;;  %v2588_v33 = vrot.slane %v2572_v29, 2  ;;  %v6369_v29 = vld [vmem:[%s6906_s3 + $0x7] ss:$0 sm:$0xff] }
 0x89a   : > { %v2538_v56 = vsel %vm2097_vm11, %v2536_v10, %v2537_v32  ;;  %v2467_v44 = vsel %vm2023_vm10, %v2464_v6, %v2466_v41  ;;  %v2581_v57 = vsel %vm2142_vm12, %v2579_v55, %v2580_v21  ;;  %v2434_v18 = vsel %vm396_vm1, %v2431_v52, %v2433_v45 }
 0x89b   : > { %v5122_v60 = vpop.eup %5121  ;;  %2547 = vrot.lane.b32.xlu1 %v2538_v56, %s5309_s26  ;;  %2476 = vrot.lane.b32.xlu0 %v2467_v44, %s5306_s22  ;;  %2595 = vst.msk [vmem:[#allocation3 + $0x8] sm:$0xff] %vm539_vm4, %v2581_v57  ;;  %v2382_v49 = vmul.f32 %v5120_v15, %v6233_v63  ;;  %2447 = vst.msk [vmem:[#allocation3 + $0x10] sm:$0xff] %vm539_vm4, %v2434_v18 }
 0x89c   : > { %v2383_v0 = vmul.f32 %v5122_v60, %v6237_v5 }
 0x89e   : > { %v2390_v16 = vpack.c.bf16 %v2383_v0, %v2382_v49 }
 0x89f   : > { %2506 = vrot.lane.b32.xlu1 %v2525_v24, %s5307_s25  ;;  %v2454_v13 = vld [vmem:[#allocation2 + $0x18] sm:$0xff] }
 0x8a0   : > { %2395 = vst.msk [vmem:[#allocation2 + $0x20] sm:$0xff] %vm539_vm4, %v2390_v16  ;;  %v2468_v14 = vrot.slane %v2454_v13, 7  ;;  %v2539_v23 = vrot.slane %v2454_v13, 1  ;;  %v2435_v3 = vrot.slane %v2454_v13, 6  ;;  %v2582_v47 = vrot.slane %v2454_v13, 2 }
 0x8a1   : > { %v5124_v53 = vpop.eup %5123 }
 0x8a2   : > { %v2601_v38 = vld [vmem:[#allocation3 + $0x8] sm:$0xff]  ;;  %v2469_v19 = vsel %vm2023_vm10, %v2466_v41, %v2468_v14  ;;  %v2540_v63 = vsel %vm2097_vm11, %v2537_v32, %v2539_v23  ;;  %v2436_v5 = vsel %vm396_vm1, %v2433_v45, %v2435_v3  ;;  %v2583_v36 = vsel %vm2142_vm12, %v2580_v21, %v2582_v47 }
 0x8a3   : > { %v5126_v1 = vpop.eup %5125  ;;  %4399 = vmatprep.mubr.msk.bf16.mxu0 %vm539_vm4, %v2601_v38  ;;  %2478 = vrot.lane.b32.xlu1 %v2469_v19, %s5306_s22  ;;  %2448 = vst.msk [vmem:[#allocation3 + $0x20] sm:$0xff] %vm539_vm4, %v2436_v5  ;;  %v2384_v27 = vmul.f32 %v5124_v53, %v6241_v54  ;;  %2596 = vst.msk [vmem:[#allocation3 + $0x18] sm:$0xff] %vm539_vm4, %v2583_v36  ;;  %v2545_v21 = vrot.slane %v2529_v37, 1 }
 0x8a4   : > { %v2385_v6 = vmul.f32 %v5126_v1, %v6245_v30  ;;  %2549 = vrot.lane.b32.xlu0 %v2540_v63, %s5309_s26 }
 0x8a6   : > { %v2391_v52 = vpack.c.bf16 %v2385_v6, %v2384_v27 }
 0x8a7   : > { %v2527_v31 = vld [vmem:[#allocation2 + $0x20] sm:$0xff] }
 0x8a8   : > { %2396 = vst.msk [vmem:[#allocation2 + $0x28] sm:$0xff] %vm539_vm4, %v2391_v52  ;;  %2508 = vrot.lane.b32.xlu0 %v2454_v13, %s5307_s25  ;;  %v2541_v26 = vrot.slane %v2527_v31, 1  ;;  %v2470_v4 = vrot.slane %v2527_v31, 7  ;;  %v2437_v35 = vrot.slane %v2527_v31, 6  ;;  %v2584_v42 = vrot.slane %v2527_v31, 2 }
 0x8aa   : > { %v2542_v39 = vsel %vm2097_vm11, %v2539_v23, %v2541_v26  ;;  %v2471_v54 = vsel %vm2023_vm10, %v2468_v14, %v2470_v4  ;;  %v2438_v30 = vsel %vm396_vm1, %v2435_v3, %v2437_v35  ;;  %v2585_v61 = vsel %vm2142_vm12, %v2582_v47, %v2584_v42  ;;  %v2603_v23 = vld [vmem:[#allocation3 + $0x18] sm:$0xff] }
 0x8ab   : > { %2551 = vrot.lane.b32.xlu1 %v2542_v39, %s5309_s26  ;;  %2449 = vst.msk [vmem:[#allocation3 + $0x30] sm:$0xff] %vm539_vm4, %v2438_v30  ;;  %2597 = vst.msk [vmem:[#allocation3 + $0x28] sm:$0xff] %vm539_vm4, %v2585_v61  ;;  %v4935_v39 = vld [vmem:[%s6908_s5 + $0xb0] sm:$0xff]   ;;  %v4937_v30 = vld [vmem:[%s6908_s5 + $0xc0] sm:$0xff]  }
 0x8ac   : > { %2480 = vrot.lane.b32.xlu0 %v2471_v54, %s5306_s22  ;;  %v4936_v54 = vld [vmem:[%s6908_s5 + $0xb8] sm:$0xff]   ;;  %v4938_v61 = vld [vmem:[%s6908_s5 + $0xc8] sm:$0xff]  }
 0x8af   : > { %2510 = vrot.lane.b32.xlu1 %v2527_v31, %s5307_s25  ;;  %v2528_v40 = vld [vmem:[#allocation2 + $0x28] sm:$0xff] }
 0x8b0   : > { %v2456_v43 = vld [vmem:[#allocation2 + $0x28] sm:$0x7f]  ;;  %v2543_v51 = vrot.slane %v2528_v40, 1  ;;  %v2586_v55 = vrot.slane %v2528_v40, 2 }
 0x8b1   : > { %v2423_v50 = vld [vmem:[#allocation2 + $0x28] sm:$0x3f]  ;;  %v2472_v24 = vrot.slane %v2456_v43, 7 }
 0x8b2   : > { %v2439_v10 = vrot.slane %v2423_v50, 6  ;;  %v2544_v32 = vsel %vm2097_vm11, %v2541_v26, %v2543_v51  ;;  %v2587_v15 = vsel %vm2142_vm12, %v2584_v42, %v2586_v55  ;;  %v2589_v56 = vsel %vm2142_vm12, %v2586_v55, %v2588_v33  ;;  %v2605_v19 = vld [vmem:[#allocation3 + $0x28] sm:$0xff]  ;;  %v4934_v42 = vld [vmem:[%s6908_s5 + $0xa8] sm:$0xff]  }
 0x8b3   : > { %v2473_v41 = vsel %vm2023_vm10, %v2470_v4, %v2472_v24  ;;  %2553 = vrot.lane.b32.xlu0 %v2544_v32, %s5309_s26  ;;  %2598 = vst.msk [vmem:[#allocation3 + $0x38] sm:$0xff] %vm539_vm4, %v2587_v15  ;;  %2599 = vst.msk [vmem:[#allocation3 + $0x48] sm:$0xff] %vm539_vm4, %v2589_v56  ;;  %v2546_v44 = vsel %vm2097_vm11, %v2543_v51, %v2545_v21  ;;  %v4939_v32 = vld [vmem:[%s6908_s5 + $0xd0] sm:$0xff]  }
 0x8b4   : > { %v2440_v45 = vsel %vm396_vm1, %v2437_v35, %v2439_v10  ;;  %2482 = vrot.lane.b32.xlu1 %v2473_v41, %s5306_s22  ;;  %v4933_v35 = vld [vmem:[%s6908_s5 + $0xa0] sm:$0xff]  }
 0x8b5   : > { %2450 = vst.msk [vmem:[#allocation3 + $0x40] sm:$0xff] %vm539_vm4, %v2440_v45  ;;  %3076 = vmatpush1.bf16.msra.mxu1 %v4933_v35 }
 0x8b6   : > { %3077 = vmatprep.subr.bf16.mxu1 %v5308_v20 }
 0x8b7   : > { %2512 = vrot.lane.b32.xlu0 %v2528_v40, %s5307_s25 }
 0x8b8   : > { %2555 = vrot.lane.b32.xlu1 %v2546_v44, %s5309_s26  ;;  %v2837_v44 = vld [vmem:[#allocation2] sm:$0x80] }
 0x8b9   : > { %3078 = vmatpush1.bf16.msra.mxu1 %v4934_v42 }
 0x8ba   : > { %v2607_v27 = vld [vmem:[#allocation3 + $0x38] sm:$0xff]  ;;  %v2609_v26 = vld [vmem:[#allocation3 + $0x48] sm:$0xff]  ;;  %3079 = vmatprep.subr.bf16.mxu1 %v5308_v20 }
 0x8bd   : > { %3080 = vmatpush1.bf16.msra.mxu1 %v4935_v39 }
 0x8be   : > { %3081 = vmatprep.subr.bf16.mxu1 %v5308_v20 }
 0x8c1   : > { %3082 = vmatpush1.bf16.msra.mxu1 %v4936_v54 }
 0x8c2   : > { %3083 = vmatprep.subr.bf16.mxu1 %v5308_v20 }
 0x8c5   : > { %3084 = vmatpush1.bf16.msra.mxu1 %v4937_v30 }
 0x8c6   : > { %3085 = vmatprep.subr.bf16.mxu1 %v5308_v20 }
 0x8c9   : > { %3086 = vmatpush1.bf16.msra.mxu1 %v4938_v61 }
 0x8ca   : > { %3087 = vmatprep.subr.bf16.mxu1 %v5308_v20 }
 0x8cd   : > { %3088 = vmatpush1.bf16.msra.mxu1 %v4939_v32 }
 0x8ce   : > { %3089 = vmatprep.subr.bf16.mxu1 %v5308_v20 }
 0x902   : > { %v2505_v60 = vpop.permute.xlu0 %2504 }
 0x905   : > { %v2475_v57 = vpop.permute.xlu1 %2474 }
 0x906   : > { %2489 = vst.msk [vmem:[#allocation3] sm:$0xff] %vm643_vm7, %v2475_v57  ;;  %v2804_v57 = vld [vmem:[#allocation2] sm:$0xc0] }
 0x907   : > { %2519 = vst.msk [vmem:[#allocation3] sm:$0xff] %vm715_vm8, %v2505_v60 }
 0x90d   : > { %v2548_v18 = vpop.permute.xlu1 %2547  ;;  %v2477_v49 = vpop.permute.xlu0 %2476 }
 0x90e   : > { %2562 = vst.msk [vmem:[#allocation3] sm:$0xff] %vm2124_vm13, %v2548_v18 }
 0x90f   : > { %2490 = vst.msk [vmem:[#allocation3 + $0x10] sm:$0xff] %vm643_vm7, %v2477_v49  ;;  %v2849_v49 = vrot.slane %v2837_v44, 7 }
 0x911   : > { %v2507_v0 = vpop.permute.xlu1 %2506 }
 0x912   : > { %2520 = vst.msk [vmem:[#allocation3 + $0x10] sm:$0xff] %vm715_vm8, %v2507_v0  ;;  %v2816_v0 = vrot.slane %v2804_v57, 6 }
 0x915   : > { %v2479_v16 = vpop.permute.xlu1 %2478  ;;  %v2600_v13 = vld [vmem:[#allocation3] sm:$0xff] }
 0x916   : > { %2491 = vst.msk [vmem:[#allocation3 + $0x20] sm:$0xff] %vm643_vm7, %v2479_v16  ;;  %v2550_v14 = vpop.permute.xlu0 %2549  ;;  %2722 = vmatmul.mubr.bf16.vlgmr.msra.gmra.mrb[60].mxu0 %v2600_v13 }
 0x917   : > { %2563 = vst.msk [vmem:[#allocation3 + $0x10] sm:$0xff] %vm2124_vm13, %v2550_v14  ;;  %4400 = vmatprep.mubr.msk.bf16.mxu0 %vm539_vm4, %v2603_v23 }
 0x91a   : > { %v2509_v3 = vpop.permute.xlu0 %2508 }
 0x91b   : > { %2521 = vst.msk [vmem:[#allocation3 + $0x20] sm:$0xff] %vm715_vm8, %v2509_v3 }
 0x91d   : > { %v2552_v47 = vpop.permute.xlu1 %2551 }
 0x91e   : > { %2564 = vst.msk [vmem:[#allocation3 + $0x20] sm:$0xff] %vm2124_vm13, %v2552_v47  ;;  %v2481_v53 = vpop.permute.xlu0 %2480  ;;  %v2602_v38 = vld [vmem:[#allocation3 + $0x10] sm:$0xff] }
 0x91f   : > { %2492 = vst.msk [vmem:[#allocation3 + $0x30] sm:$0xff] %vm643_vm7, %v2481_v53  ;;  %2730 = vmatmul.mubr.bf16.gmra.mrb[64].mxu0 %v2602_v38 }
 0x920   : > { %4401 = vmatprep.mubr.msk.bf16.mxu0 %vm539_vm4, %v2605_v19 }
 0x921   : > { %v2511_v63 = vpop.permute.xlu1 %2510 }
 0x922   : > { %2522 = vst.msk [vmem:[#allocation3 + $0x30] sm:$0xff] %vm715_vm8, %v2511_v63 }
 0x925   : > { %v2554_v5 = vpop.permute.xlu0 %2553  ;;  %v2604_v36 = vld [vmem:[#allocation3 + $0x20] sm:$0xff] }
 0x926   : > { %v2483_v1 = vpop.permute.xlu1 %2482  ;;  %2565 = vst.msk [vmem:[#allocation3 + $0x30] sm:$0xff] %vm2124_vm13, %v2554_v5 }
 0x927   : > { %2493 = vst.msk [vmem:[#allocation3 + $0x40] sm:$0xff] %vm643_vm7, %v2483_v1  ;;  %2738 = vmatmul.mubr.bf16.gmra.mrb[68].mxu0 %v2604_v36  ;;  %v4942_v1 = vld [vmem:[%s6908_s5 + $0xe8] sm:$0xff]  }
 0x928   : > { %4402 = vmatprep.mubr.msk.bf16.mxu0 %vm539_vm4, %v2607_v27 }
 0x929   : > { %v2513_v6 = vpop.permute.xlu0 %2512 }
 0x92a   : > { %v2556_v52 = vpop.permute.xlu1 %2555  ;;  %2523 = vst.msk [vmem:[#allocation3 + $0x40] sm:$0xff] %vm715_vm8, %v2513_v6 }
 0x92b   : > { %2566 = vst.msk [vmem:[#allocation3 + $0x40] sm:$0xff] %vm2124_vm13, %v2556_v52 }
 0x92d   : > { %v2606_v31 = vld [vmem:[#allocation3 + $0x30] sm:$0xff] }
 0x92f   : > { %2746 = vmatmul.mubr.bf16.gmra.mrb[72].mxu0 %v2606_v31 }
 0x930   : > { %4403 = vmatprep.mubr.msk.bf16.mxu0 %vm539_vm4, %v2609_v26 }
 0x932   : > { %v2608_v4 = vld [vmem:[#allocation3 + $0x40] sm:$0xff] }
 0x937   : > { %2754 = vmatmul.mubr.bf16.gmra.mrb[76].mxu0 %v2608_v4 }
 0x9e9   : > { %v2723_v37 = vpop.f32.mrb[60].mxu0 }
 0x9ea   : > { %v2724_v40 = vadd.f32 %v6369_v29, %v2723_v37  ;;  %v2725_v43 = vpop.f32.mrb[61].mxu0 }
 0x9eb   : > { %v2726_v50 = vpop.f32.mrb[62].mxu0 }
 0x9ec   : > { %v2727_v33 = vadd.f32 %v6369_v29, %v2726_v50  ;;  %v2728_v51 = vpop.f32.mrb[63].mxu0  ;;  %v6374_v24 = vadd.f32 %v2724_v40, %v6052_v25  ;;  %v4940_v25 = vld [vmem:[%s6908_s5 + $0xd8] sm:$0xff]  }
 0x9ed   : > { %3090 = vmatpush1.bf16.msra.mxu1 %v4940_v25 }
 0x9ee   : > { %v6377_v10 = vadd.f32 %v2727_v33, %v6055_v22  ;;  %3091 = vmatprep.subr.bf16.mxu1 %v5308_v20 }
 0x9f0   : > { %v2773_v55 = vpack.c.bf16 %v6377_v10, %v6374_v24 }
 0x9f2   : > { %2778 = vst.msk [vmem:[#allocation2 + $0x8] sm:$0xff] %vm539_vm4, %v2773_v55  ;;  %v2731_v41 = vpop.f32.mrb[64].mxu0 }
 0x9f3   : > { %v2732_v21 = vadd.f32 %v6369_v29, %v2731_v41  ;;  %v2733_v45 = vpop.f32.mrb[65].mxu0 }
 0x9f4   : > { %v2734_v22 = vpop.f32.mrb[66].mxu0 }
 0x9f5   : > { %v2735_v15 = vadd.f32 %v6369_v29, %v2734_v22  ;;  %v2736_v56 = vpop.f32.mrb[67].mxu0  ;;  %v6392_v60 = vadd.f32 %v2732_v21, %v6070_v7  ;;  %v4941_v7 = vld [vmem:[%s6908_s5 + $0xe0] sm:$0xff]  }
 0x9f6   : > { %3092 = vmatpush1.bf16.msra.mxu1 %v4941_v7 }
 0x9f7   : > { %v6395_v18 = vadd.f32 %v2735_v15, %v6073_v11  ;;  %3093 = vmatprep.subr.bf16.mxu1 %v5308_v20 }
 0x9f9   : > { %v2774_v16 = vpack.c.bf16 %v6395_v18, %v6392_v60  ;;  %v2880_v13 = vld [vmem:[#allocation2 + $0x8] sm:$0xff] }
 0x9fa   : > { %v2739_v14 = vpop.f32.mrb[68].mxu0  ;;  %2890 = vrot.lane.b32.xlu1 %v2880_v13, %s5307_s25  ;;  %v2850_v23 = vrot.slane %v2880_v13, 7  ;;  %v2817_v3 = vrot.slane %v2880_v13, 6  ;;  %v2910_v6 = vld [vmem:[#allocation2 + $0x8] sm:$0xfe]  ;;  %3094 = vmatpush1.bf16.msra.mxu1 %v4942_v1 }
 0x9fb   : > { %2779 = vst.msk [vmem:[#allocation2 + $0x10] sm:$0xff] %vm539_vm4, %v2774_v16  ;;  %v2740_v11 = vadd.f32 %v6369_v29, %v2739_v14  ;;  %v2741_v47 = vpop.f32.mrb[69].mxu0  ;;  %v2953_v31 = vld [vmem:[#allocation2 + $0x8] sm:$0xfc]  ;;  %4827 = vmatprep.subr.bf16.mxu1 %v5304_v2  ;;  %v2922_v35 = vrot.slane %v2910_v6, 1 }
 0x9fc   : > { %v2742_v53 = vpop.f32.mrb[70].mxu0  ;;  %v2851_v38 = vsel %vm2023_vm10, %v2849_v49, %v2850_v23  ;;  %v2818_v19 = vsel %vm396_vm1, %v2816_v0, %v2817_v3  ;;  %v2965_v61 = vrot.slane %v2953_v31, 2  ;;  %v2958_v6 = vld [vmem:[#allocation2 + $0x30] sm:$0x3] }
 0x9fd   : > { %v2743_v63 = vadd.f32 %v6369_v29, %v2742_v53  ;;  %v2744_v5 = vpop.f32.mrb[71].mxu0  ;;  %2860 = vrot.lane.b32.xlu0 %v2851_v38, %s5306_s22  ;;  %2832 = vst.msk [vmem:[#allocation3] sm:$0xff] %vm539_vm4, %v2818_v19  ;;  %v6416_v36 = vadd.f32 %v2740_v11, %v6093_v48 }
 0x9ff   : > { %v6419_v27 = vadd.f32 %v2743_v63, %v6096_v34 }
 0xa01   : > { %v2775_v52 = vpack.c.bf16 %v6419_v27, %v6416_v36 }
 0xa02   : > { %v2747_v26 = vpop.f32.mrb[72].mxu0  ;;  %v2839_v4 = vld [vmem:[#allocation2 + $0x10] sm:$0xff] }
 0xa03   : > { %2780 = vst.msk [vmem:[#allocation2 + $0x18] sm:$0xff] %vm539_vm4, %v2775_v52  ;;  %v2748_v42 = vadd.f32 %v6369_v29, %v2747_v26  ;;  %v2749_v48 = vpop.f32.mrb[73].mxu0  ;;  %v2852_v39 = vrot.slane %v2839_v4, 7  ;;  %v2923_v54 = vrot.slane %v2839_v4, 1  ;;  %v2966_v34 = vrot.slane %v2839_v4, 2 }
 0xa04   : > { %v2750_v30 = vpop.f32.mrb[74].mxu0  ;;  %v2819_v37 = vrot.slane %v2839_v4, 6  ;;  %v2915_v52 = vld [vmem:[#allocation2 + $0x30] sm:$0x1] }
 0xa05   : > { %v2751_v40 = vadd.f32 %v6369_v29, %v2750_v30  ;;  %v2752_v43 = vpop.f32.mrb[75].mxu0  ;;  %v2853_v50 = vsel %vm2023_vm10, %v2850_v23, %v2852_v39  ;;  %v2924_v33 = vsel %vm2097_vm11, %v2922_v35, %v2923_v54  ;;  %v2967_v51 = vsel %vm2142_vm12, %v2965_v61, %v2966_v34 }
 0xa06   : > { %2862 = vrot.lane.b32.xlu1 %v2853_v50, %s5306_s22  ;;  %2933 = vrot.lane.b32.xlu0 %v2924_v33, %s5309_s26  ;;  %v2820_v55 = vsel %vm396_vm1, %v2817_v3, %v2819_v37  ;;  %v6434_v32 = vadd.f32 %v2748_v42, %v6112_v58  ;;  %2981 = vst.msk [vmem:[#allocation3 + $0x8] sm:$0xff] %vm539_vm4, %v2967_v51  ;;  %v2974_v35 = vrot.slane %v2958_v6, 2  ;;  %v2931_v61 = vrot.slane %v2915_v52, 1  ;;  %v6536_v6 = vld [vmem:[%s6906_s3 + $0x8] ss:$0 sm:$0xff] }
 0xa07   : > { %v6437_v41 = vadd.f32 %v2751_v40, %v6115_v59  ;;  %2833 = vst.msk [vmem:[#allocation3 + $0x10] sm:$0xff] %vm539_vm4, %v2820_v55 }
 0xa09   : > { %v2776_v21 = vpack.c.bf16 %v6437_v41, %v6434_v32 }
 0xa0a   : > { %v2755_v45 = vpop.f32.mrb[76].mxu0  ;;  %2892 = vrot.lane.b32.xlu0 %v2839_v4, %s5307_s25  ;;  %v2912_v25 = vld [vmem:[#allocation2 + $0x18] sm:$0xff] }
 0xa0b   : > { %2781 = vst.msk [vmem:[#allocation2 + $0x20] sm:$0xff] %vm539_vm4, %v2776_v21  ;;  %v2756_v22 = vadd.f32 %v6369_v29, %v2755_v45  ;;  %v2757_v58 = vpop.f32.mrb[77].mxu0  ;;  %v2925_v15 = vrot.slane %v2912_v25, 1  ;;  %v2854_v56 = vrot.slane %v2912_v25, 7  ;;  %v2821_v59 = vrot.slane %v2912_v25, 6 }
 0xa0c   : > { %v2758_v44 = vpop.f32.mrb[78].mxu0  ;;  %v2968_v57 = vrot.slane %v2912_v25, 2 }
 0xa0d   : > { %v2759_v49 = vadd.f32 %v6369_v29, %v2758_v44  ;;  %v2760_v0 = vpop.f32.mrb[79].mxu0  ;;  %v2926_v16 = vsel %vm2097_vm11, %v2923_v54, %v2925_v15  ;;  %v2855_v13 = vsel %vm2023_vm10, %v2852_v39, %v2854_v56  ;;  %v2987_v14 = vld [vmem:[#allocation3 + $0x8] sm:$0xff]  ;;  %v2822_v23 = vsel %vm396_vm1, %v2819_v37, %v2821_v59 }
 0xa0e   : > { %2935 = vrot.lane.b32.xlu1 %v2926_v16, %s5309_s26  ;;  %2864 = vrot.lane.b32.xlu0 %v2855_v13, %s5306_s22  ;;  %v2969_v3 = vsel %vm2142_vm12, %v2966_v34, %v2968_v57  ;;  %v6454_v7 = vadd.f32 %v2756_v22, %v6132_v8  ;;  %2834 = vst.msk [vmem:[#allocation3 + $0x20] sm:$0xff] %vm539_vm4, %v2822_v23 }
 0xa0f   : > { %v6457_v11 = vadd.f32 %v2759_v49, %v6135_v12  ;;  %4435 = vmatprep.mubr.msk.bf16.mxu1 %vm539_vm4, %v2987_v14  ;;  %2982 = vst.msk [vmem:[#allocation3 + $0x18] sm:$0xff] %vm539_vm4, %v2969_v3 }
 0xa11   : > { %v2777_v29 = vpack.c.bf16 %v6457_v11, %v6454_v7 }
 0xa12   : > { %2894 = vrot.lane.b32.xlu1 %v2912_v25, %s5307_s25  ;;  %v2841_v47 = vld [vmem:[#allocation2 + $0x20] sm:$0xff] }
 0xa13   : > { %2782 = vst.msk [vmem:[#allocation2 + $0x28] sm:$0xff] %vm539_vm4, %v2777_v29  ;;  %v2856_v53 = vrot.slane %v2841_v47, 7  ;;  %v2927_v8 = vrot.slane %v2841_v47, 1  ;;  %v2823_v38 = vrot.slane %v2841_v47, 6  ;;  %v2970_v19 = vrot.slane %v2841_v47, 2 }
 0xa15   : > { %v2857_v12 = vsel %vm2023_vm10, %v2854_v56, %v2856_v53  ;;  %v2928_v63 = vsel %vm2097_vm11, %v2925_v15, %v2927_v8  ;;  %v2824_v5 = vsel %vm396_vm1, %v2821_v59, %v2823_v38  ;;  %v2971_v1 = vsel %vm2142_vm12, %v2968_v57, %v2970_v19 }
 0xa16   : > { %2866 = vrot.lane.b32.xlu1 %v2857_v12, %s5306_s22  ;;  %2937 = vrot.lane.b32.xlu0 %v2928_v63, %s5309_s26  ;;  %2835 = vst.msk [vmem:[#allocation3 + $0x30] sm:$0xff] %vm539_vm4, %v2824_v5  ;;  %2983 = vst.msk [vmem:[#allocation3 + $0x28] sm:$0xff] %vm539_vm4, %v2971_v1  ;;  %v2989_v15 = vld [vmem:[#allocation3 + $0x18] sm:$0xff]  ;;  %v4946_v63 = vld [vmem:[%s6908_s5 + $0x108] sm:$0xff]  }
 0xa17   : > { %v4945_v12 = vld [vmem:[%s6908_s5 + $0x100] sm:$0xff]   ;;  %v4947_v5 = vld [vmem:[%s6908_s5 + $0x110] sm:$0xff]   ;;  %v4948_v1 = vld [vmem:[%s6908_s5 + $0x118] sm:$0xff]  }
 0xa1a   : > { %2896 = vrot.lane.b32.xlu0 %v2841_v47, %s5307_s25  ;;  %v2914_v31 = vld [vmem:[#allocation2 + $0x28] sm:$0xff] }
 0xa1b   : > { %v2842_v26 = vld [vmem:[#allocation2 + $0x28] sm:$0x7f]  ;;  %v2929_v42 = vrot.slane %v2914_v31, 1  ;;  %v2972_v54 = vrot.slane %v2914_v31, 2 }
 0xa1c   : > { %v2809_v4 = vld [vmem:[#allocation2 + $0x28] sm:$0x3f]  ;;  %v2858_v48 = vrot.slane %v2842_v26, 7 }
 0xa1d   : > { %v2825_v39 = vrot.slane %v2809_v4, 6  ;;  %v2930_v34 = vsel %vm2097_vm11, %v2927_v8, %v2929_v42  ;;  %v2973_v40 = vsel %vm2142_vm12, %v2970_v19, %v2972_v54  ;;  %v2975_v43 = vsel %vm2142_vm12, %v2972_v54, %v2974_v35  ;;  %v2991_v49 = vld [vmem:[#allocation3 + $0x28] sm:$0xff]  ;;  %v4944_v19 = vld [vmem:[%s6908_s5 + $0xf8] sm:$0xff]  }
 0xa1e   : > { %v2859_v30 = vsel %vm2023_vm10, %v2856_v53, %v2858_v48  ;;  %2939 = vrot.lane.b32.xlu1 %v2930_v34, %s5309_s26  ;;  %2984 = vst.msk [vmem:[#allocation3 + $0x38] sm:$0xff] %vm539_vm4, %v2973_v40  ;;  %2985 = vst.msk [vmem:[#allocation3 + $0x48] sm:$0xff] %vm539_vm4, %v2975_v43  ;;  %v2932_v50 = vsel %vm2097_vm11, %v2929_v42, %v2931_v61 }
 0xa1f   : > { %v2826_v37 = vsel %vm396_vm1, %v2823_v38, %v2825_v39  ;;  %2868 = vrot.lane.b32.xlu0 %v2859_v30, %s5306_s22  ;;  %v4943_v38 = vld [vmem:[%s6908_s5 + $0xf0] sm:$0xff]  }
 0xa20   : > { %2836 = vst.msk [vmem:[#allocation3 + $0x40] sm:$0xff] %vm539_vm4, %v2826_v37  ;;  %3512 = vmatpush1.bf16.msra.mxu0 %v4943_v38 }
 0xa21   : > { %3513 = vmatprep.subr.bf16.mxu0 %v5308_v20 }
 0xa22   : > { %2898 = vrot.lane.b32.xlu1 %v2914_v31, %s5307_s25 }
 0xa23   : > { %2941 = vrot.lane.b32.xlu0 %v2932_v50, %s5309_s26 }
 0xa24   : > { %3514 = vmatpush1.bf16.msra.mxu0 %v4944_v19 }
 0xa25   : > { %v2993_v23 = vld [vmem:[#allocation3 + $0x38] sm:$0xff]  ;;  %v2995_v53 = vld [vmem:[#allocation3 + $0x48] sm:$0xff]  ;;  %3515 = vmatprep.subr.bf16.mxu0 %v5308_v20 }
 0xa28   : > { %3516 = vmatpush1.bf16.msra.mxu0 %v4945_v12 }
 0xa29   : > { %3517 = vmatprep.subr.bf16.mxu0 %v5308_v20 }
 0xa2c   : > { %3518 = vmatpush1.bf16.msra.mxu0 %v4946_v63 }
 0xa2d   : > { %3519 = vmatprep.subr.bf16.mxu0 %v5308_v20 }
 0xa30   : > { %3520 = vmatpush1.bf16.msra.mxu0 %v4947_v5 }
 0xa31   : > { %3521 = vmatprep.subr.bf16.mxu0 %v5308_v20 }
 0xa34   : > { %3522 = vmatpush1.bf16.msra.mxu0 %v4948_v1 }
 0xa35   : > { %3523 = vmatprep.subr.bf16.mxu0 %v5308_v20 }
 0xa6c   : > { %v2891_v51 = vpop.permute.xlu1 %2890 }
 0xa6f   : > { %v2861_v33 = vpop.permute.xlu0 %2860 }
 0xa70   : > { %2875 = vst.msk [vmem:[#allocation3] sm:$0xff] %vm643_vm7, %v2861_v33 }
 0xa71   : > { %2905 = vst.msk [vmem:[#allocation3] sm:$0xff] %vm715_vm8, %v2891_v51 }
 0xa78   : > { %v2863_v55 = vpop.permute.xlu1 %2862  ;;  %v2934_v21 = vpop.permute.xlu0 %2933 }
 0xa79   : > { %2876 = vst.msk [vmem:[#allocation3 + $0x10] sm:$0xff] %vm643_vm7, %v2863_v55 }
 0xa7a   : > { %2948 = vst.msk [vmem:[#allocation3] sm:$0xff] %vm2124_vm13, %v2934_v21 }
 0xa7c   : > { %v2893_v45 = vpop.permute.xlu0 %2892 }
 0xa7d   : > { %2906 = vst.msk [vmem:[#allocation3 + $0x10] sm:$0xff] %vm715_vm8, %v2893_v45 }
 0xa80   : > { %v2936_v25 = vpop.permute.xlu1 %2935  ;;  %v2865_v22 = vpop.permute.xlu0 %2864 }
 0xa81   : > { %v2986_v58 = vld [vmem:[#allocation3] sm:$0xff]  ;;  %2949 = vst.msk [vmem:[#allocation3 + $0x10] sm:$0xff] %vm2124_vm13, %v2936_v25 }
 0xa82   : > { %2877 = vst.msk [vmem:[#allocation3 + $0x20] sm:$0xff] %vm643_vm7, %v2865_v22  ;;  %3108 = vmatmul.mubr.bf16.vlgmr.msra.gmra.mrb[60].mxu1 %v2986_v58 }
 0xa83   : > { %4436 = vmatprep.mubr.msk.bf16.mxu1 %vm539_vm4, %v2989_v15 }
 0xa84   : > { %v2895_v56 = vpop.permute.xlu1 %2894 }
 0xa85   : > { %2907 = vst.msk [vmem:[#allocation3 + $0x20] sm:$0xff] %vm715_vm8, %v2895_v56 }
 0xa88   : > { %v2867_v59 = vpop.permute.xlu1 %2866  ;;  %v2938_v44 = vpop.permute.xlu0 %2937  ;;  %v2988_v57 = vld [vmem:[#allocation3 + $0x10] sm:$0xff] }
 0xa89   : > { %2878 = vst.msk [vmem:[#allocation3 + $0x30] sm:$0xff] %vm643_vm7, %v2867_v59 }
 0xa8a   : > { %2950 = vst.msk [vmem:[#allocation3 + $0x20] sm:$0xff] %vm2124_vm13, %v2938_v44  ;;  %3116 = vmatmul.mubr.bf16.gmra.mrb[64].mxu1 %v2988_v57 }
 0xa8b   : > { %4437 = vmatprep.mubr.msk.bf16.mxu1 %vm539_vm4, %v2991_v49 }
 0xa8c   : > { %v2897_v0 = vpop.permute.xlu0 %2896 }
 0xa8d   : > { %2908 = vst.msk [vmem:[#allocation3 + $0x30] sm:$0xff] %vm715_vm8, %v2897_v0 }
 0xa90   : > { %v2940_v16 = vpop.permute.xlu1 %2939 }
 0xa91   : > { %v2869_v13 = vpop.permute.xlu0 %2868  ;;  %v2990_v14 = vld [vmem:[#allocation3 + $0x20] sm:$0xff]  ;;  %2951 = vst.msk [vmem:[#allocation3 + $0x30] sm:$0xff] %vm2124_vm13, %v2940_v16 }
 0xa92   : > { %2879 = vst.msk [vmem:[#allocation3 + $0x40] sm:$0xff] %vm643_vm7, %v2869_v13  ;;  %3124 = vmatmul.mubr.bf16.gmra.mrb[68].mxu1 %v2990_v14 }
 0xa93   : > { %4438 = vmatprep.mubr.msk.bf16.mxu1 %vm539_vm4, %v2993_v23 }
 0xa94   : > { %v2899_v3 = vpop.permute.xlu1 %2898 }
 0xa95   : > { %v2942_v29 = vpop.permute.xlu0 %2941  ;;  %2909 = vst.msk [vmem:[#allocation3 + $0x40] sm:$0xff] %vm715_vm8, %v2899_v3 }
 0xa96   : > { %2952 = vst.msk [vmem:[#allocation3 + $0x40] sm:$0xff] %vm2124_vm13, %v2942_v29 }
 0xa98   : > { %v2992_v47 = vld [vmem:[#allocation3 + $0x30] sm:$0xff] }
 0xa9a   : > { %3132 = vmatmul.mubr.bf16.gmra.mrb[72].mxu1 %v2992_v47 }
 0xa9b   : > { %4439 = vmatprep.mubr.msk.bf16.mxu1 %vm539_vm4, %v2995_v53 }
 0xa9d   : > { %v2994_v8 = vld [vmem:[#allocation3 + $0x40] sm:$0xff] }
 0xaa2   : > { %3140 = vmatmul.mubr.bf16.gmra.mrb[76].mxu1 %v2994_v8 }
 0xaa3   : > { %4751 = vmatprep.mubr.msk.bf16.mxu1 %vm5305_vm2, %v5304_v2 }
 0xb55   : > { %v3109_v52 = vpop.f32.mrb[60].mxu1 }
 0xb56   : > { %v3110_v31 = vadd.f32 %v6536_v6, %v3109_v52  ;;  %v3111_v26 = vpop.f32.mrb[61].mxu1 }
 0xb57   : > { %v3112_v4 = vpop.f32.mrb[62].mxu1 }
 0xb58   : > { %v3148_v35 = vsub.f32 0.0, %v3110_v31  ;;  %v3113_v42 = vadd.f32 %v6536_v6, %v3112_v4  ;;  %v3114_v48 = vpop.f32.mrb[63].mxu1 }
 0xb5a   : > { %v3158_v39 = vmul.f32 1.442695, %v3148_v35  ;;  %v3149_v54 = vsub.f32 0.0, %v3113_v42 }
 0xb5c   : > { %5127 = vpow2.f32 %v3158_v39  ;;  %v3160_v34 = vmul.f32 1.442695, %v3149_v54 }
 0xb5d   : > { %v3117_v30 = vpop.f32.mrb[64].mxu1 }
 0xb5e   : > { %5129 = vpow2.f32 %v3160_v34  ;;  %v6541_v61 = vadd.f32 %v6536_v6, %v3117_v30  ;;  %v3119_v37 = vpop.f32.mrb[65].mxu1 }
 0xb5f   : > { %v3120_v40 = vpop.f32.mrb[66].mxu1 }
 0xb60   : > { %v3150_v43 = vsub.f32 0.0, %v6541_v61  ;;  %v6545_v50 = vadd.f32 %v6536_v6, %v3120_v40  ;;  %v3122_v33 = vpop.f32.mrb[67].mxu1 }
 0xb62   : > { %v3162_v51 = vmul.f32 1.442695, %v3150_v43  ;;  %v3151_v55 = vsub.f32 0.0, %v6545_v50 }
 0xb64   : > { %5131 = vpow2.f32 %v3162_v51  ;;  %v3164_v21 = vmul.f32 1.442695, %v3151_v55 }
 0xb65   : > { %v3125_v45 = vpop.f32.mrb[68].mxu1 }
 0xb66   : > { %v5128_v25 = vpop.eup %5127  ;;  %5133 = vpow2.f32 %v3164_v21  ;;  %v6549_v22 = vadd.f32 %v6536_v6, %v3125_v45  ;;  %v3127_v58 = vpop.f32.mrb[69].mxu1 }
 0xb67   : > { %v3178_v15 = vadd.f32 1.0, %v5128_v25  ;;  %v3128_v56 = vpop.f32.mrb[70].mxu1 }
 0xb68   : > { %v5130_v59 = vpop.eup %5129  ;;  %v3152_v44 = vsub.f32 0.0, %v6549_v22  ;;  %v6553_v57 = vadd.f32 %v6536_v6, %v3128_v56  ;;  %v3130_v49 = vpop.f32.mrb[71].mxu1 }
 0xb69   : > { %5135 = vrcp.f32 %v3178_v15  ;;  %v3179_v0 = vadd.f32 1.0, %v5130_v59  ;;  %v4950_v15 = vld [vmem:[%s6908_s5 + $0x128] sm:$0xff]   ;;  %v3240_v49 = vld [vmem:[#allocation2] sm:$0xc0] }
 0xb6a   : > { %v3166_v16 = vmul.f32 1.442695, %v3152_v44  ;;  %v3153_v13 = vsub.f32 0.0, %v6553_v57  ;;  %v3273_v44 = vld [vmem:[#allocation2] sm:$0x80] }
 0xb6b   : > { %5137 = vrcp.f32 %v3179_v0 }
 0xb6c   : > { %5139 = vpow2.f32 %v3166_v16  ;;  %v3168_v14 = vmul.f32 1.442695, %v3153_v13 }
 0xb6d   : > { %v3133_v23 = vpop.f32.mrb[72].mxu1 }
 0xb6e   : > { %v5132_v3 = vpop.eup %5131  ;;  %5141 = vpow2.f32 %v3168_v14  ;;  %v6557_v29 = vadd.f32 %v6536_v6, %v3133_v23  ;;  %v3135_v47 = vpop.f32.mrb[73].mxu1 }
 0xb6f   : > { %v3180_v53 = vadd.f32 1.0, %v5132_v3  ;;  %v3136_v8 = vpop.f32.mrb[74].mxu1  ;;  %v3285_v47 = vrot.slane %v3273_v44, 7 }
 0xb70   : > { %v5134_v38 = vpop.eup %5133  ;;  %v3154_v19 = vsub.f32 0.0, %v6557_v29  ;;  %v6561_v12 = vadd.f32 %v6536_v6, %v3136_v8  ;;  %v3138_v63 = vpop.f32.mrb[75].mxu1  ;;  %v4951_v8 = vld [vmem:[%s6908_s5 + $0x130] sm:$0xff]  }
 0xb71   : > { %5143 = vrcp.f32 %v3180_v53  ;;  %v3181_v5 = vadd.f32 1.0, %v5134_v38  ;;  %v3252_v53 = vrot.slane %v3240_v49, 6 }
 0xb72   : > { %v3170_v1 = vmul.f32 1.442695, %v3154_v19  ;;  %v3155_v52 = vsub.f32 0.0, %v6561_v12 }
 0xb73   : > { %v5136_v26 = vpop.eup %5135  ;;  %5145 = vrcp.f32 %v3181_v5 }
 0xb74   : > { %5147 = vpow2.f32 %v3170_v1  ;;  %v3172_v4 = vmul.f32 1.442695, %v3155_v52  ;;  %v3198_v54 = vmul.f32 %v5136_v26, %v3110_v31  ;;  %v4949_v31 = vld [vmem:[%s6908_s5 + $0x120] sm:$0xff]   ;;  %v4952_v52 = vld [vmem:[%s6908_s5 + $0x138] sm:$0xff]  }
 0xb75   : > { %v5138_v35 = vpop.eup %5137  ;;  %v3141_v48 = vpop.f32.mrb[76].mxu1  ;;  %3524 = vmatpush1.bf16.msra.mxu0 %v4949_v31 }
 0xb76   : > { %v5140_v39 = vpop.eup %5139  ;;  %v3199_v34 = vmul.f32 %v5138_v35, %v3113_v42  ;;  %5149 = vpow2.f32 %v3172_v4  ;;  %v6565_v30 = vadd.f32 %v6536_v6, %v3141_v48  ;;  %v3143_v37 = vpop.f32.mrb[77].mxu1  ;;  %3525 = vmatprep.subr.bf16.mxu0 %v5308_v20 }
 0xb77   : > { %v3182_v40 = vadd.f32 1.0, %v5140_v39  ;;  %v3144_v43 = vpop.f32.mrb[78].mxu1 }
 0xb78   : > { %v5142_v33 = vpop.eup %5141  ;;  %v3209_v51 = vpack.c.bf16 %v3199_v34, %v3198_v54  ;;  %v3156_v55 = vsub.f32 0.0, %v6565_v30  ;;  %v6569_v21 = vadd.f32 %v6536_v6, %v3144_v43  ;;  %v3146_v45 = vpop.f32.mrb[79].mxu1 }
 0xb79   : > { %5151 = vrcp.f32 %v3182_v40  ;;  %v3183_v42 = vadd.f32 1.0, %v5142_v33  ;;  %3526 = vmatpush1.bf16.msra.mxu0 %v4950_v15 }
 0xb7a   : > { %3214 = vst.msk [vmem:[#allocation2 + $0x8] sm:$0xff] %vm539_vm4, %v3209_v51  ;;  %v3174_v25 = vmul.f32 1.442695, %v3156_v55  ;;  %v3157_v58 = vsub.f32 0.0, %v6569_v21  ;;  %3527 = vmatprep.subr.bf16.mxu0 %v5308_v20 }
 0xb7b   : > { %v5144_v56 = vpop.eup %5143  ;;  %5153 = vrcp.f32 %v3183_v42 }
 0xb7c   : > { %5155 = vpow2.f32 %v3174_v25  ;;  %v3176_v6 = vmul.f32 1.442695, %v3157_v58  ;;  %v3200_v16 = vmul.f32 %v5144_v56, %v6541_v61 }
 0xb7d   : > { %v5146_v59 = vpop.eup %5145  ;;  %3528 = vmatpush1.bf16.msra.mxu0 %v4951_v8 }
 0xb7e   : > { %v5148_v0 = vpop.eup %5147  ;;  %v3201_v13 = vmul.f32 %v5146_v59, %v6545_v50  ;;  %5157 = vpow2.f32 %v3176_v6  ;;  %3529 = vmatprep.subr.bf16.mxu0 %v5308_v20 }
 0xb7f   : > { %v3184_v14 = vadd.f32 1.0, %v5148_v0 }
 0xb80   : > { %v5150_v23 = vpop.eup %5149  ;;  %v3210_v3 = vpack.c.bf16 %v3201_v13, %v3200_v16 }
 0xb81   : > { %5159 = vrcp.f32 %v3184_v14  ;;  %v3185_v38 = vadd.f32 1.0, %v5150_v23  ;;  %v3316_v19 = vld [vmem:[#allocation2 + $0x8] sm:$0xff]  ;;  %3530 = vmatpush1.bf16.msra.mxu0 %v4952_v52 }
 0xb82   : > { %3215 = vst.msk [vmem:[#allocation2 + $0x10] sm:$0xff] %vm539_vm4, %v3210_v3  ;;  %3326 = vrot.lane.b32.xlu0 %v3316_v19, %s5307_s25  ;;  %v3286_v61 = vrot.slane %v3316_v19, 7  ;;  %v3253_v50 = vrot.slane %v3316_v19, 6  ;;  %v3346_v39 = vld [vmem:[#allocation2 + $0x8] sm:$0xfe]  ;;  %4739 = vmatprep.subr.bf16.mxu0 %v5304_v2 }
 0xb83   : > { %v5152_v63 = vpop.eup %5151  ;;  %5161 = vrcp.f32 %v3185_v38  ;;  %v3389_v20 = vld [vmem:[#allocation2 + $0x8] sm:$0xfc]  ;;  %v3358_v33 = vrot.slane %v3346_v39, 1 }
 0xb84   : > { %v3287_v5 = vsel %vm2023_vm10, %v3285_v47, %v3286_v61  ;;  %v3254_v1 = vsel %vm396_vm1, %v3252_v53, %v3253_v50  ;;  %v3202_v35 = vmul.f32 %v5152_v63, %v6549_v22  ;;  %v3401_v51 = vrot.slane %v3389_v20, 2 }
 0xb85   : > { %v5154_v26 = vpop.eup %5153  ;;  %3296 = vrot.lane.b32.xlu1 %v3287_v5, %s5306_s22  ;;  %3268 = vst.msk [vmem:[#allocation3] sm:$0xff] %vm539_vm4, %v3254_v1 }
 0xb86   : > { %v5156_v4 = vpop.eup %5155  ;;  %v3203_v48 = vmul.f32 %v5154_v26, %v6553_v57 }
 0xb87   : > { %v3186_v54 = vadd.f32 1.0, %v5156_v4 }
 0xb88   : > { %v5158_v34 = vpop.eup %5157  ;;  %v3211_v37 = vpack.c.bf16 %v3203_v48, %v3202_v35  ;;  %v3394_v35 = vld [vmem:[#allocation2 + $0x30] sm:$0x3] }
 0xb89   : > { %5163 = vrcp.f32 %v3186_v54  ;;  %v3187_v40 = vadd.f32 1.0, %v5158_v34  ;;  %v3275_v43 = vld [vmem:[#allocation2 + $0x10] sm:$0xff]  ;;  %v3410_v34 = vrot.slane %v3394_v35, 2 }
 0xb8a   : > { %3216 = vst.msk [vmem:[#allocation2 + $0x18] sm:$0xff] %vm539_vm4, %v3211_v37  ;;  %v3288_v55 = vrot.slane %v3275_v43, 7  ;;  %v3359_v45 = vrot.slane %v3275_v43, 1  ;;  %v3402_v22 = vrot.slane %v3275_v43, 2  ;;  %v3255_v31 = vrot.slane %v3275_v43, 6 }
 0xb8b   : > { %v5160_v57 = vpop.eup %5159  ;;  %5165 = vrcp.f32 %v3187_v40  ;;  %v3351_v48 = vld [vmem:[#allocation2 + $0x30] sm:$0x1] }
 0xb8c   : > { %v3289_v42 = vsel %vm2023_vm10, %v3286_v61, %v3288_v55  ;;  %v3360_v25 = vsel %vm2097_vm11, %v3358_v33, %v3359_v45  ;;  %v3403_v58 = vsel %vm2142_vm12, %v3401_v51, %v3402_v22  ;;  %v3256_v56 = vsel %vm396_vm1, %v3253_v50, %v3255_v31 }
 0xb8d   : > { %v5162_v15 = vpop.eup %5161  ;;  %3298 = vrot.lane.b32.xlu0 %v3289_v42, %s5306_s22  ;;  %3369 = vrot.lane.b32.xlu1 %v3360_v25, %s5309_s26  ;;  %3417 = vst.msk [vmem:[#allocation3 + $0x8] sm:$0xff] %vm539_vm4, %v3403_v58  ;;  %v3204_v6 = vmul.f32 %v5160_v57, %v6557_v29  ;;  %3269 = vst.msk [vmem:[#allocation3 + $0x10] sm:$0xff] %vm539_vm4, %v3256_v56 }
 0xb8e   : > { %v3205_v59 = vmul.f32 %v5162_v15, %v6561_v12 }
 0xb90   : > { %v3212_v44 = vpack.c.bf16 %v3205_v59, %v3204_v6 }
 0xb91   : > { %3328 = vrot.lane.b32.xlu1 %v3275_v43, %s5307_s25  ;;  %v3348_v49 = vld [vmem:[#allocation2 + $0x18] sm:$0xff] }
 0xb92   : > { %3217 = vst.msk [vmem:[#allocation2 + $0x20] sm:$0xff] %vm539_vm4, %v3212_v44  ;;  %v3361_v0 = vrot.slane %v3348_v49, 1  ;;  %v3290_v16 = vrot.slane %v3348_v49, 7  ;;  %v3257_v13 = vrot.slane %v3348_v49, 6  ;;  %v3404_v14 = vrot.slane %v3348_v49, 2 }
 0xb93   : > { %v5164_v23 = vpop.eup %5163 }
 0xb94   : > { %v3423_v3 = vld [vmem:[#allocation3 + $0x8] sm:$0xff]  ;;  %v3362_v47 = vsel %vm2097_vm11, %v3359_v45, %v3361_v0  ;;  %v3291_v29 = vsel %vm2023_vm10, %v3288_v55, %v3290_v16  ;;  %v3258_v12 = vsel %vm396_vm1, %v3255_v31, %v3257_v13  ;;  %v3405_v8 = vsel %vm2142_vm12, %v3402_v22, %v3404_v14 }
 0xb95   : > { %v5166_v53 = vpop.eup %5165  ;;  %4471 = vmatprep.mubr.msk.bf16.mxu0 %vm539_vm4, %v3423_v3  ;;  %3371 = vrot.lane.b32.xlu0 %v3362_v47, %s5309_s26  ;;  %3270 = vst.msk [vmem:[#allocation3 + $0x20] sm:$0xff] %vm539_vm4, %v3258_v12  ;;  %v3206_v38 = vmul.f32 %v5164_v23, %v6565_v30  ;;  %3418 = vst.msk [vmem:[#allocation3 + $0x18] sm:$0xff] %vm539_vm4, %v3405_v8  ;;  %v3367_v45 = vrot.slane %v3351_v48, 1 }
 0xb96   : > { %v3207_v19 = vmul.f32 %v5166_v53, %v6569_v21  ;;  %3300 = vrot.lane.b32.xlu1 %v3291_v29, %s5306_s22 }
 0xb98   : > { %v3213_v61 = vpack.c.bf16 %v3207_v19, %v3206_v38 }
 0xb99   : > { %3330 = vrot.lane.b32.xlu0 %v3348_v49, %s5307_s25  ;;  %v3277_v50 = vld [vmem:[#allocation2 + $0x20] sm:$0xff] }
 0xb9a   : > { %3218 = vst.msk [vmem:[#allocation2 + $0x28] sm:$0xff] %vm539_vm4, %v3213_v61  ;;  %v3292_v63 = vrot.slane %v3277_v50, 7  ;;  %v3363_v5 = vrot.slane %v3277_v50, 1  ;;  %v3259_v1 = vrot.slane %v3277_v50, 6  ;;  %v3406_v52 = vrot.slane %v3277_v50, 2 }
 0xb9c   : > { %v3293_v26 = vsel %vm2023_vm10, %v3290_v16, %v3292_v63  ;;  %v3364_v30 = vsel %vm2097_vm11, %v3361_v0, %v3363_v5  ;;  %v3260_v21 = vsel %vm396_vm1, %v3257_v13, %v3259_v1  ;;  %v3407_v4 = vsel %vm2142_vm12, %v3404_v14, %v3406_v52  ;;  %v3425_v0 = vld [vmem:[#allocation3 + $0x18] sm:$0xff] }
 0xb9d   : > { %3302 = vrot.lane.b32.xlu0 %v3293_v26, %s5306_s22  ;;  %3373 = vrot.lane.b32.xlu1 %v3364_v30, %s5309_s26  ;;  %3271 = vst.msk [vmem:[#allocation3 + $0x30] sm:$0xff] %vm539_vm4, %v3260_v21  ;;  %3419 = vst.msk [vmem:[#allocation3 + $0x28] sm:$0xff] %vm539_vm4, %v3407_v4 }
 0xba1   : > { %3332 = vrot.lane.b32.xlu1 %v3277_v50, %s5307_s25  ;;  %v3350_v39 = vld [vmem:[#allocation2 + $0x28] sm:$0xff] }
 0xba2   : > { %v3278_v20 = vld [vmem:[#allocation2 + $0x28] sm:$0x7f]  ;;  %v3365_v37 = vrot.slane %v3350_v39, 1  ;;  %v3408_v33 = vrot.slane %v3350_v39, 2 }
 0xba3   : > { %v3245_v54 = vld [vmem:[#allocation2 + $0x28] sm:$0x3f]  ;;  %v3294_v40 = vrot.slane %v3278_v20, 7 }
 0xba4   : > { %v3261_v43 = vrot.slane %v3245_v54, 6  ;;  %v3366_v51 = vsel %vm2097_vm11, %v3363_v5, %v3365_v37  ;;  %v3409_v31 = vsel %vm2142_vm12, %v3406_v52, %v3408_v33  ;;  %v3411_v57 = vsel %vm2142_vm12, %v3408_v33, %v3410_v34  ;;  %v4956_v50 = vld [vmem:[%s6905_s2 + $0x18] sm:$0xff]  }
 0xba5   : > { %v3295_v55 = vsel %vm2023_vm10, %v3292_v63, %v3294_v40  ;;  %3375 = vrot.lane.b32.xlu0 %v3366_v51, %s5309_s26  ;;  %3420 = vst.msk [vmem:[#allocation3 + $0x38] sm:$0xff] %vm539_vm4, %v3409_v31  ;;  %3421 = vst.msk [vmem:[#allocation3 + $0x48] sm:$0xff] %vm539_vm4, %v3411_v57  ;;  %v3368_v42 = vsel %vm2097_vm11, %v3365_v37, %v3367_v45  ;;  %v4460_v63 = vld [vmem:[%s6906_s3 + $0x9] ss:$0 sm:$0xff] }
 0xba6   : > { %v3262_v22 = vsel %vm396_vm1, %v3259_v1, %v3261_v43  ;;  %3304 = vrot.lane.b32.xlu1 %v3295_v55, %s5306_s22 }
 0xba7   : > { %3272 = vst.msk [vmem:[#allocation3 + $0x40] sm:$0xff] %vm539_vm4, %v3262_v22 }
 0xba9   : > { %3334 = vrot.lane.b32.xlu0 %v3350_v39, %s5307_s25 }
 0xbaa   : > { %3377 = vrot.lane.b32.xlu1 %v3368_v42, %s5309_s26  ;;  %s5239_s26 = scalar_lea.vmem %s6857_s23, 1024 }
 0xbab   : > { %p5240_p12 = scmp.ne.s32.totalorder %s6857_s23, %s5239_s26  ;;  %p5247_p2 = scmp.lt.s32.totalorder %s5245_s16, %s5239_s26 }
 0xbac   : > { %v3429_v53 = vld [vmem:[#allocation3 + $0x38] sm:$0xff]  ;;  %v3431_v19 = vld [vmem:[#allocation3 + $0x48] sm:$0xff] }
 0xbad   : > { %p5241_p13 = pnand %p5240_p12, %p5401_p5  ;;  %p5248_p3 = por %p5247_p2, %p5246_p1 }
 0xbaf   : > { %p5242_p0 = pneg %p5241_p13 }
 0xbb1   : > { %p5249_p4 = pnand %p5248_p3, %p5242_p0 }
 0xbf4   : > { %v3327_v58 = vpop.permute.xlu0 %3326 }
 0xbf7   : > { %v3297_v25 = vpop.permute.xlu1 %3296 }
 0xbf8   : > { %3311 = vst.msk [vmem:[#allocation3] sm:$0xff] %vm643_vm7, %v3297_v25 }
 0xbf9   : > { %3341 = vst.msk [vmem:[#allocation3] sm:$0xff] %vm715_vm8, %v3327_v58 }
 0xbff   : > { %v3299_v15 = vpop.permute.xlu0 %3298  ;;  %v3370_v56 = vpop.permute.xlu1 %3369 }
 0xc00   : > { %3312 = vst.msk [vmem:[#allocation3 + $0x10] sm:$0xff] %vm643_vm7, %v3299_v15 }
 0xc01   : > { %3384 = vst.msk [vmem:[#allocation3] sm:$0xff] %vm2124_vm13, %v3370_v56 }
 0xc03   : > { %v3329_v6 = vpop.permute.xlu1 %3328 }
 0xc04   : > { %3342 = vst.msk [vmem:[#allocation3 + $0x10] sm:$0xff] %vm715_vm8, %v3329_v6 }
 0xc07   : > { %v3372_v59 = vpop.permute.xlu0 %3371 }
 0xc08   : > { %v3422_v44 = vld [vmem:[#allocation3] sm:$0xff]  ;;  %3385 = vst.msk [vmem:[#allocation3 + $0x10] sm:$0xff] %vm2124_vm13, %v3372_v59  ;;  %v3301_v49 = vpop.permute.xlu1 %3300 }
 0xc09   : > { %3544 = vmatmul.mubr.bf16.vlgmr.msra.gmra.mrb[80].mxu0 %v3422_v44  ;;  %3607 = vst.msk [vmem:[#allocation3] sm:$0xff] %vm539_vm4, %v5509_v9  ;;  %v3427_v9 = vld [vmem:[#allocation3 + $0x28] sm:$0xff] }
 0xc0a   : > { %3313 = vst.msk [vmem:[#allocation3 + $0x20] sm:$0xff] %vm643_vm7, %v3301_v49  ;;  %4472 = vmatprep.mubr.msk.bf16.mxu0 %vm539_vm4, %v3425_v0 }
 0xc0b   : > { %v3331_v16 = vpop.permute.xlu0 %3330 }
 0xc0c   : > { %3343 = vst.msk [vmem:[#allocation3 + $0x20] sm:$0xff] %vm715_vm8, %v3331_v16 }
 0xc0f   : > { %v3303_v13 = vpop.permute.xlu0 %3302  ;;  %v3374_v14 = vpop.permute.xlu1 %3373  ;;  %v3424_v23 = vld [vmem:[#allocation3 + $0x10] sm:$0xff] }
 0xc10   : > { %3314 = vst.msk [vmem:[#allocation3 + $0x30] sm:$0xff] %vm643_vm7, %v3303_v13 }
 0xc11   : > { %3386 = vst.msk [vmem:[#allocation3 + $0x20] sm:$0xff] %vm2124_vm13, %v3374_v14  ;;  %3552 = vmatmul.mubr.bf16.gmra.mrb[84].mxu0 %v3424_v23 }
 0xc12   : > { %3608 = vst.msk [vmem:[#allocation3 + $0x10] sm:$0xff] %vm539_vm4, %v5531_v28  ;;  %4473 = vmatprep.mubr.msk.bf16.mxu0 %vm539_vm4, %v3427_v9 }
 0xc13   : > { %v3333_v3 = vpop.permute.xlu1 %3332 }
 0xc14   : > { %3344 = vst.msk [vmem:[#allocation3 + $0x30] sm:$0xff] %vm715_vm8, %v3333_v3 }
 0xc17   : > { %v3376_v47 = vpop.permute.xlu0 %3375 }
 0xc18   : > { %v3305_v29 = vpop.permute.xlu1 %3304  ;;  %v3426_v12 = vld [vmem:[#allocation3 + $0x20] sm:$0xff]  ;;  %3387 = vst.msk [vmem:[#allocation3 + $0x30] sm:$0xff] %vm2124_vm13, %v3376_v47 }
 0xc19   : > { %3315 = vst.msk [vmem:[#allocation3 + $0x40] sm:$0xff] %vm643_vm7, %v3305_v29  ;;  %3560 = vmatmul.mubr.bf16.gmra.mrb[88].mxu0 %v3426_v12 }
 0xc1a   : > { %3609 = vst.msk [vmem:[#allocation3 + $0x20] sm:$0xff] %vm539_vm4, %v5552_v46  ;;  %4474 = vmatprep.mubr.msk.bf16.mxu0 %vm539_vm4, %v3429_v53  ;;  %v4953_v46 = vld [vmem:[%s6905_s2] sm:$0xff]  }
 0xc1b   : > { %v3335_v28 = vpop.permute.xlu0 %3334  ;;  %4740 = vmatpush3.bf16.msra.mxu0 %v4953_v46  ;;  %4831 = vmatpush3.bf16.msra.mxu1 %v4953_v46 }
 0xc1c   : > { %v3378_v8 = vpop.permute.xlu1 %3377  ;;  %3345 = vst.msk [vmem:[#allocation3 + $0x40] sm:$0xff] %vm715_vm8, %v3335_v28  ;;  %4741 = vmatprep.subr.bf16.mxu0 %v5304_v2  ;;  %4828 = vmatprep.subr.bf16.mxu1 %v5304_v2 }
 0xc1d   : > { %3388 = vst.msk [vmem:[#allocation3 + $0x40] sm:$0xff] %vm2124_vm13, %v3378_v8 }
 0xc1f   : > { %v3428_v38 = vld [vmem:[#allocation3 + $0x30] sm:$0xff] }
 0xc20   : > { %3610 = vst.msk [vmem:[#allocation3 + $0x30] sm:$0xff] %vm539_vm4, %v5570_v62  ;;  %v4954_v62 = vld [vmem:[%s6905_s2 + $0x8] sm:$0xff]  }
 0xc21   : > { %3568 = vmatmul.mubr.bf16.gmra.mrb[92].mxu0 %v3428_v38  ;;  %4832 = vmatpush3.bf16.msra.mxu1 %v4954_v62  ;;  %v4957_v38 = vld [vmem:[%s6909_s6] sm:$0xff]  }
 0xc22   : > { %4475 = vmatprep.mubr.msk.bf16.mxu0 %vm539_vm4, %v3431_v19  ;;  %4742 = vmatpush3.bf16.msra.mxu0 %v4954_v62  ;;  %v4958_v19 = vld [vmem:[%s6909_s6 + $0x8] sm:$0xff]  }
 0xc23   : > { %4743 = vmatprep.subr.bf16.mxu0 %v5304_v2  ;;  %4829 = vmatprep.subr.bf16.mxu1 %v5304_v2 }
 0xc24   : > { %v3430_v61 = vld [vmem:[#allocation3 + $0x40] sm:$0xff] }
 0xc25   : > { %3611 = vst.msk [vmem:[#allocation3 + $0x40] sm:$0xff] %vm539_vm4, %v5587_v17  ;;  %v4955_v17 = vld [vmem:[%s6905_s2 + $0x10] sm:$0xff]  }
 0xc26   : > { %4744 = vmatpush3.bf16.msra.mxu0 %v4955_v17  ;;  %4833 = vmatpush3.bf16.msra.mxu1 %v4955_v17 }
 0xc27   : > { %4745 = vmatprep.subr.bf16.mxu0 %v5304_v2  ;;  %4830 = vmatprep.subr.bf16.mxu1 %v5304_v2 }
 0xc29   : > { %3576 = vmatmul.mubr.bf16.gmra.mrb[96].mxu0 %v3430_v61  ;;  %v4476_v61 = vld [vmem:[%s6906_s3 + $0x1] ss:$0 sm:$0xff] }
 0xc2a   : > { %4747 = vmatprep.mubr.msk.bf16.mxu0 %vm5305_vm2, %v5304_v2  ;;  %4746 = vmatpush3.bf16.msra.mxu0 %v4956_v50 }
 0xc2b   : > { %4834 = vmatpush3.bf16.msra.mxu1 %v4956_v50  ;;  %4767 = vmatprep.subr.bf16.mxu0 %v5304_v2  ;;  %v4486_v50 = vld [vmem:[%s6906_s3 + $0xa] ss:$0 sm:$0xff] }
 0xc2c   : > { %4791 = vmatprep.subr.bf16.mxu1 %v5304_v2 }
 0xcdc   : > { %v3545_v5 = vpop.f32.mrb[80].mxu0 }
 0xcdd   : > { %v3546_v1 = vadd.f32 %v4460_v63, %v3545_v5  ;;  %v3547_v52 = vpop.f32.mrb[81].mxu0 }
 0xcde   : > { %v3548_v26 = vpop.f32.mrb[82].mxu0 }
 0xcdf   : > { %v3549_v30 = vadd.f32 %v4460_v63, %v3548_v26  ;;  %v3550_v21 = vpop.f32.mrb[83].mxu0  ;;  %v3584_v4 = vadd.f32 %v3546_v1, %v6374_v24 }
 0xce1   : > { %v3585_v35 = vadd.f32 %v3549_v30, %v6377_v10 }
 0xce3   : > { %v3594_v48 = vpack.c.bf16 %v3585_v35, %v3584_v4 }
 0xce4   : > { %v3553_v39 = vpop.f32.mrb[84].mxu0 }
 0xce5   : > { %v3554_v20 = vadd.f32 %v4460_v63, %v3553_v39  ;;  %v3555_v54 = vpop.f32.mrb[85].mxu0  ;;  %3617 = vrot.lane.b32.xlu0 %v3594_v48, %s5306_s22 }
 0xce6   : > { %v3556_v34 = vpop.f32.mrb[86].mxu0 }
 0xce7   : > { %v3557_v37 = vadd.f32 %v4460_v63, %v3556_v34  ;;  %v3558_v40 = vpop.f32.mrb[87].mxu0  ;;  %v3586_v43 = vadd.f32 %v3554_v20, %v6392_v60 }
 0xce9   : > { %v3587_v33 = vadd.f32 %v3557_v37, %v6395_v18 }
 0xceb   : > { %v3595_v51 = vpack.c.bf16 %v3587_v33, %v3586_v43 }
 0xcec   : > { %v3561_v55 = vpop.f32.mrb[88].mxu0 }
 0xced   : > { %v3562_v45 = vadd.f32 %v4460_v63, %v3561_v55  ;;  %v3563_v22 = vpop.f32.mrb[89].mxu0  ;;  %3619 = vrot.lane.b32.xlu1 %v3595_v51, %s5306_s22 }
 0xcee   : > { %v3564_v24 = vpop.f32.mrb[90].mxu0 }
 0xcef   : > { %v3565_v10 = vadd.f32 %v4460_v63, %v3564_v24  ;;  %v3566_v31 = vpop.f32.mrb[91].mxu0  ;;  %v3588_v57 = vadd.f32 %v3562_v45, %v6416_v36 }
 0xcf1   : > { %v3589_v42 = vadd.f32 %v3565_v10, %v6419_v27 }
 0xcf3   : > { %v3596_v25 = vpack.c.bf16 %v3589_v42, %v3588_v57 }
 0xcf4   : > { %v3569_v58 = vpop.f32.mrb[92].mxu0 }
 0xcf5   : > { %v3570_v15 = vadd.f32 %v4460_v63, %v3569_v58  ;;  %v3571_v56 = vpop.f32.mrb[93].mxu0  ;;  %3621 = vrot.lane.b32.xlu0 %v3596_v25, %s5306_s22 }
 0xcf6   : > { %v3572_v60 = vpop.f32.mrb[94].mxu0 }
 0xcf7   : > { %v3573_v18 = vadd.f32 %v4460_v63, %v3572_v60  ;;  %v3574_v6 = vpop.f32.mrb[95].mxu0  ;;  %v3590_v59 = vadd.f32 %v3570_v15, %v6434_v32 }
 0xcf9   : > { %v3591_v44 = vadd.f32 %v3573_v18, %v6437_v41 }
 0xcfb   : > { %v3597_v49 = vpack.c.bf16 %v3591_v44, %v3590_v59 }
 0xcfc   : > { %v3577_v0 = vpop.f32.mrb[96].mxu0 }
 0xcfd   : > { %v3578_v16 = vadd.f32 %v4460_v63, %v3577_v0  ;;  %v3579_v13 = vpop.f32.mrb[97].mxu0  ;;  %3623 = vrot.lane.b32.xlu1 %v3597_v49, %s5306_s22 }
 0xcfe   : > { %v3580_v36 = vpop.f32.mrb[98].mxu0 }
 0xcff   : > { %v3581_v27 = vadd.f32 %v4460_v63, %v3580_v36  ;;  %v3582_v14 = vpop.f32.mrb[99].mxu0  ;;  %v3592_v23 = vadd.f32 %v3578_v16, %v6454_v7 }
 0xd00   : > { %v4959_v14 = vld [vmem:[%s6910_s7] sm:$0xff]  }
 0xd01   : > { %v3593_v9 = vadd.f32 %v3581_v27, %v6457_v11 }
 0xd03   : > { %v3598_v3 = vpack.c.bf16 %v3593_v9, %v3592_v23  ;;  %v4960_v23 = vld [vmem:[%s6910_s7 + $0x8] sm:$0xff]   ;;  %v4961_v9 = vld [vmem:[%s6910_s7 + $0x10] sm:$0xff]  }
 0xd05   : > { %3625 = vrot.lane.b32.xlu0 %v3598_v3, %s5306_s22  ;;  %v4962_v3 = vld [vmem:[%s6910_s7 + $0x18] sm:$0xff]   ;;  %s6916_s22 = sand.u32 1, %s5293_s10  }
 0xd06   : > { %s6862_s25 = scalar_lea.sflag [#allocation5], %s6916_s22 }
 0xd57   : > { %v3618_v47 = vpop.permute.xlu0 %3617 }
 0xd58   : > { %3632 = vst.msk [vmem:[#allocation3] sm:$0xff] %vm643_vm7, %v3618_v47  ;;  %v4963_v47 = vld [vmem:[%s6910_s7 + $0x20] sm:$0xff]  }
 0xd5f   : > { %v3620_v32 = vpop.permute.xlu1 %3619  ;;  %v3637_v41 = vld [vmem:[#allocation3] sm:$0xff] }
 0xd60   : > { %3633 = vst.msk [vmem:[#allocation3 + $0x10] sm:$0xff] %vm643_vm7, %v3620_v32  ;;  %4748 = vmatmul.mubr.msk.bf16.vlgmr.msra.gmra.mrb[100].mxu0 %vm3671_vm14, %v3637_v41  ;;  %v4964_v32 = vld [vmem:[%s6910_s7 + $0x28] sm:$0xff]   ;;  %v4965_v41 = vld [vmem:[%s6910_s7 + $0x30] sm:$0xff]  }
 0xd61   : > { %4771 = vmatprep.mubr.msk.bf16.mxu0 %vm5305_vm2, %v5304_v2  ;;  %4768 = vmatpush3.bf16.msra.mxu0 %v4957_v38 }
 0xd62   : > { %4769 = vmatprep.subr.bf16.mxu0 %v5304_v2 }
 0xd65   : > { %4770 = vmatpush3.bf16.msra.mxu0 %v4958_v19 }
 0xd67   : > { %v3622_v29 = vpop.permute.xlu0 %3621  ;;  %v3638_v7 = vld [vmem:[#allocation3 + $0x10] sm:$0xff] }
 0xd68   : > { %3634 = vst.msk [vmem:[#allocation3 + $0x20] sm:$0xff] %vm643_vm7, %v3622_v29  ;;  %4752 = vmatmul.mubr.msk.bf16.vlgmr.msra.gmra.mrb[80].mxu1 %vm3671_vm14, %v3638_v7  ;;  %v4966_v29 = vld [vmem:[%s6910_s7 + $0x38] sm:$0xff]   ;;  %v6796_v7 = vld [vmem:[%s6911_s8] ss:$0 sm:$0xff] }
 0xd69   : > { %4755 = vmatprep.mubr.msk.bf16.mxu1 %vm5305_vm2, %v5304_v2  ;;  %4792 = vmatpush3.bf16.msra.mxu1 %v4959_v14 }
 0xd6a   : > { %4793 = vmatprep.subr.bf16.mxu1 %v5304_v2 }
 0xd6d   : > { %4794 = vmatpush3.bf16.msra.mxu1 %v4960_v23 }
 0xd6e   : > { %4795 = vmatprep.subr.bf16.mxu1 %v5304_v2 }
 0xd6f   : > { %v3624_v11 = vpop.permute.xlu1 %3623  ;;  %v3639_v12 = vld [vmem:[#allocation3 + $0x20] sm:$0xff] }
 0xd70   : > { %3635 = vst.msk [vmem:[#allocation3 + $0x30] sm:$0xff] %vm643_vm7, %v3624_v11  ;;  %4756 = vmatmul.mubr.msk.bf16.gmra.mrb[84].mxu1 %vm3671_vm14, %v3639_v12 }
 0xd71   : > { %4759 = vmatprep.mubr.msk.bf16.mxu1 %vm5305_vm2, %v5304_v2  ;;  %4796 = vmatpush3.bf16.msra.mxu1 %v4961_v9 }
 0xd72   : > { %4797 = vmatprep.subr.bf16.mxu1 %v5304_v2 }
 0xd75   : > { %4798 = vmatpush3.bf16.msra.mxu1 %v4962_v3 }
 0xd76   : > { %4799 = vmatprep.subr.bf16.mxu1 %v5304_v2 }
 0xd77   : > { %v3626_v53 = vpop.permute.xlu0 %3625  ;;  %v3640_v28 = vld [vmem:[#allocation3 + $0x30] sm:$0xff] }
 0xd78   : > { %3636 = vst.msk [vmem:[#allocation3 + $0x40] sm:$0xff] %vm643_vm7, %v3626_v53  ;;  %4760 = vmatmul.mubr.msk.bf16.gmra.mrb[88].mxu1 %vm3671_vm14, %v3640_v28 }
 0xd79   : > { %4763 = vmatprep.mubr.msk.bf16.mxu1 %vm5305_vm2, %v5304_v2  ;;  %4800 = vmatpush3.bf16.msra.mxu1 %v4963_v47 }
 0xd7a   : > { %4801 = vmatprep.subr.bf16.mxu1 %v5304_v2 }
 0xd7d   : > { %4802 = vmatpush3.bf16.msra.mxu1 %v4964_v32 }
 0xd7e   : > { %4803 = vmatprep.subr.bf16.mxu1 %v5304_v2 }
 0xd7f   : > { %v3641_v8 = vld [vmem:[#allocation3 + $0x40] sm:$0xff] }
 0xd80   : > { %4764 = vmatmul.mubr.msk.bf16.gmra.mrb[92].mxu1 %vm3671_vm14, %v3641_v8 }
 0xd81   : > { %4807 = vmatprep.mubr.msk.bf16.mxu1 %vm5305_vm2, %v5304_v2  ;;  %4804 = vmatpush3.bf16.msra.mxu1 %v4965_v41 }
 0xd82   : > { %4805 = vmatprep.subr.bf16.mxu1 %v5304_v2 }
 0xd85   : > { %4806 = vmatpush3.bf16.msra.mxu1 %v4966_v29 }
 0xe33   : > { %v3721_v46 = vpop.f32.mrb[100].mxu0 }
 0xe34   : > { %v3722_v62 = vadd.f32 %v4476_v61, %v3721_v46  ;;  %v4749_v17 = vpop.f32.mrb[101].mxu0 }
 0xe35   : > { %v3724_v63 = vpop.f32.mrb[102].mxu0 }
 0xe36   : > { %v3725_v5 = vadd.f32 %v4476_v61, %v3724_v63  ;;  %v4750_v1 = vpop.f32.mrb[103].mxu0  ;;  %v3765_v52 = vadd.f32 %v4486_v50, %v3722_v62 }
 0xe38   : > { %v3766_v26 = vadd.f32 %v4486_v50, %v3725_v5 }
 0xe3a   : > { %v3775_v30 = vpack.c.bf16 %v3766_v26, %v3765_v52 }
 0xe3b   : > { %v3729_v21 = vpop.f32.mrb[80].mxu1 }
 0xe3c   : > { %v3730_v4 = vadd.f32 %v4476_v61, %v3729_v21  ;;  %v4753_v35 = vpop.f32.mrb[81].mxu1  ;;  %4772 = vmatmul.mubr.msk.bf16.vlgmr.msra.gmra.mrb[104].mxu0 %vm539_vm4, %v3775_v30 }
 0xe3d   : > { %v3732_v48 = vpop.f32.mrb[82].mxu1  ;;  %4775 = vmatprep.mubr.msk.bf16.mxu0 %vm5305_vm2, %v5304_v2 }
 0xe3e   : > { %v3733_v39 = vadd.f32 %v4476_v61, %v3732_v48  ;;  %v4754_v20 = vpop.f32.mrb[83].mxu1  ;;  %v3767_v54 = vadd.f32 %v4486_v50, %v3730_v4 }
 0xe40   : > { %v3768_v34 = vadd.f32 %v4486_v50, %v3733_v39 }
 0xe42   : > { %v3776_v37 = vpack.c.bf16 %v3768_v34, %v3767_v54 }
 0xe43   : > { %v3737_v40 = vpop.f32.mrb[84].mxu1 }
 0xe44   : > { %v3738_v43 = vadd.f32 %v4476_v61, %v3737_v40  ;;  %v4757_v33 = vpop.f32.mrb[85].mxu1  ;;  %4776 = vmatmul.mubr.msk.bf16.gmra.mrb[108].mxu0 %vm539_vm4, %v3776_v37 }
 0xe45   : > { %v3740_v51 = vpop.f32.mrb[86].mxu1  ;;  %4779 = vmatprep.mubr.msk.bf16.mxu0 %vm5305_vm2, %v5304_v2 }
 0xe46   : > { %v3741_v55 = vadd.f32 %v4476_v61, %v3740_v51  ;;  %v4758_v45 = vpop.f32.mrb[87].mxu1  ;;  %v3769_v22 = vadd.f32 %v4486_v50, %v3738_v43 }
 0xe48   : > { %v3770_v24 = vadd.f32 %v4486_v50, %v3741_v55 }
 0xe4a   : > { %v3777_v10 = vpack.c.bf16 %v3770_v24, %v3769_v22 }
 0xe4b   : > { %v3745_v31 = vpop.f32.mrb[88].mxu1 }
 0xe4c   : > { %v3746_v57 = vadd.f32 %v4476_v61, %v3745_v31  ;;  %v4761_v42 = vpop.f32.mrb[89].mxu1  ;;  %4780 = vmatmul.mubr.msk.bf16.gmra.mrb[112].mxu0 %vm539_vm4, %v3777_v10 }
 0xe4d   : > { %v3748_v25 = vpop.f32.mrb[90].mxu1  ;;  %4783 = vmatprep.mubr.msk.bf16.mxu0 %vm5305_vm2, %v5304_v2 }
 0xe4e   : > { %v3749_v58 = vadd.f32 %v4476_v61, %v3748_v25  ;;  %v4762_v15 = vpop.f32.mrb[91].mxu1  ;;  %v3771_v56 = vadd.f32 %v4486_v50, %v3746_v57 }
 0xe50   : > { %v3772_v60 = vadd.f32 %v4486_v50, %v3749_v58 }
 0xe52   : > { %v3778_v18 = vpack.c.bf16 %v3772_v60, %v3771_v56 }
 0xe53   : > { %v3753_v6 = vpop.f32.mrb[92].mxu1 }
 0xe54   : > { %v3754_v59 = vadd.f32 %v4476_v61, %v3753_v6  ;;  %v4765_v44 = vpop.f32.mrb[93].mxu1  ;;  %4784 = vmatmul.mubr.msk.bf16.gmra.mrb[116].mxu0 %vm539_vm4, %v3778_v18 }
 0xe55   : > { %v3756_v49 = vpop.f32.mrb[94].mxu1  ;;  %4787 = vmatprep.mubr.msk.bf16.mxu0 %vm5305_vm2, %v5304_v2 }
 0xe56   : > { %v3757_v0 = vadd.f32 %v4476_v61, %v3756_v49  ;;  %v4766_v16 = vpop.f32.mrb[95].mxu1  ;;  %v3773_v13 = vadd.f32 %v4486_v50, %v3754_v59 }
 0xe58   : > { %v3774_v36 = vadd.f32 %v4486_v50, %v3757_v0 }
 0xe5a   : > { %v3779_v27 = vpack.c.bf16 %v3774_v36, %v3773_v13 }
 0xe5c   : > { %4788 = vmatmul.mubr.msk.bf16.gmra.mrb[120].mxu0 %vm539_vm4, %v3779_v27 }
 0xf0f   : > { %v3850_v11 = vpop.f32.mrb[104].mxu0 }
 0xf10   : > { %v3851_v12 = vadd.f32 %v6796_v7, %v3850_v11  ;;  %v4773_v53 = vpop.f32.mrb[105].mxu0 }
 0xf11   : > { %v3853_v28 = vpop.f32.mrb[106].mxu0 }
 0xf12   : > { %v3889_v8 = vsub.f32 0.0, %v3851_v12  ;;  %v3854_v38 = vadd.f32 %v6796_v7, %v3853_v28  ;;  %v4774_v19 = vpop.f32.mrb[107].mxu0 }
 0xf14   : > { %v3899_v61 = vmul.f32 1.442695, %v3889_v8  ;;  %v3890_v46 = vsub.f32 0.0, %v3854_v38 }
 0xf16   : > { %5167 = vpow2.f32 %v3899_v61  ;;  %v3901_v62 = vmul.f32 1.442695, %v3890_v46 }
 0xf17   : > { %v3858_v17 = vpop.f32.mrb[108].mxu0 }
 0xf18   : > { %5169 = vpow2.f32 %v3901_v62  ;;  %v6801_v50 = vadd.f32 %v6796_v7, %v3858_v17  ;;  %v4777_v63 = vpop.f32.mrb[109].mxu0 }
 0xf19   : > { %v3861_v5 = vpop.f32.mrb[110].mxu0 }
 0xf1a   : > { %v3891_v1 = vsub.f32 0.0, %v6801_v50  ;;  %v6805_v52 = vadd.f32 %v6796_v7, %v3861_v5  ;;  %v4778_v26 = vpop.f32.mrb[111].mxu0 }
 0xf1c   : > { %v3903_v30 = vmul.f32 1.442695, %v3891_v1  ;;  %v3892_v21 = vsub.f32 0.0, %v6805_v52 }
 0xf1e   : > { %5171 = vpow2.f32 %v3903_v30  ;;  %v3905_v4 = vmul.f32 1.442695, %v3892_v21 }
 0xf1f   : > { %v3866_v35 = vpop.f32.mrb[112].mxu0 }
 0xf20   : > { %v5168_v48 = vpop.eup %5167  ;;  %5173 = vpow2.f32 %v3905_v4  ;;  %v6809_v39 = vadd.f32 %v6796_v7, %v3866_v35  ;;  %v4781_v20 = vpop.f32.mrb[113].mxu0 }
 0xf21   : > { %v3919_v54 = vadd.f32 1.0, %v5168_v48  ;;  %v3869_v34 = vpop.f32.mrb[114].mxu0 }
 0xf22   : > { %v5170_v37 = vpop.eup %5169  ;;  %v3893_v40 = vsub.f32 0.0, %v6809_v39  ;;  %v6813_v43 = vadd.f32 %v6796_v7, %v3869_v34  ;;  %v4782_v33 = vpop.f32.mrb[115].mxu0 }
 0xf23   : > { %5175 = vrcp.f32 %v3919_v54  ;;  %v3920_v51 = vadd.f32 1.0, %v5170_v37 }
 0xf24   : > { %v3907_v55 = vmul.f32 1.442695, %v3893_v40  ;;  %v3894_v45 = vsub.f32 0.0, %v6813_v43 }
 0xf25   : > { %5177 = vrcp.f32 %v3920_v51 }
 0xf26   : > { %5179 = vpow2.f32 %v3907_v55  ;;  %v3909_v22 = vmul.f32 1.442695, %v3894_v45 }
 0xf27   : > { %v3874_v24 = vpop.f32.mrb[116].mxu0 }
 0xf28   : > { %v5172_v10 = vpop.eup %5171  ;;  %5181 = vpow2.f32 %v3909_v22  ;;  %v6817_v31 = vadd.f32 %v6796_v7, %v3874_v24  ;;  %v4785_v57 = vpop.f32.mrb[117].mxu0  ;;  %v4495_v22 = vld [vmem:[%s6911_s8 + $0x1] ss:$0 sm:$0xff] }
 0xf29   : > { %v3921_v42 = vadd.f32 1.0, %v5172_v10  ;;  %v3877_v25 = vpop.f32.mrb[118].mxu0 }
 0xf2a   : > { %v5174_v58 = vpop.eup %5173  ;;  %v3895_v15 = vsub.f32 0.0, %v6817_v31  ;;  %v6821_v56 = vadd.f32 %v6796_v7, %v3877_v25  ;;  %v4786_v60 = vpop.f32.mrb[119].mxu0 }
 0xf2b   : > { %5183 = vrcp.f32 %v3921_v42  ;;  %v3922_v18 = vadd.f32 1.0, %v5174_v58 }
 0xf2c   : > { %v3911_v6 = vmul.f32 1.442695, %v3895_v15  ;;  %v3896_v59 = vsub.f32 0.0, %v6821_v56 }
 0xf2d   : > { %v5176_v44 = vpop.eup %5175  ;;  %5185 = vrcp.f32 %v3922_v18 }
 0xf2e   : > { %5187 = vpow2.f32 %v3911_v6  ;;  %v3913_v49 = vmul.f32 1.442695, %v3896_v59  ;;  %v3939_v36 = vmul.f32 %v5176_v44, %v3851_v12 }
 0xf2f   : > { %v5178_v0 = vpop.eup %5177  ;;  %v3882_v16 = vpop.f32.mrb[120].mxu0 }
 0xf30   : > { %v5180_v13 = vpop.eup %5179  ;;  %v3940_v27 = vmul.f32 %v5178_v0, %v3854_v38  ;;  %5189 = vpow2.f32 %v3913_v49  ;;  %v3883_v14 = vadd.f32 %v6796_v7, %v3882_v16  ;;  %v4789_v23 = vpop.f32.mrb[121].mxu0 }
 0xf31   : > { %v3923_v9 = vadd.f32 1.0, %v5180_v13  ;;  %v3885_v3 = vpop.f32.mrb[122].mxu0 }
 0xf32   : > { %v5182_v47 = vpop.eup %5181  ;;  %v3949_v32 = vpack.c.bf16 %v3940_v27, %v3939_v36  ;;  %v3897_v41 = vsub.f32 0.0, %v3883_v14  ;;  %v3886_v29 = vadd.f32 %v6796_v7, %v3885_v3  ;;  %v4790_v11 = vpop.f32.mrb[123].mxu0 }
 0xf33   : > { %5191 = vrcp.f32 %v3923_v9  ;;  %v3924_v53 = vadd.f32 1.0, %v5182_v47 }
 0xf34   : > { %v3915_v28 = vmul.f32 1.442695, %v3897_v41  ;;  %v3898_v8 = vsub.f32 0.0, %v3886_v29  ;;  %4808 = vmatmul.mubr.bf16.vlgmr.msra.gmra.mrb[96].mxu1 %v3949_v32 }
 0xf35   : > { %v5184_v19 = vpop.eup %5183  ;;  %5193 = vrcp.f32 %v3924_v53  ;;  %4811 = vmatprep.mubr.msk.bf16.mxu1 %vm5305_vm2, %v5304_v2 }
 0xf36   : > { %5195 = vpow2.f32 %v3915_v28  ;;  %v3917_v12 = vmul.f32 1.442695, %v3898_v8  ;;  %v3941_v46 = vmul.f32 %v5184_v19, %v6801_v50 }
 0xf37   : > { %v5186_v38 = vpop.eup %5185 }
 0xf38   : > { %v5188_v61 = vpop.eup %5187  ;;  %v3942_v62 = vmul.f32 %v5186_v38, %v6805_v52  ;;  %5197 = vpow2.f32 %v3917_v12 }
 0xf39   : > { %v3925_v7 = vadd.f32 1.0, %v5188_v61 }
 0xf3a   : > { %v5190_v17 = vpop.eup %5189  ;;  %v3950_v63 = vpack.c.bf16 %v3942_v62, %v3941_v46 }
 0xf3b   : > { %5199 = vrcp.f32 %v3925_v7  ;;  %v3926_v5 = vadd.f32 1.0, %v5190_v17 }
 0xf3c   : > { %4812 = vmatmul.mubr.bf16.gmra.mrb[100].mxu1 %v3950_v63 }
 0xf3d   : > { %v5192_v1 = vpop.eup %5191  ;;  %5201 = vrcp.f32 %v3926_v5  ;;  %4815 = vmatprep.mubr.msk.bf16.mxu1 %vm5305_vm2, %v5304_v2 }
 0xf3e   : > { %v3943_v21 = vmul.f32 %v5192_v1, %v6809_v39 }
 0xf3f   : > { %v5194_v26 = vpop.eup %5193 }
 0xf40   : > { %v5196_v30 = vpop.eup %5195  ;;  %v3944_v50 = vmul.f32 %v5194_v26, %v6813_v43 }
 0xf41   : > { %v3927_v4 = vadd.f32 1.0, %v5196_v30 }
 0xf42   : > { %v5198_v52 = vpop.eup %5197  ;;  %v3951_v35 = vpack.c.bf16 %v3944_v50, %v3943_v21 }
 0xf43   : > { %5203 = vrcp.f32 %v3927_v4  ;;  %v3928_v48 = vadd.f32 1.0, %v5198_v52 }
 0xf44   : > { %4816 = vmatmul.mubr.bf16.gmra.mrb[104].mxu1 %v3951_v35 }
 0xf45   : > { %v5200_v20 = vpop.eup %5199  ;;  %5205 = vrcp.f32 %v3928_v48  ;;  %4819 = vmatprep.mubr.msk.bf16.mxu1 %vm5305_vm2, %v5304_v2 }
 0xf46   : > { %v3945_v34 = vmul.f32 %v5200_v20, %v6817_v31 }
 0xf47   : > { %v5202_v54 = vpop.eup %5201 }
 0xf48   : > { %v3946_v37 = vmul.f32 %v5202_v54, %v6821_v56 }
 0xf4a   : > { %v3952_v40 = vpack.c.bf16 %v3946_v37, %v3945_v34 }
 0xf4c   : > { %4820 = vmatmul.mubr.bf16.gmra.mrb[108].mxu1 %v3952_v40 }
 0xf4d   : > { %v5204_v39 = vpop.eup %5203  ;;  %4823 = vmatprep.mubr.msk.bf16.mxu1 %vm5305_vm2, %v5304_v2 }
 0xf4e   : > { %v3947_v33 = vmul.f32 %v5204_v39, %v3883_v14 }
 0xf4f   : > { %v5206_v43 = vpop.eup %5205 }
 0xf50   : > { %v3948_v51 = vmul.f32 %v5206_v43, %v3886_v29 }
 0xf52   : > { %v3953_v55 = vpack.c.bf16 %v3948_v51, %v3947_v33 }
 0xf54   : > { %4824 = vmatmul.mubr.bf16.gmra.mrb[112].mxu1 %v3953_v55 }
0x1007   : > { %v4057_v45 = vpop.f32.mrb[96].mxu1 }
0x1008   : > { %v4809_v24 = vpop.f32.mrb[97].mxu1 }
0x1009   : > { %v4059_v10 = vpop.f32.mrb[98].mxu1 }
0x100a   : > { %v4060_v31 = vadd.f32 %v4495_v22, %v4059_v10  ;;  %v4810_v57 = vpop.f32.mrb[99].mxu1 }
0x100c   : > { %4094 = vmax.xlane.f32.xlu1 %v4060_v31 }
0x100f   : > { %v4064_v42 = vpop.f32.mrb[100].mxu1 }
0x1010   : > { %v4065_v25 = vadd.f32 %v4495_v22, %v4064_v42  ;;  %v4813_v58 = vpop.f32.mrb[101].mxu1 }
0x1011   : > { %v4067_v15 = vpop.f32.mrb[102].mxu1 }
0x1012   : > { %4096 = vmax.xlane.f32.xlu0 %v4065_v25  ;;  %v4814_v2 = vpop.f32.mrb[103].mxu1  ;;  %v4068_v56 = vadd.f32 %v4495_v22, %v4067_v15 }
0x1016   : > { %4098 = vmax.xlane.f32.xlu0 %v4068_v56 }
0x1017   : > { %v4072_v60 = vpop.f32.mrb[104].mxu1 }
0x1018   : > { %v4073_v18 = vadd.f32 %v4495_v22, %v4072_v60  ;;  %v4817_v6 = vpop.f32.mrb[105].mxu1 }
0x1019   : > { %v4075_v59 = vpop.f32.mrb[106].mxu1 }
0x101a   : > { %v4076_v44 = vadd.f32 %v4495_v22, %v4075_v59  ;;  %4100 = vmax.xlane.f32.xlu1 %v4073_v18  ;;  %v4818_v49 = vpop.f32.mrb[107].mxu1 }
0x101c   : > { %4102 = vmax.xlane.f32.xlu0 %v4076_v44 }
0x101f   : > { %v4080_v0 = vpop.f32.mrb[108].mxu1 }
0x1020   : > { %v4081_v16 = vadd.f32 %v4495_v22, %v4080_v0  ;;  %v4821_v13 = vpop.f32.mrb[109].mxu1 }
0x1021   : > { %v4083_v36 = vpop.f32.mrb[110].mxu1 }
0x1022   : > { %v4084_v27 = vadd.f32 %v4495_v22, %v4083_v36  ;;  %4104 = vmax.xlane.f32.xlu1 %v4081_v16  ;;  %v4822_v14 = vpop.f32.mrb[111].mxu1 }
0x1024   : > { %4106 = vmax.xlane.f32.xlu0 %v4084_v27 }
0x1027   : > { %v4088_v23 = vpop.f32.mrb[112].mxu1 }
0x1028   : > { %v4089_v9 = vadd.f32 %v4495_v22, %v4088_v23  ;;  %v4825_v3 = vpop.f32.mrb[113].mxu1 }
0x1029   : > { %v4091_v47 = vpop.f32.mrb[114].mxu1 }
0x102a   : > { %4108 = vmax.xlane.f32.xlu1 %v4089_v9  ;;  %v4826_v32 = vpop.f32.mrb[115].mxu1 }
0x1099   : > { %v4095_v41 = vpop.xlane.xlu1 %4094 }
0x109a   : > { %v4110_v29 = vsub.f32 %v4060_v31, %v4095_v41 }
0x109c   : > { %v4118_v11 = vmul.f32 1.442695, %v4110_v29 }
0x109e   : > { %5207 = vpow2.f32 %v4118_v11 }
0x109f   : > { %v4097_v53 = vpop.xlane.xlu0 %4096 }
0x10a0   : > { %v4111_v28 = vsub.f32 %v4065_v25, %v4097_v53 }
0x10a2   : > { %v4120_v8 = vmul.f32 1.442695, %v4111_v28 }
0x10a3   : > { %v4099_v19 = vpop.xlane.xlu0 %4098 }
0x10a4   : > { %5209 = vpow2.f32 %v4120_v8  ;;  %v4112_v12 = vsub.f32 %v4068_v56, %v4099_v19 }
0x10a6   : > { %v4122_v38 = vmul.f32 1.442695, %v4112_v12 }
0x10a7   : > { %v4101_v61 = vpop.xlane.xlu1 %4100 }
0x10a8   : > { %v5208_v46 = vpop.eup %5207  ;;  %5211 = vpow2.f32 %v4122_v38  ;;  %v4113_v62 = vsub.f32 %v4073_v18, %v4101_v61 }
0x10a9   : > { %v4103_v7 = vpop.xlane.xlu0 %4102  ;;  %4134 = vadd.xlane.f32.xlu0 %v5208_v46 }
0x10aa   : > { %v4124_v17 = vmul.f32 1.442695, %v4113_v62  ;;  %v4114_v63 = vsub.f32 %v4076_v44, %v4103_v7 }
0x10ac   : > { %5213 = vpow2.f32 %v4124_v17  ;;  %v4126_v5 = vmul.f32 1.442695, %v4114_v63 }
0x10ae   : > { %v5210_v1 = vpop.eup %5209  ;;  %5215 = vpow2.f32 %v4126_v5 }
0x10af   : > { %v4105_v26 = vpop.xlane.xlu1 %4104  ;;  %4136 = vadd.xlane.f32.xlu1 %v5210_v1 }
0x10b0   : > { %v4115_v30 = vsub.f32 %v4081_v16, %v4105_v26 }
0x10b1   : > { %v4107_v21 = vpop.xlane.xlu0 %4106 }
0x10b2   : > { %v5212_v50 = vpop.eup %5211  ;;  %v4128_v4 = vmul.f32 1.442695, %v4115_v30  ;;  %v4116_v52 = vsub.f32 %v4084_v27, %v4107_v21 }
0x10b3   : > { %4138 = vadd.xlane.f32.xlu0 %v5212_v50 }
0x10b4   : > { %5217 = vpow2.f32 %v4128_v4  ;;  %v4130_v35 = vmul.f32 1.442695, %v4116_v52 }
0x10b6   : > { %v5214_v48 = vpop.eup %5213  ;;  %5219 = vpow2.f32 %v4130_v35 }
0x10b7   : > { %4140 = vadd.xlane.f32.xlu1 %v5214_v48  ;;  %v4109_v20 = vpop.xlane.xlu1 %4108 }
0x10b8   : > { %v5216_v54 = vpop.eup %5215  ;;  %v4117_v34 = vsub.f32 %v4089_v9, %v4109_v20 }
0x10b9   : > { %4142 = vadd.xlane.f32.xlu0 %v5216_v54 }
0x10ba   : > { %v4132_v37 = vmul.f32 1.442695, %v4117_v34 }
0x10bc   : > { %5221 = vpow2.f32 %v4132_v37 }
0x10be   : > { %v5218_v40 = vpop.eup %5217 }
0x10bf   : > { %4144 = vadd.xlane.f32.xlu1 %v5218_v40 }
0x10c0   : > { %v5220_v39 = vpop.eup %5219 }
0x10c1   : > { %4146 = vadd.xlane.f32.xlu0 %v5220_v39 }
0x10c6   : > { %v5222_v43 = vpop.eup %5221 }
0x10c7   : > { %4148 = vadd.xlane.f32.xlu1 %v5222_v43 }
0x1136   : > { %v4135_v33 = vpop.xlane.xlu0 %4134 }
0x1137   : > { %5223 = vrcp.f32 %v4135_v33 }
0x113c   : > { %v4137_v51 = vpop.xlane.xlu1 %4136 }
0x113d   : > { %5225 = vrcp.f32 %v4137_v51 }
0x1140   : > { %v4139_v55 = vpop.xlane.xlu0 %4138 }
0x1141   : > { %v5224_v45 = vpop.eup %5223  ;;  %5227 = vrcp.f32 %v4139_v55 }
0x1142   : > { %v4151_v22 = vmul.f32 %v5224_v45, %v5208_v46 }
0x1144   : > { %4166 = vst [vmem:[%s5421_s28] sm:$0xff] %v4151_v22  ;;  %v4141_v24 = vpop.xlane.xlu1 %4140 }
0x1145   : > { %5229 = vrcp.f32 %v4141_v24 }
0x1146   : > { %v4143_v10 = vpop.xlane.xlu0 %4142 }
0x1147   : > { %v5226_v31 = vpop.eup %5225  ;;  %5231 = vrcp.f32 %v4143_v10 }
0x1148   : > { %v4153_v57 = vmul.f32 %v5226_v31, %v5210_v1 }
0x114a   : > { %4167 = vst [vmem:[%s5421_s28 + $0x8] sm:$0xff] %v4153_v57 }
0x114b   : > { %v5228_v42 = vpop.eup %5227 }
0x114c   : > { %v4155_v25 = vmul.f32 %v5228_v42, %v5212_v50  ;;  %v4145_v58 = vpop.xlane.xlu1 %4144 }
0x114d   : > { %5233 = vrcp.f32 %v4145_v58 }
0x114e   : > { %4168 = vst [vmem:[%s5421_s28 + $0x10] sm:$0xff] %v4155_v25  ;;  %v4147_v15 = vpop.xlane.xlu0 %4146 }
0x114f   : > { %v5230_v2 = vpop.eup %5229  ;;  %5235 = vrcp.f32 %v4147_v15 }
0x1150   : > { %v4157_v56 = vmul.f32 %v5230_v2, %v5214_v48 }
0x1151   : > { %v5232_v60 = vpop.eup %5231 }
0x1152   : > { %4169 = vst [vmem:[%s5421_s28 + $0x18] sm:$0xff] %v4157_v56  ;;  %v4159_v18 = vmul.f32 %v5232_v60, %v5216_v54 }
0x1154   : > { %4170 = vst [vmem:[%s5421_s28 + $0x20] sm:$0xff] %v4159_v18  ;;  %v4149_v6 = vpop.xlane.xlu1 %4148 }
0x1155   : > { %5237 = vrcp.f32 %v4149_v6 }
0x1157   : > { %v5234_v59 = vpop.eup %5233 }
0x1158   : > { %v4161_v44 = vmul.f32 %v5234_v59, %v5218_v40 }
0x1159   : > { %v5236_v49 = vpop.eup %5235 }
0x115a   : > { %4171 = vst [vmem:[%s5421_s28 + $0x28] sm:$0xff] %v4161_v44  ;;  %v4163_v0 = vmul.f32 %v5236_v49, %v5220_v39 }
0x115c   : > { %4172 = vst [vmem:[%s5421_s28 + $0x30] sm:$0xff] %v4163_v0 }
0x115f   : > { %v5238_v16 = vpop.eup %5237 }
0x1160   : > { %v4165_v13 = vmul.f32 %v5238_v16, %v5222_v43 }
0x1162   : > { %4173 = vst [vmem:[%s5421_s28 + $0x38] sm:$0xff] %v4165_v13 }
0x1163   : > { %5252 = shalt.err (!%p5249_p4)
}
0x1164   : > { %s5253_s28 = scalar_lea.hbm %s6855_s29, 1024  ;;  %s5257_s24 = scalar_lea.hbm %s6912_s9, 2048 }
0x1165   : > { %p5254_p7 = scmp.ne.s32.totalorder %s6855_s29, %s5253_s28  ;;  %p5258_p10 = scmp.lt.u32.totalorder %s6855_s29, %s6912_s9 }
0x1166   : > { %p5259_p11 = scmp.lt.u32.totalorder %s5257_s24, %s5253_s28  ;;  %p5261_p13 = scmp.lt.u32.totalorder %s5253_s28, %s6855_s29 }
0x1167   : > { %p5255_p8 = pnand %p5254_p7, %p5401_p5 }
0x1168   : > { %p5260_p12 = por %p5259_p11, %p5258_p10 }
0x1169   : > { %p5256_p9 = pneg %p5255_p8 }
0x116a   : > { %p5262_p0 = por %p5261_p13, %p5260_p12 }
0x116c   : > { %p5263_p1 = pnand %p5262_p0, %p5256_p9 }
0x116e   : > { %5266 = shalt.err (!%p5263_p1)
}
0x116f   : > { %s5311_s26 = smov 128   ;;  %s5312_s13 = smov 8  }
0x1170   : > { %4836 = dma.vmem_to_hbm [thread:$0]  (%p5401_p5), %s6857_s23, 1024, %s6855_s29, %s6862_s25, %s5311_s26, %s5311_s26, %s5312_s13  }
0x1171 PF: > { %p4842_p2 = scmp.ge.s32.totalorder %s5301_s12, 2  ;;  %s4203_s14 = sand.u32 1, %s5289_s30  }
0x1172   : > { %s4204_s16 = scalar_lea.sflag [#allocation5], %s4203_s14 }
0x1173   : > { %p4839_p3 = pnand %p4842_p2, %p5405_p6 }
0x1175   : > { %5284 = dma.done.wait (!%p4839_p3), %s4204_s16, 1024  }
0x1176   : > { %5286 = vsyncadd (!%p4839_p3), %s4204_s16, 4294966272  ;;  %p19_p4 = scmp.ge.s32.totalorder %s5388_s15, 4   ;;  %s6917_s30 = smov %s5293_s10 }
0x1177   : > { %s6918_s10 = smov %s5297_s11  ;;  %s6919_s11 = smov %s5399_s18 }
0x1178   : > { %s6920_s12 = smov %s5388_s15  ;;  %21 = sbr.rel (!%p19_p4) target bundleno = 3 (0x3), region = 101 }
0x117f   :  { %4209 = vsyncpa [#allocation5], 1 }
0x1180   :  { %4211 = vsyncpa [#allocation5 + $0x1], 1 }

</bundles_post_ra>
